<compile_context>
chip_gen: v7x
topology: tpu7x:2x2x1
jax: 0.10.0
libtpu: 0.0.40
codegen_flags: <defaults>
</compile_context>

<pallas_src>
import jax
import jax.numpy as jnp
from jax.experimental import pallas as pl
from jax.experimental.pallas import tpu as pltpu


def _round_up(x, m):
    return ((x + m - 1) // m) * m


def _leaky_relu(x, negative_slope=0.2):
    return jnp.where(x > 0, x, negative_slope * x)


def generator_kernel(z_ref,
                     w1_ref, b1_ref,
                     w2_ref, b2_ref,
                     w3_ref, b3_ref,
                     w4_ref, b4_ref,
                     out_ref):
    # All matmuls feed bf16 into the MXU and accumulate in f32; all VPU/EUP work
    # (bias add, LeakyReLU, tanh) stays in f32 (v5e has no bf16 VPU/EUP).
    # Layer 1: latent -> 256
    h = jnp.dot(z_ref[...].astype(jnp.bfloat16), w1_ref[...],
                preferred_element_type=jnp.float32)
    h = _leaky_relu(h + b1_ref[...])
    # Layer 2: 256 -> 512
    h = jnp.dot(h.astype(jnp.bfloat16), w2_ref[...],
                preferred_element_type=jnp.float32)
    h = _leaky_relu(h + b2_ref[...])
    # Layer 3: 512 -> 1024
    h = jnp.dot(h.astype(jnp.bfloat16), w3_ref[...],
                preferred_element_type=jnp.float32)
    h = _leaky_relu(h + b3_ref[...])
    # Layer 4: 1024 -> img_dim_pad (lane-dense 896), then Tanh
    h = jnp.dot(h.astype(jnp.bfloat16), w4_ref[...],
                preferred_element_type=jnp.float32)
    out_ref[...] = jnp.tanh(h + b4_ref[...])


def prepare_params(params, img_dim):
    """One-time (per-model) prep: pad layer-4 columns to a multiple of 128 and
    cast weights to bf16 (biases stay f32). Do this once, outside the hot path."""
    (w1, b1), (w2, b2), (w3, b3), (w4, b4) = params
    img_dim_pad = _round_up(img_dim, 128)          # 784 -> 896
    if img_dim_pad != img_dim:
        w4 = jnp.pad(w4, ((0, 0), (0, img_dim_pad - img_dim)))
        b4 = jnp.pad(b4, ((0, 0), (0, img_dim_pad - img_dim)))
    w1, w2, w3, w4 = (w.astype(jnp.bfloat16) for w in (w1, w2, w3, w4))
    return ((w1, b1), (w2, b2), (w3, b3), (w4, b4)), img_dim_pad


def generator_forward(z, prepared_params, img_dim_pad, *, img_size, channels):
    """z: (B, latent_dim) f32 -> image (B, channels, img_size, img_size) f32."""
    B, latent_dim = z.shape
    img_dim = img_size * img_size * channels

    (w1, b1), (w2, b2), (w3, b3), (w4, b4) = prepared_params

    # Batch tiling: >=8 rows (sublane), 128-row tiles once the batch is large.
    TM = 128 if B >= 128 else _round_up(max(B, 8), 8)
    B_pad = _round_up(B, TM)
    if B_pad != B:
        z = jnp.pad(z, ((0, B_pad - B), (0, 0)))
    grid = (B_pad // TM,)

    def row_map(i):          # z / out tiles walk the batch axis
        return (i, 0)

    def const_map(i):        # weights / biases: same block every step -> stay resident
        return (0, 0)

    # NOTE: weights keep default double-buffering; at ~3 MB (bf16) total the extra
    # buffer is negligible under the 32 MiB scoped-VMEM limit, and the constant
    # index_map means they are only DMA'd once anyway.
    in_specs = [
        pl.BlockSpec((TM, latent_dim), row_map),
        pl.BlockSpec(w1.shape, const_map),
        pl.BlockSpec(b1.shape, const_map),
        pl.BlockSpec(w2.shape, const_map),
        pl.BlockSpec(b2.shape, const_map),
        pl.BlockSpec(w3.shape, const_map),
        pl.BlockSpec(b3.shape, const_map),
        pl.BlockSpec(w4.shape, const_map),
        pl.BlockSpec(b4.shape, const_map),
    ]
    out_specs = pl.BlockSpec((TM, img_dim_pad), row_map)

    flat = pl.pallas_call(
        generator_kernel,
        out_shape=jax.ShapeDtypeStruct((B_pad, img_dim_pad), jnp.float32),
        grid=grid,
        in_specs=in_specs,
        out_specs=out_specs,
        compiler_params=pltpu.CompilerParams(
            dimension_semantics=("parallel",),   # v7x: shard batch tiles over both TCs
            vmem_limit_bytes=32 << 20,           # fits v7x's 64 MiB physical VMEM
        ),
    )(z, w1, b1, w2, b2, w3, b3, w4, b4)

    # Glue: drop batch / lane padding, then match torch's img.view(B, C, H, W).
    img = flat[:B, :img_dim]
    return img.reshape(B, channels, img_size, img_size)


def init_params(key, latent_dim, img_dim):
    """Deterministic init mimicking nn.Linear default: U(-1/sqrt(fan_in), 1/sqrt(fan_in)).
    Weights stored as (in_features, out_features) so each layer is x @ W + b."""
    dims = [latent_dim, 256, 512, 1024, img_dim]
    params = []
    for i in range(4):
        fan_in, fan_out = dims[i], dims[i + 1]
        key, kw, kb = jax.random.split(key, 3)
        bound = 1.0 / jnp.sqrt(fan_in)
        w = jax.random.uniform(kw, (fan_in, fan_out), jnp.float32, -bound, bound)
        b = jax.random.uniform(kb, (1, fan_out), jnp.float32, -bound, bound)
        params.append((w, b))
    return params


if __name__ == "__main__":
    latent_dim = 64
    img_size = 28
    channels = 1
    batch = 2
    img_dim = img_size * img_size * channels

    key = jax.random.PRNGKey(0)
    key, zkey = jax.random.split(key)
    z = jax.random.normal(zkey, (batch, latent_dim), dtype=jnp.float32)

    params = init_params(key, latent_dim, img_dim)
    prepared, img_dim_pad = prepare_params(params, img_dim)   # pad + bf16 cast (once)

    img = generator_forward(z, prepared, img_dim_pad,
                            img_size=img_size, channels=channels)
    img = jax.block_until_ready(img)

    assert img.shape == (batch, channels, img_size, img_size), img.shape
    assert img.dtype == jnp.float32
    # Tanh output must be bounded.
    assert bool(jnp.all(jnp.abs(img) <= 1.0))

    print("KERNEL_OK")
</pallas_src>

<mosaic_0001>
module attributes {stable_mosaic.version = 11 : i64} {
  func.func @generator_kernel(%arg0: i32, %arg1: memref<8x64xf32, #tpu.memory_space<vmem>>, %arg2: memref<64x256xbf16, #tpu.memory_space<vmem>>, %arg3: memref<1x256xf32, #tpu.memory_space<vmem>>, %arg4: memref<256x512xbf16, #tpu.memory_space<vmem>>, %arg5: memref<1x512xf32, #tpu.memory_space<vmem>>, %arg6: memref<512x1024xbf16, #tpu.memory_space<vmem>>, %arg7: memref<1x1024xf32, #tpu.memory_space<vmem>>, %arg8: memref<1024x896xbf16, #tpu.memory_space<vmem>>, %arg9: memref<1x896xf32, #tpu.memory_space<vmem>>, %arg10: memref<8x896xf32, #tpu.memory_space<vmem>>) attributes {dimension_semantics = [#tpu.dimension_semantics<parallel>], iteration_bounds = array<i64: 1>, scalar_prefetch = 0 : i64, scratch_operands = 0 : i64, tpu.core_type = #tpu.core_type<tc>, window_params = [{transform_indices = @transform_0, window_bounds = array<i64: 8, 64>}, {pipeline_mode = #tpu.pipeline_mode<synchronous>, transform_indices = @transform_1, window_bounds = array<i64: 64, 256>}, {pipeline_mode = #tpu.pipeline_mode<synchronous>, transform_indices = @transform_2, window_bounds = array<i64: 1, 256>}, {pipeline_mode = #tpu.pipeline_mode<synchronous>, transform_indices = @transform_3, window_bounds = array<i64: 256, 512>}, {pipeline_mode = #tpu.pipeline_mode<synchronous>, transform_indices = @transform_4, window_bounds = array<i64: 1, 512>}, {pipeline_mode = #tpu.pipeline_mode<synchronous>, transform_indices = @transform_5, window_bounds = array<i64: 512, 1024>}, {pipeline_mode = #tpu.pipeline_mode<synchronous>, transform_indices = @transform_6, window_bounds = array<i64: 1, 1024>}, {pipeline_mode = #tpu.pipeline_mode<synchronous>, transform_indices = @transform_7, window_bounds = array<i64: 1024, 896>}, {pipeline_mode = #tpu.pipeline_mode<synchronous>, transform_indices = @transform_8, window_bounds = array<i64: 1, 896>}, {transform_indices = @transform_9, window_bounds = array<i64: 8, 896>}]} {
    %c0 = arith.constant 0 : index
    %c0_0 = arith.constant 0 : index
    %0 = vector.load %arg1[%c0, %c0_0] : memref<8x64xf32, #tpu.memory_space<vmem>>, vector<8x64xf32>
    %1 = arith.truncf %0 : vector<8x64xf32> to vector<8x64xbf16>
    %c0_1 = arith.constant 0 : index
    %c0_2 = arith.constant 0 : index
    %2 = vector.load %arg2[%c0_1, %c0_2] : memref<64x256xbf16, #tpu.memory_space<vmem>>, vector<64x256xbf16>
    %cst = arith.constant dense<0.000000e+00> : vector<8x256xf32>
    %3 = tpu.matmul %1, %2, %cst {dimension_numbers = #tpu.dot_dimension_numbers<[1], [0], [0], [1], [0, 0, 1, 1], [], []>} : vector<8x64xbf16>, vector<64x256xbf16>, vector<8x256xf32> -> vector<8x256xf32>
    %c0_3 = arith.constant 0 : index
    %c0_4 = arith.constant 0 : index
    %4 = vector.load %arg3[%c0_3, %c0_4] : memref<1x256xf32, #tpu.memory_space<vmem>>, vector<1x256xf32>
    %5 = vector.broadcast %4 : vector<1x256xf32> to vector<8x256xf32>
    %6 = arith.addf %3, %5 : vector<8x256xf32>
    %cst_5 = arith.constant 0.000000e+00 : f32
    %7 = vector.broadcast %cst_5 : f32 to vector<8x256xf32>
    %8 = arith.cmpf ogt, %6, %7 : vector<8x256xf32>
    %cst_6 = arith.constant 2.000000e-01 : f32
    %9 = vector.broadcast %cst_6 : f32 to vector<8x256xf32>
    %10 = arith.mulf %9, %6 : vector<8x256xf32>
    %11 = arith.select %8, %6, %10 : vector<8x256xi1>, vector<8x256xf32>
    %12 = arith.truncf %11 : vector<8x256xf32> to vector<8x256xbf16>
    %c0_7 = arith.constant 0 : index
    %c0_8 = arith.constant 0 : index
    %13 = vector.load %arg4[%c0_7, %c0_8] : memref<256x512xbf16, #tpu.memory_space<vmem>>, vector<256x512xbf16>
    %cst_9 = arith.constant dense<0.000000e+00> : vector<8x512xf32>
    %14 = tpu.matmul %12, %13, %cst_9 {dimension_numbers = #tpu.dot_dimension_numbers<[1], [0], [0], [1], [0, 0, 1, 1], [], []>} : vector<8x256xbf16>, vector<256x512xbf16>, vector<8x512xf32> -> vector<8x512xf32>
    %c0_10 = arith.constant 0 : index
    %c0_11 = arith.constant 0 : index
    %15 = vector.load %arg5[%c0_10, %c0_11] : memref<1x512xf32, #tpu.memory_space<vmem>>, vector<1x512xf32>
    %16 = vector.broadcast %15 : vector<1x512xf32> to vector<8x512xf32>
    %17 = arith.addf %14, %16 : vector<8x512xf32>
    %cst_12 = arith.constant 0.000000e+00 : f32
    %18 = vector.broadcast %cst_12 : f32 to vector<8x512xf32>
    %19 = arith.cmpf ogt, %17, %18 : vector<8x512xf32>
    %cst_13 = arith.constant 2.000000e-01 : f32
    %20 = vector.broadcast %cst_13 : f32 to vector<8x512xf32>
    %21 = arith.mulf %20, %17 : vector<8x512xf32>
    %22 = arith.select %19, %17, %21 : vector<8x512xi1>, vector<8x512xf32>
    %23 = arith.truncf %22 : vector<8x512xf32> to vector<8x512xbf16>
    %c0_14 = arith.constant 0 : index
    %c0_15 = arith.constant 0 : index
    %24 = vector.load %arg6[%c0_14, %c0_15] : memref<512x1024xbf16, #tpu.memory_space<vmem>>, vector<512x1024xbf16>
    %cst_16 = arith.constant dense<0.000000e+00> : vector<8x1024xf32>
    %25 = tpu.matmul %23, %24, %cst_16 {dimension_numbers = #tpu.dot_dimension_numbers<[1], [0], [0], [1], [0, 0, 1, 1], [], []>} : vector<8x512xbf16>, vector<512x1024xbf16>, vector<8x1024xf32> -> vector<8x1024xf32>
    %c0_17 = arith.constant 0 : index
    %c0_18 = arith.constant 0 : index
    %26 = vector.load %arg7[%c0_17, %c0_18] : memref<1x1024xf32, #tpu.memory_space<vmem>>, vector<1x1024xf32>
    %27 = vector.broadcast %26 : vector<1x1024xf32> to vector<8x1024xf32>
    %28 = arith.addf %25, %27 : vector<8x1024xf32>
    %cst_19 = arith.constant 0.000000e+00 : f32
    %29 = vector.broadcast %cst_19 : f32 to vector<8x1024xf32>
    %30 = arith.cmpf ogt, %28, %29 : vector<8x1024xf32>
    %cst_20 = arith.constant 2.000000e-01 : f32
    %31 = vector.broadcast %cst_20 : f32 to vector<8x1024xf32>
    %32 = arith.mulf %31, %28 : vector<8x1024xf32>
    %33 = arith.select %30, %28, %32 : vector<8x1024xi1>, vector<8x1024xf32>
    %34 = arith.truncf %33 : vector<8x1024xf32> to vector<8x1024xbf16>
    %c0_21 = arith.constant 0 : index
    %c0_22 = arith.constant 0 : index
    %35 = vector.load %arg8[%c0_21, %c0_22] : memref<1024x896xbf16, #tpu.memory_space<vmem>>, vector<1024x896xbf16>
    %cst_23 = arith.constant dense<0.000000e+00> : vector<8x896xf32>
    %36 = tpu.matmul %34, %35, %cst_23 {dimension_numbers = #tpu.dot_dimension_numbers<[1], [0], [0], [1], [0, 0, 1, 1], [], []>} : vector<8x1024xbf16>, vector<1024x896xbf16>, vector<8x896xf32> -> vector<8x896xf32>
    %c0_24 = arith.constant 0 : index
    %c0_25 = arith.constant 0 : index
    %37 = vector.load %arg9[%c0_24, %c0_25] : memref<1x896xf32, #tpu.memory_space<vmem>>, vector<1x896xf32>
    %38 = vector.broadcast %37 : vector<1x896xf32> to vector<8x896xf32>
    %39 = arith.addf %36, %38 : vector<8x896xf32>
    %40 = math.tanh %39 : vector<8x896xf32>
    %c0_26 = arith.constant 0 : index
    %c0_27 = arith.constant 0 : index
    %41 = vector.load %arg10[%c0_26, %c0_27] : memref<8x896xf32, #tpu.memory_space<vmem>>, vector<8x896xf32>
    tpu.vector_store %arg10[%c0_26, %c0_27], %40 {strides = array<i32>} : memref<8x896xf32, #tpu.memory_space<vmem>>, vector<8x896xf32>,
    return
  }
  func.func @transform_0(%arg0: i32) -> (i32, i32) {
    %c0_i32 = arith.constant 0 : i32
    %c0_i32_0 = arith.constant 0 : i32
    return %arg0, %c0_i32 : i32, i32
  }
  func.func @transform_1(%arg0: i32) -> (i32, i32) {
    %c0_i32 = arith.constant 0 : i32
    %c0_i32_0 = arith.constant 0 : i32
    %c0_i32_1 = arith.constant 0 : i32
    return %c0_i32, %c0_i32_0 : i32, i32
  }
  func.func @transform_2(%arg0: i32) -> (i32, i32) {
    %c0_i32 = arith.constant 0 : i32
    %c0_i32_0 = arith.constant 0 : i32
    %c0_i32_1 = arith.constant 0 : i32
    return %c0_i32, %c0_i32_0 : i32, i32
  }
  func.func @transform_3(%arg0: i32) -> (i32, i32) {
    %c0_i32 = arith.constant 0 : i32
    %c0_i32_0 = arith.constant 0 : i32
    %c0_i32_1 = arith.constant 0 : i32
    return %c0_i32, %c0_i32_0 : i32, i32
  }
  func.func @transform_4(%arg0: i32) -> (i32, i32) {
    %c0_i32 = arith.constant 0 : i32
    %c0_i32_0 = arith.constant 0 : i32
    %c0_i32_1 = arith.constant 0 : i32
    return %c0_i32, %c0_i32_0 : i32, i32
  }
  func.func @transform_5(%arg0: i32) -> (i32, i32) {
    %c0_i32 = arith.constant 0 : i32
    %c0_i32_0 = arith.constant 0 : i32
    %c0_i32_1 = arith.constant 0 : i32
    return %c0_i32, %c0_i32_0 : i32, i32
  }
  func.func @transform_6(%arg0: i32) -> (i32, i32) {
    %c0_i32 = arith.constant 0 : i32
    %c0_i32_0 = arith.constant 0 : i32
    %c0_i32_1 = arith.constant 0 : i32
    return %c0_i32, %c0_i32_0 : i32, i32
  }
  func.func @transform_7(%arg0: i32) -> (i32, i32) {
    %c0_i32 = arith.constant 0 : i32
    %c0_i32_0 = arith.constant 0 : i32
    %c0_i32_1 = arith.constant 0 : i32
    return %c0_i32, %c0_i32_0 : i32, i32
  }
  func.func @transform_8(%arg0: i32) -> (i32, i32) {
    %c0_i32 = arith.constant 0 : i32
    %c0_i32_0 = arith.constant 0 : i32
    %c0_i32_1 = arith.constant 0 : i32
    return %c0_i32, %c0_i32_0 : i32, i32
  }
  func.func @transform_9(%arg0: i32) -> (i32, i32) {
    %c0_i32 = arith.constant 0 : i32
    %c0_i32_0 = arith.constant 0 : i32
    return %arg0, %c0_i32 : i32, i32
  }
}

</mosaic_0001>

<bundles_post_ra>
// kernel: tpu_custom_call.1
= control target key start
LH: loop header
LB: loop body
LE: loop exit
PB: predicated region body
PF: predicated region fallthrough
CT: control target
= control target key end

     0   :  { %14 = vsyncpa [#allocation3], 0  ;;  %s8547_s0 = inlined_call_operand.hbm [shape: f32[8,64], index: 0, kind: input, shape index: {}]   ;;  %s8548_s1 = inlined_call_operand.hbm [shape: bf16[64,256], index: 1, kind: input, shape index: {}]   ;;  %s8549_s2 = inlined_call_operand.hbm [shape: f32[1,256], index: 2, kind: input, shape index: {}]   ;;  %s8550_s3 = inlined_call_operand.hbm [shape: bf16[256,512], index: 3, kind: input, shape index: {}]   ;;  %s8551_s4 = inlined_call_operand.hbm [shape: f32[1,512], index: 4, kind: input, shape index: {}]   ;;  %s8552_s5 = inlined_call_operand.hbm [shape: bf16[512,1024], index: 5, kind: input, shape index: {}]   ;;  %s8553_s6 = inlined_call_operand.hbm [shape: f32[1,1024], index: 6, kind: input, shape index: {}]   ;;  %s8554_s7 = inlined_call_operand.hbm [shape: bf16[1024,896], index: 7, kind: input, shape index: {}]   ;;  %s8555_s8 = inlined_call_operand.hbm [shape: f32[1,896], index: 8, kind: input, shape index: {}]   ;;  %s8556_s9 = inlined_call_operand.hbm [shape: f32[8,896], index: 9, kind: output, shape index: {}]  }
   0x1   :  { %15 = vsyncpa [#allocation6], 0 }
   0x2   :  { %16 = vsyncpa [#allocation9], 0 }
   0x3   :  { %17 = vsyncpa [#allocation12], 0 }
   0x4   :  { %18 = vsyncpa [#allocation15], 0 }
   0x5   :  { %19 = vsyncpa [#allocation4], 0  ;;  %s8185_s30 = smov [#allocation5]   ;;  %s7953_s13 = scalar_lea.hbm %s8548_s1, 1024 }
   0x6   :  { %s35_s10 = sshll.u32 %s8185_s30, 4  ;;  %p7954_p0 = scmp.ne.s32.totalorder %s8548_s1, %s7953_s13  ;;  %s36_s10 = int_to_ptr.vmem [resolvable:$true] %s35_s10 }
   0x7   :  { %p7957_p1 = scmp.lt.u32.totalorder %s7953_s13, %s8548_s1 }
   0x9   :  { %p7959_p2 = pnand %p7957_p1, %p7954_p0 }
   0xb   :  { %7962 = shalt.err (!%p7959_p2)
}
   0xc   :  { %s7963_s18 = scalar_lea.vmem %s36_s10, 1024  ;;  %p7968_p4 = scmp.lt.s32.totalorder %s36_s10, %s36_s10 }
   0xd   :  { %p7964_p3 = scmp.ne.s32.totalorder %s36_s10, %s7963_s18  ;;  %p7969_p5 = scmp.lt.s32.totalorder %s7963_s18, %s7963_s18 }
   0xf   :  { %p7970_p6 = por %p7969_p5, %p7968_p4 }
  0x11   :  { %p7971_p7 = pnand %p7970_p6, %p7964_p3 }
  0x13   :  { %7974 = shalt.err (!%p7971_p7)
}
  0x14   :  { %s8186_s19 = smov 128   ;;  %s8187_s20 = smov 8  }
  0x15   :  { %41 = dma.hbm_to_vmem [thread:$0]  %s8548_s1, 1024, %s36_s10, [#allocation6], %s8186_s19, %s8186_s19, %s8187_s20  }
  0x16   :  { %s8188_s23 = smov [#allocation8]   ;;  %s7975_s27 = scalar_lea.hbm %s8550_s3, 8192 }
  0x17   :  { %s57_s24 = sshll.u32 %s8188_s23, 4  ;;  %p7976_p8 = scmp.ne.s32.totalorder %s8550_s3, %s7975_s27  ;;  %s58_s24 = int_to_ptr.vmem [resolvable:$true] %s57_s24 }
  0x18   :  { %p7979_p9 = scmp.lt.u32.totalorder %s7975_s27, %s8550_s3 }
  0x1a   :  { %p7981_p10 = pnand %p7979_p9, %p7976_p8 }
  0x1c   :  { %7984 = shalt.err (!%p7981_p10)
}
  0x1d   :  { %s7985_s12 = scalar_lea.vmem %s58_s24, 8192  ;;  %p7990_p12 = scmp.lt.s32.totalorder %s58_s24, %s58_s24 }
  0x1e   :  { %p7986_p11 = scmp.ne.s32.totalorder %s58_s24, %s7985_s12  ;;  %p7991_p13 = scmp.lt.s32.totalorder %s7985_s12, %s7985_s12 }
  0x20   :  { %p7992_p0 = por %p7991_p13, %p7990_p12 }
  0x22   :  { %p7993_p1 = pnand %p7992_p0, %p7986_p11 }
  0x24   :  { %7996 = shalt.err (!%p7993_p1)
}
  0x25   :  { %s8189_s1 = smov 256   ;;  %s8190_s10 = smov 16  }
  0x26   :  { %63 = dma.hbm_to_vmem [thread:$0]  %s8550_s3, 8192, %s58_s24, [#allocation9], %s8189_s1, %s8189_s1, %s8190_s10  }
  0x27   :  { %s8191_s15 = smov [#allocation11]   ;;  %s7997_s19 = scalar_lea.hbm %s8552_s5, 32768 }
  0x28   :  { %s79_s16 = sshll.u32 %s8191_s15, 4  ;;  %p7998_p2 = scmp.ne.s32.totalorder %s8552_s5, %s7997_s19  ;;  %s80_s16 = int_to_ptr.vmem [resolvable:$true] %s79_s16 }
  0x29   :  { %p8001_p3 = scmp.lt.u32.totalorder %s7997_s19, %s8552_s5 }
  0x2b   :  { %p8003_p4 = pnand %p8001_p3, %p7998_p2 }
  0x2d   :  { %8006 = shalt.err (!%p8003_p4)
}
  0x2e   :  { %s8007_s25 = scalar_lea.vmem %s80_s16, 32768  ;;  %p8012_p6 = scmp.lt.s32.totalorder %s80_s16, %s80_s16 }
  0x2f   :  { %p8008_p5 = scmp.ne.s32.totalorder %s80_s16, %s8007_s25  ;;  %p8013_p7 = scmp.lt.s32.totalorder %s8007_s25, %s8007_s25 }
  0x31   :  { %p8014_p8 = por %p8013_p7, %p8012_p6 }
  0x33   :  { %p8015_p9 = pnand %p8014_p8, %p8008_p5 }
  0x35   :  { %8018 = shalt.err (!%p8015_p9)
}
  0x36   :  { %s8192_s3 = smov 512   ;;  %s8193_s24 = smov 32  }
  0x37   :  { %85 = dma.hbm_to_vmem [thread:$0]  %s8552_s5, 32768, %s80_s16, [#allocation12], %s8192_s3, %s8192_s3, %s8193_s24  }
  0x38   :  { %s8194_s28 = smov [#allocation14]   ;;  %s8019_s12 = scalar_lea.hbm %s8554_s7, 57344 }
  0x39   :  { %s101_s29 = sshll.u32 %s8194_s28, 4  ;;  %p8020_p10 = scmp.ne.s32.totalorder %s8554_s7, %s8019_s12  ;;  %s102_s29 = int_to_ptr.vmem [resolvable:$true] %s101_s29 }
  0x3a   :  { %p8023_p11 = scmp.lt.u32.totalorder %s8019_s12, %s8554_s7 }
  0x3c   :  { %p8025_p12 = pnand %p8023_p11, %p8020_p10 }
  0x3e   :  { %8028 = shalt.err (!%p8025_p12)
}
  0x3f   :  { %s8029_s15 = scalar_lea.vmem %s102_s29, 57344  ;;  %p8034_p0 = scmp.lt.s32.totalorder %s102_s29, %s102_s29 }
  0x40   :  { %p8030_p13 = scmp.ne.s32.totalorder %s102_s29, %s8029_s15  ;;  %p8035_p1 = scmp.lt.s32.totalorder %s8029_s15, %s8029_s15 }
  0x42   :  { %p8036_p2 = por %p8035_p1, %p8034_p0 }
  0x44   :  { %p8037_p3 = pnand %p8036_p2, %p8030_p13 }
  0x46   :  { %8040 = shalt.err (!%p8037_p3)
}
  0x47   :  { %s8195_s5 = smov 448   ;;  %s8196_s16 = smov 28  }
  0x48   :  { %107 = dma.hbm_to_vmem [thread:$0]  %s8554_s7, 57344, %s102_s29, [#allocation15], %s8195_s5, %s8195_s5, %s8196_s16  }
  0x49   :  { %s8197_s19 = smov [#allocation2]   ;;  %s8198_s21 = smov [#allocation7]  }
  0x4a   :  { %s26_s20 = sshll.u32 %s8197_s19, 4  ;;  %s48_s22 = sshll.u32 %s8198_s21, 4  ;;  %s27_s20 = int_to_ptr.vmem [resolvable:$true] %s26_s20  ;;  %s49_s22 = int_to_ptr.vmem [resolvable:$true] %s48_s22 }
  0x4b   :  { %s8041_s3 = scalar_lea.hbm %s8547_s0, 128 }
  0x4c   :  { %p8042_p4 = scmp.ne.s32.totalorder %s8547_s0, %s8041_s3  ;;  %p8045_p5 = scmp.lt.u32.totalorder %s8041_s3, %s8547_s0 }
  0x4e   :  { %p8047_p6 = pnand %p8045_p5, %p8042_p4 }
  0x50   :  { %8050 = shalt.err (!%p8047_p6)
}
  0x51   :  { %s8051_s7 = scalar_lea.vmem %s27_s20, 128  ;;  %p8056_p8 = scmp.lt.s32.totalorder %s27_s20, %s27_s20 }
  0x52   :  { %p8052_p7 = scmp.ne.s32.totalorder %s27_s20, %s8051_s7  ;;  %p8057_p9 = scmp.lt.s32.totalorder %s8051_s7, %s8051_s7 }
  0x54   :  { %p8058_p10 = por %p8057_p9, %p8056_p8 }
  0x56   :  { %p8059_p11 = pnand %p8058_p10, %p8052_p7 }
  0x58   :  { %8062 = shalt.err (!%p8059_p11)
}
  0x59   :  { %29 = dma.hbm_to_vmem [thread:$0]  %s8547_s0, 128, %s27_s20, [#allocation3]  }
  0x5a   :  { %s8063_s1 = scalar_lea.hbm %s8549_s2, 32 }
  0x5b   :  { %p8064_p12 = scmp.ne.s32.totalorder %s8549_s2, %s8063_s1  ;;  %p8067_p13 = scmp.lt.u32.totalorder %s8063_s1, %s8549_s2 }
  0x5d   :  { %p8069_p0 = pnand %p8067_p13, %p8064_p12 }
  0x5f   :  { %8072 = shalt.err (!%p8069_p0)
}
  0x60   :  { %s8073_s5 = scalar_lea.vmem %s49_s22, 32  ;;  %p8078_p2 = scmp.lt.s32.totalorder %s49_s22, %s49_s22 }
  0x61   :  { %p8074_p1 = scmp.ne.s32.totalorder %s49_s22, %s8073_s5  ;;  %p8079_p3 = scmp.lt.s32.totalorder %s8073_s5, %s8073_s5 }
  0x63   :  { %p8080_p4 = por %p8079_p3, %p8078_p2 }
  0x65   :  { %p8081_p5 = pnand %p8080_p4, %p8074_p1 }
  0x67   :  { %8084 = shalt.err (!%p8081_p5)
}
  0x68   :  { %51 = dma.hbm_to_vmem [thread:$0]  %s8549_s2, 32, %s49_s22, [#allocation6]  }
  0x69   :  { %s8199_s17 = smov [#allocation10]   ;;  %s8200_s19 = smov [#allocation13]  }
  0x6a   :  { %s70_s18 = sshll.u32 %s8199_s17, 4  ;;  %s92_s20 = sshll.u32 %s8200_s19, 4  ;;  %s71_s18 = int_to_ptr.vmem [resolvable:$true] %s70_s18  ;;  %s93_s20 = int_to_ptr.vmem [resolvable:$true] %s92_s20 }
  0x6b   :  { %s8085_s25 = scalar_lea.hbm %s8551_s4, 64 }
  0x6c   :  { %p8086_p6 = scmp.ne.s32.totalorder %s8551_s4, %s8085_s25  ;;  %p8089_p7 = scmp.lt.u32.totalorder %s8085_s25, %s8551_s4 }
  0x6e   :  { %p8091_p8 = pnand %p8089_p7, %p8086_p6 }
  0x70   :  { %8094 = shalt.err (!%p8091_p8)
}
  0x71   :  { %s8095_s2 = scalar_lea.vmem %s71_s18, 64  ;;  %p8100_p10 = scmp.lt.s32.totalorder %s71_s18, %s71_s18 }
  0x72   :  { %p8096_p9 = scmp.ne.s32.totalorder %s71_s18, %s8095_s2  ;;  %p8101_p11 = scmp.lt.s32.totalorder %s8095_s2, %s8095_s2 }
  0x74   :  { %p8102_p12 = por %p8101_p11, %p8100_p10 }
  0x76   :  { %p8103_p13 = pnand %p8102_p12, %p8096_p9 }
  0x78   :  { %8106 = shalt.err (!%p8103_p13)
}
  0x79   :  { %73 = dma.hbm_to_vmem [thread:$0]  %s8551_s4, 64, %s71_s18, [#allocation9]  }
  0x7a   :  { %s8107_s30 = scalar_lea.hbm %s8553_s6, 128 }
  0x7b   :  { %p8108_p0 = scmp.ne.s32.totalorder %s8553_s6, %s8107_s30  ;;  %p8111_p1 = scmp.lt.u32.totalorder %s8107_s30, %s8553_s6 }
  0x7d   :  { %p8113_p2 = pnand %p8111_p1, %p8108_p0 }
  0x7f   :  { %8116 = shalt.err (!%p8113_p2)
}
  0x80   :  { %s8117_s13 = scalar_lea.vmem %s93_s20, 128  ;;  %p8122_p4 = scmp.lt.s32.totalorder %s93_s20, %s93_s20 }
  0x81   :  { %p8118_p3 = scmp.ne.s32.totalorder %s93_s20, %s8117_s13  ;;  %p8123_p5 = scmp.lt.s32.totalorder %s8117_s13, %s8117_s13 }
  0x83   :  { %p8124_p6 = por %p8123_p5, %p8122_p4 }
  0x85   :  { %p8125_p7 = pnand %p8124_p6, %p8118_p3 }
  0x87   :  { %8128 = shalt.err (!%p8125_p7)
}
  0x88   :  { %95 = dma.hbm_to_vmem [thread:$0]  %s8553_s6, 128, %s93_s20, [#allocation12]  }
  0x89   :  { %s8201_s15 = smov [#allocation16]   ;;  %s8129_s17 = scalar_lea.hbm %s8555_s8, 112 }
  0x8a   :  { %s114_s5 = sshll.u32 %s8201_s15, 4  ;;  %p8130_p8 = scmp.ne.s32.totalorder %s8555_s8, %s8129_s17  ;;  %s115_s5 = int_to_ptr.vmem [resolvable:$true] %s114_s5 }
  0x8b   :  { %p8133_p9 = scmp.lt.u32.totalorder %s8129_s17, %s8555_s8 }
  0x8d   :  { %p8135_p10 = pnand %p8133_p9, %p8130_p8 }
  0x8f   :  { %8138 = shalt.err (!%p8135_p10)
}
  0x90   :  { %s8139_s25 = scalar_lea.vmem %s115_s5, 112  ;;  %s8143_s6 = scalar_lea.vmem %s115_s5, 128 }
  0x91   :  { %p8140_p11 = scmp.ne.s32.totalorder %s115_s5, %s8139_s25  ;;  %p8144_p12 = scmp.lt.s32.totalorder %s115_s5, %s115_s5 }
  0x92   :  { %p8145_p13 = scmp.lt.s32.totalorder %s8143_s6, %s8139_s25 }
  0x94   :  { %p8146_p0 = por %p8145_p13, %p8144_p12 }
  0x96   :  { %p8147_p1 = pnand %p8146_p0, %p8140_p11 }
  0x98   :  { %8150 = shalt.err (!%p8147_p1)
}
  0x99   :  { %117 = dma.hbm_to_vmem [thread:$0]  %s8555_s8, 112, %s115_s5, [#allocation15]  }
  0x9a   :  { %8173 = dma.done.wait [#allocation3], 128  }
  0x9b   :  { %8174 = vsyncadd [#allocation3], 4294967168 }
  0x9c   :  { %8175 = dma.done.wait [#allocation6], 1056  }
  0x9d   :  { %8176 = vsyncadd [#allocation6], 4294966240 }
  0x9e   :  { %8177 = dma.done.wait [#allocation9], 8256  }
  0x9f   :  { %8178 = vsyncadd [#allocation9], 4294959040 }
  0xa0   :  { %8179 = dma.done.wait [#allocation12], 32896  }
  0xa1   :  { %8180 = vsyncadd [#allocation12], 4294934400 }
  0xa2   :  { %8181 = dma.done.wait [#allocation15], 57456  }
  0xa3   :  { %8182 = vsyncadd [#allocation15], 4294909840  ;;  %v8202_v0 = vmov 0   ;;  %v7191_v1 = vld [vmem:[#allocation5 + $0x4] ss:$8 sps:$4 sm:$0xff]   ;;  %v146_v9 = vld [vmem:[#allocation2] sm:$0xff] }
  0xa4   :  { %244 = vmatprep.mubr.bf16.mxu0 %v8202_v0  ;;  %v7193_v2 = vld [vmem:[#allocation5] ss:$8 sps:$4 sm:$0xff]   ;;  %212 = vmatprep.subr.bf16.mxu0 %v7191_v1  ;;  %v7194_v3 = vld [vmem:[#allocation5 + $0x14] ss:$8 sps:$4 sm:$0xff]   ;;  %v7196_v4 = vld [vmem:[#allocation5 + $0x10] ss:$8 sps:$4 sm:$0xff]   ;;  %v147_v11 = vpack.c.bf16 %v146_v9, %v146_v9 }
  0xa5   :  { %213 = vmatpush1.bf16.msra.mxu0 %v7193_v2  ;;  %v7197_v5 = vld [vmem:[#allocation5 + $0x24] ss:$8 sps:$4 sm:$0xff]   ;;  %v7199_v6 = vld [vmem:[#allocation5 + $0x20] ss:$8 sps:$4 sm:$0xff]   ;;  %v7200_v7 = vld [vmem:[#allocation5 + $0x34] ss:$8 sps:$4 sm:$0xff]  }
  0xa6   :  { %214 = vmatprep.subr.bf16.mxu0 %v7194_v3  ;;  %v7202_v8 = vld [vmem:[#allocation5 + $0x30] ss:$8 sps:$4 sm:$0xff]   ;;  %vm208_vm0 = vcmask 523264   ;;  %v765_v44 = vld [vmem:[#allocation11] sm:$0xff]  ;;  %s8203_s8 = smov [#allocation17]  }
  0xa7   :  { %v7205_v10 = vld [vmem:[#allocation8 + $0x4] ss:$16 sps:$4 sm:$0xff]   ;;  %v7203_v12 = vld [vmem:[#allocation8] ss:$16 sps:$4 sm:$0xff]   ;;  %v7253_v43 = vld [vmem:[#allocation8 + $0xc] ss:$16 sps:$4 sm:$0xff]  }
  0xa8   :  { %v7208_v13 = vld [vmem:[#allocation8 + $0x24] ss:$16 sps:$4 sm:$0xff]   ;;  %v7206_v14 = vld [vmem:[#allocation8 + $0x20] ss:$16 sps:$4 sm:$0xff]   ;;  %s6228_s24 = sshll.u32 %s8203_s8, 4  ;;  %s6229_s24 = int_to_ptr.vmem [resolvable:$true] %s6228_s24 }
  0xa9   :  { %215 = vmatpush1.bf16.msra.mxu0 %v7196_v4  ;;  %v7211_v15 = vld [vmem:[#allocation8 + $0x44] ss:$16 sps:$4 sm:$0xff]   ;;  %v7209_v16 = vld [vmem:[#allocation8 + $0x40] ss:$16 sps:$4 sm:$0xff]   ;;  %s8151_s26 = scalar_lea.vmem %s6229_s24, 896  ;;  %p8156_p3 = scmp.lt.s32.totalorder %s6229_s24, %s6229_s24 }
  0xaa   :  { %216 = vmatprep.subr.bf16.mxu0 %v7197_v5  ;;  %v7214_v17 = vld [vmem:[#allocation8 + $0x64] ss:$16 sps:$4 sm:$0xff]   ;;  %v7212_v18 = vld [vmem:[#allocation8 + $0x60] ss:$16 sps:$4 sm:$0xff]   ;;  %p8152_p2 = scmp.ne.s32.totalorder %s6229_s24, %s8151_s26  ;;  %p8157_p4 = scmp.lt.s32.totalorder %s8151_s26, %s8151_s26 }
  0xab   :  { %v7217_v19 = vld [vmem:[#allocation8 + $0x84] ss:$16 sps:$4 sm:$0xff]   ;;  %v7215_v20 = vld [vmem:[#allocation8 + $0x80] ss:$16 sps:$4 sm:$0xff]  }
  0xac   :  { %v7220_v21 = vld [vmem:[#allocation8 + $0xa4] ss:$16 sps:$4 sm:$0xff]   ;;  %v7218_v22 = vld [vmem:[#allocation8 + $0xa0] ss:$16 sps:$4 sm:$0xff]   ;;  %p8158_p5 = por %p8157_p4, %p8156_p3 }
  0xad   :  { %217 = vmatpush1.bf16.msra.mxu0 %v7199_v6  ;;  %v7223_v23 = vld [vmem:[#allocation8 + $0xc4] ss:$16 sps:$4 sm:$0xff]   ;;  %v7221_v24 = vld [vmem:[#allocation8 + $0xc0] ss:$16 sps:$4 sm:$0xff]  }
  0xae   :  { %218 = vmatprep.subr.bf16.mxu0 %v7200_v7  ;;  %v7226_v25 = vld [vmem:[#allocation8 + $0xe4] ss:$16 sps:$4 sm:$0xff]   ;;  %v7224_v26 = vld [vmem:[#allocation8 + $0xe0] ss:$16 sps:$4 sm:$0xff]   ;;  %p8159_p6 = pnand %p8158_p5, %p8152_p2 }
  0xaf   :  { %v7229_v27 = vld [vmem:[#allocation8 + $0x104] ss:$16 sps:$4 sm:$0xff]   ;;  %v7227_v28 = vld [vmem:[#allocation8 + $0x100] ss:$16 sps:$4 sm:$0xff]  }
  0xb0   :  { %v7232_v29 = vld [vmem:[#allocation8 + $0x124] ss:$16 sps:$4 sm:$0xff]   ;;  %v7230_v30 = vld [vmem:[#allocation8 + $0x120] ss:$16 sps:$4 sm:$0xff]  }
  0xb1   :  { %219 = vmatpush1.bf16.msra.mxu0 %v7202_v8  ;;  %v7235_v31 = vld [vmem:[#allocation8 + $0x144] ss:$16 sps:$4 sm:$0xff]   ;;  %v7233_v32 = vld [vmem:[#allocation8 + $0x140] ss:$16 sps:$4 sm:$0xff]  }
  0xb2   :  { %667 = vmatprep.subr.bf16.mxu0 %v7205_v10  ;;  %v7238_v33 = vld [vmem:[#allocation8 + $0x164] ss:$16 sps:$4 sm:$0xff]   ;;  %v7236_v34 = vld [vmem:[#allocation8 + $0x160] ss:$16 sps:$4 sm:$0xff]  }
  0xb3   :  { %v7241_v35 = vld [vmem:[#allocation8 + $0x184] ss:$16 sps:$4 sm:$0xff]   ;;  %v7239_v36 = vld [vmem:[#allocation8 + $0x180] ss:$16 sps:$4 sm:$0xff]  }
  0xb4   :  { %6249 = vmatmul.mubr.msk.bf16.vlgmr.msra.gmra.mrb[0].mxu0 %vm208_vm0, %v147_v11  ;;  %v7244_v37 = vld [vmem:[#allocation8 + $0x1a4] ss:$16 sps:$4 sm:$0xff]   ;;  %v7242_v38 = vld [vmem:[#allocation8 + $0x1a0] ss:$16 sps:$4 sm:$0xff]  }
  0xb5   :  { %668 = vmatpush1.bf16.msra.mxu0 %v7203_v12  ;;  %v7247_v39 = vld [vmem:[#allocation8 + $0x1c4] ss:$16 sps:$4 sm:$0xff]   ;;  %v7245_v40 = vld [vmem:[#allocation8 + $0x1c0] ss:$16 sps:$4 sm:$0xff]  }
  0xb6   :  { %669 = vmatprep.subr.bf16.mxu0 %v7208_v13  ;;  %v7250_v41 = vld [vmem:[#allocation8 + $0x1e4] ss:$16 sps:$4 sm:$0xff]   ;;  %v7248_v42 = vld [vmem:[#allocation8 + $0x1e0] ss:$16 sps:$4 sm:$0xff]  }
  0xb7   :  { %v769_v45 = vld [vmem:[#allocation11 + $0x20] sm:$0xff] }
  0xb8   :  { %v6315_v46 = vcombine.high %v765_v44, %v769_v45  ;;  %v6314_v47 = vcombine.low %v765_v44, %v769_v45  ;;  %v773_v48 = vld [vmem:[#allocation11 + $0x40] sm:$0xff] }
  0xb9   :  { %670 = vmatpush1.bf16.msra.mxu0 %v7206_v14  ;;  %v777_v49 = vld [vmem:[#allocation11 + $0x60] sm:$0xff] }
  0xba   :  { %671 = vmatprep.subr.bf16.mxu0 %v7211_v15  ;;  %v6323_v50 = vcombine.high %v773_v48, %v777_v49  ;;  %2343 = vmatprep.subr.bf16.mxu1 %v6315_v46  ;;  %v6322_v51 = vcombine.low %v773_v48, %v777_v49  ;;  %v781_v52 = vld [vmem:[#allocation11 + $0x80] sm:$0xff] }
  0xbb   :  { %2344 = vmatpush1.bf16.msra.mxu1 %v6314_v47  ;;  %v785_v53 = vld [vmem:[#allocation11 + $0xa0] sm:$0xff] }
  0xbc   :  { %2345 = vmatprep.subr.bf16.mxu1 %v6323_v50  ;;  %v6331_v54 = vcombine.high %v781_v52, %v785_v53  ;;  %v6330_v55 = vcombine.low %v781_v52, %v785_v53  ;;  %v789_v56 = vld [vmem:[#allocation11 + $0xc0] sm:$0xff] }
  0xbd   :  { %672 = vmatpush1.bf16.msra.mxu0 %v7209_v16  ;;  %v793_v57 = vld [vmem:[#allocation11 + $0xe0] sm:$0xff] }
  0xbe   :  { %673 = vmatprep.subr.bf16.mxu0 %v7214_v17  ;;  %v6339_v58 = vcombine.high %v789_v56, %v793_v57  ;;  %v6338_v59 = vcombine.low %v789_v56, %v793_v57  ;;  %v797_v60 = vld [vmem:[#allocation11 + $0x100] sm:$0xff] }
  0xbf   :  { %2346 = vmatpush1.bf16.msra.mxu1 %v6322_v51  ;;  %v801_v61 = vld [vmem:[#allocation11 + $0x120] sm:$0xff] }
  0xc0   :  { %2347 = vmatprep.subr.bf16.mxu1 %v6331_v54  ;;  %v6347_v62 = vcombine.high %v797_v60, %v801_v61  ;;  %v6346_v63 = vcombine.low %v797_v60, %v801_v61  ;;  %v805_v0 = vld [vmem:[#allocation11 + $0x140] sm:$0xff]  ;;  %v7256_v54 = vld [vmem:[#allocation8 + $0x2c] ss:$16 sps:$4 sm:$0xff]  }
  0xc1   :  { %674 = vmatpush1.bf16.msra.mxu0 %v7212_v18  ;;  %v809_v1 = vld [vmem:[#allocation11 + $0x160] sm:$0xff]  ;;  %v7262_v60 = vld [vmem:[#allocation8 + $0x6c] ss:$16 sps:$4 sm:$0xff]  }
  0xc2   :  { %675 = vmatprep.subr.bf16.mxu0 %v7217_v19  ;;  %v6355_v2 = vcombine.high %v805_v0, %v809_v1  ;;  %v6354_v3 = vcombine.low %v805_v0, %v809_v1  ;;  %v813_v4 = vld [vmem:[#allocation11 + $0x180] sm:$0xff]  ;;  %v7268_v0 = vld [vmem:[#allocation8 + $0xac] ss:$16 sps:$4 sm:$0xff]  }
  0xc3   :  { %2348 = vmatpush1.bf16.msra.mxu1 %v6330_v55  ;;  %v817_v5 = vld [vmem:[#allocation11 + $0x1a0] sm:$0xff] }
  0xc4   :  { %2349 = vmatprep.subr.bf16.mxu1 %v6339_v58  ;;  %v6363_v6 = vcombine.high %v813_v4, %v817_v5  ;;  %v6362_v7 = vcombine.low %v813_v4, %v817_v5  ;;  %v821_v8 = vld [vmem:[#allocation11 + $0x1c0] sm:$0xff]  ;;  %v7259_v58 = vld [vmem:[#allocation8 + $0x4c] ss:$16 sps:$4 sm:$0xff]  }
  0xc5   :  { %676 = vmatpush1.bf16.msra.mxu0 %v7215_v20  ;;  %v825_v9 = vld [vmem:[#allocation11 + $0x1e0] sm:$0xff]  ;;  %v7274_v4 = vld [vmem:[#allocation8 + $0xec] ss:$16 sps:$4 sm:$0xff]  }
  0xc6   :  { %677 = vmatprep.subr.bf16.mxu0 %v7220_v21  ;;  %v6371_v10 = vcombine.high %v821_v8, %v825_v9  ;;  %v6370_v11 = vcombine.low %v821_v8, %v825_v9  ;;  %v829_v12 = vld [vmem:[#allocation11 + $0x200] sm:$0xff]  ;;  %v7280_v8 = vld [vmem:[#allocation8 + $0x12c] ss:$16 sps:$4 sm:$0xff]  }
  0xc7   :  { %2350 = vmatpush1.bf16.msra.mxu1 %v6338_v59  ;;  %v833_v13 = vld [vmem:[#allocation11 + $0x220] sm:$0xff] }
  0xc8   :  { %2351 = vmatprep.subr.bf16.mxu1 %v6347_v62  ;;  %v6379_v14 = vcombine.high %v829_v12, %v833_v13  ;;  %v6378_v15 = vcombine.low %v829_v12, %v833_v13  ;;  %v837_v16 = vld [vmem:[#allocation11 + $0x240] sm:$0xff]  ;;  %v7265_v62 = vld [vmem:[#allocation8 + $0x8c] ss:$16 sps:$4 sm:$0xff]  }
  0xc9   :  { %678 = vmatpush1.bf16.msra.mxu0 %v7218_v22  ;;  %v841_v17 = vld [vmem:[#allocation11 + $0x260] sm:$0xff]  ;;  %v7286_v12 = vld [vmem:[#allocation8 + $0x16c] ss:$16 sps:$4 sm:$0xff]  }
  0xca   :  { %679 = vmatprep.subr.bf16.mxu0 %v7223_v23  ;;  %v6387_v18 = vcombine.high %v837_v16, %v841_v17  ;;  %v6386_v19 = vcombine.low %v837_v16, %v841_v17  ;;  %v845_v20 = vld [vmem:[#allocation11 + $0x280] sm:$0xff]  ;;  %v158_v23 = vlaneseq  ;;  %v7292_v16 = vld [vmem:[#allocation8 + $0x1ac] ss:$16 sps:$4 sm:$0xff]  }
  0xcb   :  { %2352 = vmatpush1.bf16.msra.mxu1 %v6346_v63  ;;  %v849_v21 = vld [vmem:[#allocation11 + $0x2a0] sm:$0xff] }
  0xcc   :  { %2353 = vmatprep.subr.bf16.mxu1 %v6355_v2  ;;  %v6395_v22 = vcombine.high %v845_v20, %v849_v21  ;;  %v7251_v52 = vld [vmem:[#allocation8 + $0x8] ss:$16 sps:$4 sm:$0xff]   ;;  %v7271_v2 = vld [vmem:[#allocation8 + $0xcc] ss:$16 sps:$4 sm:$0xff]  }
  0xcd   :  { %680 = vmatpush1.bf16.msra.mxu0 %v7221_v24  ;;  %v6394_v24 = vcombine.low %v845_v20, %v849_v21  ;;  %v7254_v57 = vld [vmem:[#allocation8 + $0x28] ss:$16 sps:$4 sm:$0xff]   ;;  %v7298_v20 = vld [vmem:[#allocation8 + $0x1ec] ss:$16 sps:$4 sm:$0xff]  }
  0xce   :  { %681 = vmatprep.subr.bf16.mxu0 %v7226_v25  ;;  %v853_v25 = vld [vmem:[#allocation11 + $0x2c0] sm:$0xff]  ;;  %v766_v21 = vld [vmem:[#allocation11 + $0x8] sm:$0xff] }
  0xcf   :  { %2354 = vmatpush1.bf16.msra.mxu1 %v6354_v3  ;;  %v7257_v59 = vld [vmem:[#allocation8 + $0x48] ss:$16 sps:$4 sm:$0xff]  }
  0xd0   :  { %2355 = vmatprep.subr.bf16.mxu1 %v6363_v6  ;;  %v7260_v61 = vld [vmem:[#allocation8 + $0x68] ss:$16 sps:$4 sm:$0xff]   ;;  %v7277_v6 = vld [vmem:[#allocation8 + $0x10c] ss:$16 sps:$4 sm:$0xff]  }
  0xd1   :  { %682 = vmatpush1.bf16.msra.mxu0 %v7224_v26  ;;  %v857_v26 = vld [vmem:[#allocation11 + $0x2e0] sm:$0xff] }
  0xd2   :  { %683 = vmatprep.subr.bf16.mxu0 %v7229_v27  ;;  %v6403_v27 = vcombine.high %v853_v25, %v857_v26  ;;  %v7263_v63 = vld [vmem:[#allocation8 + $0x88] ss:$16 sps:$4 sm:$0xff]  }
  0xd3   :  { %2356 = vmatpush1.bf16.msra.mxu1 %v6362_v7  ;;  %v7266_v1 = vld [vmem:[#allocation8 + $0xa8] ss:$16 sps:$4 sm:$0xff]  }
  0xd4   :  { %2357 = vmatprep.subr.bf16.mxu1 %v6371_v10  ;;  %v7269_v3 = vld [vmem:[#allocation8 + $0xc8] ss:$16 sps:$4 sm:$0xff]   ;;  %v7283_v10 = vld [vmem:[#allocation8 + $0x14c] ss:$16 sps:$4 sm:$0xff]  }
  0xd5   :  { %684 = vmatpush1.bf16.msra.mxu0 %v7227_v28  ;;  %v8362_v28 = vshrl.u32 %v158_v23, 7  ;;  %v7272_v5 = vld [vmem:[#allocation8 + $0xe8] ss:$16 sps:$4 sm:$0xff]  }
  0xd6   :  { %685 = vmatprep.subr.bf16.mxu0 %v7232_v29  ;;  %v6402_v29 = vcombine.low %v853_v25, %v857_v26  ;;  %v7275_v7 = vld [vmem:[#allocation8 + $0x108] ss:$16 sps:$4 sm:$0xff]   ;;  %v774_v25 = vld [vmem:[#allocation11 + $0x48] sm:$0xff] }
  0xd7   :  { %2358 = vmatpush1.bf16.msra.mxu1 %v6370_v11  ;;  %v7278_v9 = vld [vmem:[#allocation8 + $0x128] ss:$16 sps:$4 sm:$0xff]   ;;  %v778_v26 = vld [vmem:[#allocation11 + $0x68] sm:$0xff] }
  0xd8   :  { %2359 = vmatprep.subr.bf16.mxu1 %v6379_v14  ;;  %v7281_v11 = vld [vmem:[#allocation8 + $0x148] ss:$16 sps:$4 sm:$0xff]   ;;  %v7289_v14 = vld [vmem:[#allocation8 + $0x18c] ss:$16 sps:$4 sm:$0xff]  }
  0xd9   :  { %686 = vmatpush1.bf16.msra.mxu0 %v7230_v30  ;;  %v861_v30 = vld [vmem:[#allocation11 + $0x300] sm:$0xff] }
  0xda   :  { %687 = vmatprep.subr.bf16.mxu0 %v7235_v31  ;;  %v865_v31 = vld [vmem:[#allocation11 + $0x320] sm:$0xff] }
  0xdb   :  { %2360 = vmatpush1.bf16.msra.mxu1 %v6378_v15  ;;  %v7284_v13 = vld [vmem:[#allocation8 + $0x168] ss:$16 sps:$4 sm:$0xff]  }
  0xdc   :  { %2361 = vmatprep.subr.bf16.mxu1 %v6387_v18  ;;  %v7287_v15 = vld [vmem:[#allocation8 + $0x188] ss:$16 sps:$4 sm:$0xff]   ;;  %v7295_v18 = vld [vmem:[#allocation8 + $0x1cc] ss:$16 sps:$4 sm:$0xff]  }
  0xdd   :  { %688 = vmatpush1.bf16.msra.mxu0 %v7233_v32  ;;  %v156_v32 = vld [vmem:[#allocation7] sm:$0x3]  ;;  %v7290_v17 = vld [vmem:[#allocation8 + $0x1a8] ss:$16 sps:$4 sm:$0xff]  }
  0xde   :  { %689 = vmatprep.subr.bf16.mxu0 %v7238_v33  ;;  %v6411_v33 = vcombine.high %v861_v30, %v865_v31  ;;  %v7296_v23 = vld [vmem:[#allocation8 + $0x1e8] ss:$16 sps:$4 sm:$0xff]  }
  0xdf   :  { %2362 = vmatpush1.bf16.msra.mxu1 %v6386_v19  ;;  %v7293_v19 = vld [vmem:[#allocation8 + $0x1c8] ss:$16 sps:$4 sm:$0xff]  }
  0xe0   :  { %2363 = vmatprep.subr.bf16.mxu1 %v6395_v22  ;;  %v770_v22 = vld [vmem:[#allocation11 + $0x28] sm:$0xff] }
  0xe1   :  { %690 = vmatpush1.bf16.msra.mxu0 %v7236_v34  ;;  %v8365_v34 = vsub.s32 0, %v8362_v28 }
  0xe2   :  { %691 = vmatprep.subr.bf16.mxu0 %v7241_v35  ;;  %v8368_v35 = vsub.s32 1, %v8362_v28 }
  0xe3   :  { %2364 = vmatpush1.bf16.msra.mxu1 %v6394_v24  ;;  %v6317_v24 = vcombine.high %v766_v21, %v770_v22 }
  0xe4   :  { %2365 = vmatprep.subr.bf16.mxu1 %v6403_v27  ;;  %v6316_v27 = vcombine.low %v766_v21, %v770_v22 }
  0xe5   :  { %692 = vmatpush1.bf16.msra.mxu0 %v7239_v36  ;;  %v6410_v36 = vcombine.low %v861_v30, %v865_v31  ;;  %v782_v30 = vld [vmem:[#allocation11 + $0x88] sm:$0xff] }
  0xe6   :  { %693 = vmatprep.subr.bf16.mxu0 %v7244_v37  ;;  %v869_v37 = vld [vmem:[#allocation11 + $0x340] sm:$0xff]  ;;  %v786_v31 = vld [vmem:[#allocation11 + $0xa8] sm:$0xff] }
  0xe7   :  { %2366 = vmatpush1.bf16.msra.mxu1 %v6402_v29  ;;  %v6325_v29 = vcombine.high %v774_v25, %v778_v26 }
  0xe8   :  { %2367 = vmatprep.subr.bf16.mxu1 %v6411_v33  ;;  %v6333_v33 = vcombine.high %v782_v30, %v786_v31 }
  0xe9   :  { %694 = vmatpush1.bf16.msra.mxu0 %v7242_v38  ;;  %v873_v38 = vld [vmem:[#allocation11 + $0x360] sm:$0xff] }
  0xea   :  { %695 = vmatprep.subr.bf16.mxu0 %v7247_v39  ;;  %v6419_v39 = vcombine.high %v869_v37, %v873_v38 }
  0xeb   :  { %2368 = vmatpush1.bf16.msra.mxu1 %v6410_v36  ;;  %v790_v36 = vld [vmem:[#allocation11 + $0xc8] sm:$0xff] }
  0xec   :  { %2369 = vmatprep.subr.bf16.mxu1 %v6419_v39 }
  0xed   :  { %696 = vmatpush1.bf16.msra.mxu0 %v7245_v40  ;;  %v161_v40 = vrot.slane %v156_v32, %v8365_v34 }
  0xee   :  { %697 = vmatprep.subr.bf16.mxu0 %v7250_v41  ;;  %v165_v41 = vrot.slane %v156_v32, %v8368_v35  ;;  %v6324_v32 = vcombine.low %v774_v25, %v778_v26 }
  0xf1   :  { %698 = vmatpush1.bf16.msra.mxu0 %v7248_v42  ;;  %v6418_v42 = vcombine.low %v869_v37, %v873_v38  ;;  %v794_v37 = vld [vmem:[#allocation11 + $0xe8] sm:$0xff]  ;;  %v6332_v38 = vcombine.low %v782_v30, %v786_v31 }
  0xf2   :  { %708 = vmatprep.subr.bf16.mxu0 %v7253_v43  ;;  %v6341_v39 = vcombine.high %v790_v36, %v794_v37 }
  0xf3   :  { %2370 = vmatpush1.bf16.msra.mxu1 %v6418_v42  ;;  %v6340_v42 = vcombine.low %v790_v36, %v794_v37 }
 0x187   :  { %v246_v43 = vpop.f32.mrb[0].mxu0 }
 0x188   :  { %v247_v44 = vadd.f32 %v246_v43, %v161_v40  ;;  %v248_v45 = vpop.f32.mrb[1].mxu0  ;;  %v798_v40 = vld [vmem:[#allocation11 + $0x108] sm:$0xff] }
 0x189   :  { %v249_v46 = vadd.f32 %v248_v45, %v165_v41  ;;  %v250_v47 = vpop.f32.mrb[2].mxu0  ;;  %v802_v41 = vld [vmem:[#allocation11 + $0x128] sm:$0xff] }
 0x18a   :  { %vm253_vm1 = vcmp.gt.f32.partialorder %v247_v44, 0.0  ;;  %v255_v48 = vmul.f32 0.2, %v247_v44  ;;  %v251_v49 = vpop.f32.mrb[3].mxu0  ;;  %v6349_v43 = vcombine.high %v798_v40, %v802_v41  ;;  %v810_v45 = vld [vmem:[#allocation11 + $0x168] sm:$0xff] }
 0x18b   :  { %vm254_vm2 = vcmp.gt.f32.partialorder %v249_v46, 0.0  ;;  %v256_v50 = vmul.f32 0.2, %v249_v46  ;;  %v818_v49 = vld [vmem:[#allocation11 + $0x1a8] sm:$0xff] }
 0x18c   :  { %v257_v51 = vsel %vm253_vm1, %v247_v44, %v255_v48  ;;  %v806_v44 = vld [vmem:[#allocation11 + $0x148] sm:$0xff] }
 0x18d   :  { %v258_v53 = vsel %vm254_vm2, %v249_v46, %v256_v50  ;;  %v8372_v56 = vpack.c.bf16 %v257_v51, %v257_v51  ;;  %v6348_v46 = vcombine.low %v798_v40, %v802_v41  ;;  %v6357_v47 = vcombine.high %v806_v44, %v810_v45  ;;  %v814_v48 = vld [vmem:[#allocation11 + $0x188] sm:$0xff] }
 0x18e   :  { %v260_v55 = vpack.c.bf16 %v258_v53, %v258_v53  ;;  %v6356_v50 = vcombine.low %v806_v44, %v810_v45  ;;  %v6365_v51 = vcombine.high %v814_v48, %v818_v49  ;;  %v881_v53 = vld [vmem:[#allocation11 + $0x3a0] sm:$0xff]  ;;  %v8392_v44 = vld [vmem:[#allocation10] sm:$0xf] }
 0x18f   :  { %v330_v45 = vrot.slane %v8392_v44, %v8365_v34 }
 0x190   :  { %699 = vmatprep.mubr.bf16.mxu0 %v260_v55 }
 0x191   :  { %700 = vmatmul.mubr.bf16.vlgmr.msra.gmra.mrb[4].mxu0 %v8372_v56 }
 0x192   :  { %709 = vmatpush1.bf16.msra.mxu0 %v7251_v52  ;;  %740 = vmatprep.mubr.bf16.mxu0 %v260_v55  ;;  %v877_v52 = vld [vmem:[#allocation11 + $0x380] sm:$0xff]  ;;  %v826_v55 = vld [vmem:[#allocation11 + $0x1e8] sm:$0xff] }
 0x193   :  { %710 = vmatprep.subr.bf16.mxu0 %v7256_v54  ;;  %v822_v54 = vld [vmem:[#allocation11 + $0x1c8] sm:$0xff] }
 0x196   :  { %711 = vmatpush1.bf16.msra.mxu0 %v7254_v57  ;;  %v6426_v57 = vcombine.low %v877_v52, %v881_v53 }
 0x197   :  { %712 = vmatprep.subr.bf16.mxu0 %v7259_v58  ;;  %v6364_v58 = vcombine.low %v814_v48, %v818_v49 }
 0x19a   :  { %713 = vmatpush1.bf16.msra.mxu0 %v7257_v59  ;;  %v6373_v59 = vcombine.high %v822_v54, %v826_v55 }
 0x19b   :  { %714 = vmatprep.subr.bf16.mxu0 %v7262_v60  ;;  %v885_v60 = vld [vmem:[#allocation11 + $0x3c0] sm:$0xff] }
 0x19e   :  { %715 = vmatpush1.bf16.msra.mxu0 %v7260_v61  ;;  %v889_v61 = vld [vmem:[#allocation11 + $0x3e0] sm:$0xff] }
 0x19f   :  { %716 = vmatprep.subr.bf16.mxu0 %v7265_v62  ;;  %v830_v62 = vld [vmem:[#allocation11 + $0x208] sm:$0xff] }
 0x1a2   :  { %717 = vmatpush1.bf16.msra.mxu0 %v7263_v63  ;;  %v834_v63 = vld [vmem:[#allocation11 + $0x228] sm:$0xff] }
 0x1a3   :  { %718 = vmatprep.subr.bf16.mxu0 %v7268_v0  ;;  %v6435_v0 = vcombine.high %v885_v60, %v889_v61 }
 0x1a6   :  { %719 = vmatpush1.bf16.msra.mxu0 %v7266_v1  ;;  %v6434_v1 = vcombine.low %v885_v60, %v889_v61 }
 0x1a7   :  { %720 = vmatprep.subr.bf16.mxu0 %v7271_v2  ;;  %v6372_v2 = vcombine.low %v822_v54, %v826_v55  ;;  %v901_v55 = vld [vmem:[#allocation11 + $0x440] sm:$0xff] }
 0x1aa   :  { %721 = vmatpush1.bf16.msra.mxu0 %v7269_v3  ;;  %v6381_v3 = vcombine.high %v830_v62, %v834_v63 }
 0x1ab   :  { %722 = vmatprep.subr.bf16.mxu0 %v7274_v4  ;;  %v8376_v4 = vld [vmem:[#allocation11 + $0x400] sm:$0xff] }
 0x1ae   :  { %723 = vmatpush1.bf16.msra.mxu0 %v7272_v5  ;;  %v8378_v5 = vld [vmem:[#allocation11 + $0x420] sm:$0xff] }
 0x1af   :  { %724 = vmatprep.subr.bf16.mxu0 %v7277_v6  ;;  %v8380_v6 = vld [vmem:[#allocation11 + $0x408] sm:$0xff] }
 0x1b2   :  { %725 = vmatpush1.bf16.msra.mxu0 %v7275_v7  ;;  %v838_v7 = vld [vmem:[#allocation11 + $0x248] sm:$0xff] }
 0x1b3   :  { %726 = vmatprep.subr.bf16.mxu0 %v7280_v8  ;;  %v842_v8 = vld [vmem:[#allocation11 + $0x268] sm:$0xff] }
 0x1b6   :  { %727 = vmatpush1.bf16.msra.mxu0 %v7278_v9  ;;  %v6443_v9 = vcombine.high %v8376_v4, %v8378_v5 }
 0x1b7   :  { %728 = vmatprep.subr.bf16.mxu0 %v7283_v10  ;;  %v8384_v10 = vld [vmem:[#allocation11 + $0x428] sm:$0xff] }
 0x1ba   :  { %729 = vmatpush1.bf16.msra.mxu0 %v7281_v11  ;;  %v6442_v11 = vcombine.low %v8376_v4, %v8378_v5 }
 0x1bb   :  { %730 = vmatprep.subr.bf16.mxu0 %v7286_v12  ;;  %v6444_v12 = vcombine.low %v8380_v6, %v8384_v10 }
 0x1be   :  { %731 = vmatpush1.bf16.msra.mxu0 %v7284_v13  ;;  %v6380_v13 = vcombine.low %v830_v62, %v834_v63 }
 0x1bf   :  { %732 = vmatprep.subr.bf16.mxu0 %v7289_v14  ;;  %v6389_v14 = vcombine.high %v838_v7, %v842_v8 }
 0x1c2   :  { %733 = vmatpush1.bf16.msra.mxu0 %v7287_v15  ;;  %v846_v15 = vld [vmem:[#allocation11 + $0x288] sm:$0xff] }
 0x1c3   :  { %734 = vmatprep.subr.bf16.mxu0 %v7292_v16  ;;  %v850_v16 = vld [vmem:[#allocation11 + $0x2a8] sm:$0xff] }
 0x1c4   :  { %v6396_v21 = vcombine.low %v846_v15, %v850_v16 }
 0x1c6   :  { %735 = vmatpush1.bf16.msra.mxu0 %v7290_v17  ;;  %v6388_v17 = vcombine.low %v838_v7, %v842_v8  ;;  %v914_v7 = vld [vmem:[#allocation11 + $0x4a8] sm:$0xff] }
 0x1c7   :  { %736 = vmatprep.subr.bf16.mxu0 %v7295_v18  ;;  %v6397_v18 = vcombine.high %v846_v15, %v850_v16  ;;  %v917_v15 = vld [vmem:[#allocation11 + $0x4c0] sm:$0xff] }
 0x1c8   :  { %v921_v16 = vld [vmem:[#allocation11 + $0x4e0] sm:$0xff] }
 0x1c9   :  { %v6467_v4 = vcombine.high %v917_v15, %v921_v16 }
 0x1ca   :  { %737 = vmatpush1.bf16.msra.mxu0 %v7293_v19  ;;  %v854_v19 = vld [vmem:[#allocation11 + $0x2c8] sm:$0xff] }
 0x1cb   :  { %738 = vmatprep.subr.bf16.mxu0 %v7298_v20  ;;  %v858_v20 = vld [vmem:[#allocation11 + $0x2e8] sm:$0xff] }
 0x1cc   :  { %v6405_v22 = vcombine.high %v854_v19, %v858_v20  ;;  %v6404_v25 = vcombine.low %v854_v19, %v858_v20 }
 0x1ce   :  { %739 = vmatpush1.bf16.msra.mxu0 %v7296_v23  ;;  %v862_v23 = vld [vmem:[#allocation11 + $0x308] sm:$0xff] }
 0x1cf   :  { %2425 = vmatprep.subr.bf16.mxu0 %v6317_v24  ;;  %v866_v24 = vld [vmem:[#allocation11 + $0x328] sm:$0xff] }
 0x1d0   :  { %v6413_v26 = vcombine.high %v862_v23, %v866_v24  ;;  %v6412_v30 = vcombine.low %v862_v23, %v866_v24 }
 0x1d1   :  { %741 = vmatmul.mubr.bf16.vlgmr.msra.gmra.mrb[8].mxu0 %v8372_v56  ;;  %v6427_v56 = vcombine.high %v877_v52, %v881_v53 }
 0x1d2   :  { %2426 = vmatpush1.bf16.msra.mxu0 %v6316_v27  ;;  %v870_v27 = vld [vmem:[#allocation11 + $0x348] sm:$0xff] }
 0x1d3   :  { %2427 = vmatprep.subr.bf16.mxu0 %v6325_v29  ;;  %2371 = vmatprep.subr.bf16.mxu1 %v6427_v56  ;;  %v874_v29 = vld [vmem:[#allocation11 + $0x368] sm:$0xff] }
 0x1d4   :  { %2372 = vmatpush1.bf16.msra.mxu1 %v6426_v57  ;;  %v6421_v31 = vcombine.high %v870_v27, %v874_v29  ;;  %v6420_v36 = vcombine.low %v870_v27, %v874_v29  ;;  %v905_v57 = vld [vmem:[#allocation11 + $0x460] sm:$0xff]  ;;  %v934_v27 = vld [vmem:[#allocation11 + $0x548] sm:$0xff] }
 0x1d5   :  { %2373 = vmatprep.subr.bf16.mxu1 %v6435_v0  ;;  %v6451_v63 = vcombine.high %v901_v55, %v905_v57  ;;  %v6450_v8 = vcombine.low %v901_v55, %v905_v57  ;;  %v938_v29 = vld [vmem:[#allocation11 + $0x568] sm:$0xff] }
 0x1d6   :  { %2428 = vmatpush1.bf16.msra.mxu0 %v6324_v32  ;;  %v878_v32 = vld [vmem:[#allocation11 + $0x388] sm:$0xff] }
 0x1d7   :  { %2429 = vmatprep.subr.bf16.mxu0 %v6333_v33  ;;  %v882_v33 = vld [vmem:[#allocation11 + $0x3a8] sm:$0xff] }
 0x1d8   :  { %2374 = vmatpush1.bf16.msra.mxu1 %v6434_v1  ;;  %v6429_v37 = vcombine.high %v878_v32, %v882_v33  ;;  %v6428_v40 = vcombine.low %v878_v32, %v882_v33  ;;  %v909_v1 = vld [vmem:[#allocation11 + $0x480] sm:$0xff]  ;;  %v6485_v33 = vcombine.high %v934_v27, %v938_v29  ;;  %v958_v55 = vld [vmem:[#allocation11 + $0x608] sm:$0xff] }
 0x1d9   :  { %2384 = vmatprep.subr.bf16.mxu1 %v6443_v9 }
 0x1da   :  { %2430 = vmatpush1.bf16.msra.mxu0 %v6332_v38  ;;  %v886_v38 = vld [vmem:[#allocation11 + $0x3c8] sm:$0xff] }
 0x1db   :  { %2431 = vmatprep.subr.bf16.mxu0 %v6341_v39  ;;  %v890_v39 = vld [vmem:[#allocation11 + $0x3e8] sm:$0xff] }
 0x1dc   :  { %v6437_v41 = vcombine.high %v886_v38, %v890_v39 }
 0x1de   :  { %2432 = vmatpush1.bf16.msra.mxu0 %v6340_v42  ;;  %v6436_v42 = vcombine.low %v886_v38, %v890_v39  ;;  %v942_v38 = vld [vmem:[#allocation11 + $0x588] sm:$0xff] }
 0x1df   :  { %2433 = vmatprep.subr.bf16.mxu0 %v6349_v43  ;;  %v6445_v43 = vcombine.high %v8380_v6, %v8384_v10  ;;  %v925_v6 = vld [vmem:[#allocation11 + $0x500] sm:$0xff]  ;;  %v946_v39 = vld [vmem:[#allocation11 + $0x5a8] sm:$0xff] }
 0x1e0   :  { %v929_v10 = vld [vmem:[#allocation11 + $0x520] sm:$0xff] }
 0x1e1   :  { %v6475_v23 = vcombine.high %v925_v6, %v929_v10 }
 0x1e2   :  { %2434 = vmatpush1.bf16.msra.mxu0 %v6348_v46  ;;  %v334_v46 = vrot.slane %v8392_v44, %v8368_v35 }
 0x1e3   :  { %2435 = vmatprep.subr.bf16.mxu0 %v6357_v47 }
 0x1e6   :  { %2436 = vmatpush1.bf16.msra.mxu0 %v6356_v50 }
 0x1e7   :  { %2437 = vmatprep.subr.bf16.mxu0 %v6365_v51 }
 0x1ea   :  { %2438 = vmatpush1.bf16.msra.mxu0 %v6364_v58  ;;  %v902_v58 = vld [vmem:[#allocation11 + $0x448] sm:$0xff] }
 0x1eb   :  { %2439 = vmatprep.subr.bf16.mxu0 %v6373_v59  ;;  %v906_v59 = vld [vmem:[#allocation11 + $0x468] sm:$0xff] }
 0x1ec   :  { %v6453_v0 = vcombine.high %v902_v58, %v906_v59  ;;  %v6452_v9 = vcombine.low %v902_v58, %v906_v59 }
 0x1ee   :  { %2440 = vmatpush1.bf16.msra.mxu0 %v6372_v2  ;;  %v913_v2 = vld [vmem:[#allocation11 + $0x4a0] sm:$0xff] }
 0x1ef   :  { %2441 = vmatprep.subr.bf16.mxu0 %v6381_v3  ;;  %v910_v3 = vld [vmem:[#allocation11 + $0x488] sm:$0xff]  ;;  %v6458_v19 = vcombine.low %v909_v1, %v913_v2 }
 0x1f0   :  { %v6460_v20 = vcombine.low %v910_v3, %v914_v7 }
 0x1f2   :  { %2442 = vmatpush1.bf16.msra.mxu0 %v6380_v13  ;;  %v6459_v13 = vcombine.high %v909_v1, %v913_v2  ;;  %v966_v1 = vld [vmem:[#allocation11 + $0x648] sm:$0xff] }
 0x1f3   :  { %2443 = vmatprep.subr.bf16.mxu0 %v6389_v14  ;;  %v6461_v14 = vcombine.high %v910_v3, %v914_v7  ;;  %v970_v2 = vld [vmem:[#allocation11 + $0x668] sm:$0xff] }
 0x1f6   :  { %2444 = vmatpush1.bf16.msra.mxu0 %v6388_v17  ;;  %v918_v17 = vld [vmem:[#allocation11 + $0x4c8] sm:$0xff] }
 0x1f7   :  { %2445 = vmatprep.subr.bf16.mxu0 %v6397_v18  ;;  %v922_v18 = vld [vmem:[#allocation11 + $0x4e8] sm:$0xff] }
 0x1f8   :  { %v6469_v5 = vcombine.high %v918_v17, %v922_v18 }
 0x1fa   :  { %2446 = vmatpush1.bf16.msra.mxu0 %v6396_v21  ;;  %v6466_v21 = vcombine.low %v917_v15, %v921_v16  ;;  %v974_v15 = vld [vmem:[#allocation11 + $0x688] sm:$0xff] }
 0x1fb   :  { %2447 = vmatprep.subr.bf16.mxu0 %v6405_v22  ;;  %v6468_v22 = vcombine.low %v918_v17, %v922_v18  ;;  %v978_v16 = vld [vmem:[#allocation11 + $0x6a8] sm:$0xff]  ;;  %v6516_v18 = vcombine.low %v966_v1, %v970_v2 }
 0x1fe   :  { %2448 = vmatpush1.bf16.msra.mxu0 %v6404_v25  ;;  %v933_v25 = vld [vmem:[#allocation11 + $0x540] sm:$0xff] }
 0x1ff   :  { %2449 = vmatprep.subr.bf16.mxu0 %v6413_v26  ;;  %v937_v26 = vld [vmem:[#allocation11 + $0x560] sm:$0xff] }
 0x200   :  { %v6483_v32 = vcombine.high %v933_v25, %v937_v26 }
 0x202   :  { %2450 = vmatpush1.bf16.msra.mxu0 %v6412_v30  ;;  %v6474_v30 = vcombine.low %v925_v6, %v929_v10  ;;  %v982_v6 = vld [vmem:[#allocation11 + $0x6c8] sm:$0xff] }
 0x203   :  { %2451 = vmatprep.subr.bf16.mxu0 %v6421_v31  ;;  %v986_v10 = vld [vmem:[#allocation11 + $0x6e8] sm:$0xff] }
 0x206   :  { %2452 = vmatpush1.bf16.msra.mxu0 %v6420_v36  ;;  %v941_v36 = vld [vmem:[#allocation11 + $0x580] sm:$0xff] }
 0x207   :  { %2453 = vmatprep.subr.bf16.mxu0 %v6429_v37  ;;  %v945_v37 = vld [vmem:[#allocation11 + $0x5a0] sm:$0xff] }
 0x20a   :  { %2454 = vmatpush1.bf16.msra.mxu0 %v6428_v40  ;;  %v6482_v40 = vcombine.low %v933_v25, %v937_v26  ;;  %v990_v25 = vld [vmem:[#allocation11 + $0x708] sm:$0xff] }
 0x20b   :  { %2455 = vmatprep.subr.bf16.mxu0 %v6437_v41  ;;  %v6484_v41 = vcombine.low %v934_v27, %v938_v29  ;;  %v994_v26 = vld [vmem:[#allocation11 + $0x728] sm:$0xff]  ;;  %v6532_v29 = vcombine.low %v982_v6, %v986_v10 }
 0x20e   :  { %2456 = vmatpush1.bf16.msra.mxu0 %v6436_v42  ;;  %v6491_v42 = vcombine.high %v941_v36, %v945_v37 }
 0x20f   :  { %2466 = vmatprep.subr.bf16.mxu0 %v6445_v43  ;;  %v6493_v43 = vcombine.high %v942_v38, %v946_v39 }
 0x264   :  { %v701_v47 = vpop.f32.mrb[4].mxu0 }
 0x265   :  { %v702_v48 = vadd.f32 %v701_v47, %v330_v45  ;;  %v703_v49 = vpop.f32.mrb[5].mxu0  ;;  %v949_v45 = vld [vmem:[#allocation11 + $0x5c0] sm:$0xff]  ;;  %v950_v47 = vld [vmem:[#allocation11 + $0x5c8] sm:$0xff] }
 0x266   :  { %v704_v50 = vadd.f32 %v703_v49, %v334_v46  ;;  %v705_v51 = vpop.f32.mrb[6].mxu0  ;;  %v953_v46 = vld [vmem:[#allocation11 + $0x5e0] sm:$0xff]  ;;  %v6490_v49 = vcombine.low %v941_v36, %v945_v37  ;;  %v998_v36 = vld [vmem:[#allocation11 + $0x748] sm:$0xff] }
 0x267   :  { %vm749_vm3 = vcmp.gt.f32.partialorder %v702_v48, 0.0  ;;  %v753_v52 = vmul.f32 0.2, %v702_v48  ;;  %v706_v53 = vpop.f32.mrb[7].mxu0  ;;  %v6499_v51 = vcombine.high %v949_v45, %v953_v46  ;;  %v6498_v57 = vcombine.low %v949_v45, %v953_v46  ;;  %v1002_v37 = vld [vmem:[#allocation11 + $0x768] sm:$0xff]  ;;  %v1009_v45 = vld [vmem:[#allocation11 + $0x7a0] sm:$0xff] }
 0x268   :  { %vm750_vm4 = vcmp.gt.f32.partialorder %v704_v50, 0.0  ;;  %v754_v54 = vmul.f32 0.2, %v704_v50  ;;  %v957_v53 = vld [vmem:[#allocation11 + $0x600] sm:$0xff]  ;;  %v1006_v46 = vld [vmem:[#allocation11 + $0x788] sm:$0xff] }
 0x269   :  { %v757_v56 = vsel %vm749_vm3, %v702_v48, %v753_v52  ;;  %v954_v48 = vld [vmem:[#allocation11 + $0x5e8] sm:$0xff] }
 0x26a   :  { %v758_v60 = vsel %vm750_vm4, %v704_v50, %v754_v54  ;;  %v8400_v62 = vpack.c.bf16 %v757_v56, %v757_v56  ;;  %v6492_v50 = vcombine.low %v942_v38, %v946_v39  ;;  %v6501_v52 = vcombine.high %v950_v47, %v954_v48  ;;  %v961_v54 = vld [vmem:[#allocation11 + $0x620] sm:$0xff]  ;;  %v962_v56 = vld [vmem:[#allocation11 + $0x628] sm:$0xff] }
 0x26b   :  { %v8398_v61 = vpack.c.bf16 %v758_v60, %v758_v60  ;;  %v6500_v58 = vcombine.low %v950_v47, %v954_v48  ;;  %v6507_v59 = vcombine.high %v957_v53, %v961_v54  ;;  %v6509_v60 = vcombine.high %v958_v55, %v962_v56  ;;  %v1010_v47 = vld [vmem:[#allocation11 + $0x7a8] sm:$0xff] }
 0x26c   :  { %v6506_v3 = vcombine.low %v957_v53, %v961_v54  ;;  %v6508_v7 = vcombine.low %v958_v55, %v962_v56  ;;  %v6540_v39 = vcombine.low %v990_v25, %v994_v26  ;;  %v8416_v48 = vsub.s32 3, %v8362_v28  ;;  %v1013_v53 = vld [vmem:[#allocation11 + $0x7c0] sm:$0xff]  ;;  %v1014_v56 = vld [vmem:[#allocation11 + $0x7c8] sm:$0xff] }
 0x26d   :  { %2375 = vmatprep.mubr.bf16.mxu1 %v8398_v61  ;;  %2457 = vmatprep.mubr.bf16.mxu0 %v8398_v61  ;;  %v1017_v55 = vld [vmem:[#allocation11 + $0x7e0] sm:$0xff] }
 0x26e   :  { %2376 = vmatmul.mubr.bf16.vlgmr.msra.gmra.mrb[0].mxu1 %v8400_v62  ;;  %2458 = vmatmul.mubr.bf16.vlgmr.msra.gmra.mrb[12].mxu0 %v8400_v62 }
 0x26f   :  { %2385 = vmatpush1.bf16.msra.mxu1 %v6442_v11  ;;  %2467 = vmatpush1.bf16.msra.mxu0 %v6444_v12  ;;  %v926_v11 = vld [vmem:[#allocation11 + $0x508] sm:$0xff] }
 0x270   :  { %2386 = vmatprep.subr.bf16.mxu1 %v6451_v63  ;;  %2468 = vmatprep.subr.bf16.mxu0 %v6453_v0  ;;  %v930_v12 = vld [vmem:[#allocation11 + $0x528] sm:$0xff]  ;;  %v965_v63 = vld [vmem:[#allocation11 + $0x640] sm:$0xff] }
 0x271   :  { %v6477_v24 = vcombine.high %v926_v11, %v930_v12  ;;  %v6476_v31 = vcombine.low %v926_v11, %v930_v12  ;;  %v969_v0 = vld [vmem:[#allocation11 + $0x660] sm:$0xff]  ;;  %v6524_v12 = vcombine.low %v974_v15, %v978_v16 }
 0x272   :  { %v6514_v17 = vcombine.low %v965_v63, %v969_v0 }
 0x273   :  { %2387 = vmatpush1.bf16.msra.mxu1 %v6450_v8  ;;  %2469 = vmatpush1.bf16.msra.mxu0 %v6452_v9  ;;  %v6515_v8 = vcombine.high %v965_v63, %v969_v0  ;;  %v6517_v9 = vcombine.high %v966_v1, %v970_v2  ;;  %v6563_v0 = vcombine.high %v1013_v53, %v1017_v55  ;;  %v767_v2 = vld [vmem:[#allocation11 + $0x10] sm:$0xff] }
 0x274   :  { %2388 = vmatprep.subr.bf16.mxu1 %v6459_v13  ;;  %2470 = vmatprep.subr.bf16.mxu0 %v6461_v14  ;;  %v973_v13 = vld [vmem:[#allocation11 + $0x680] sm:$0xff] }
 0x275   :  { %v977_v14 = vld [vmem:[#allocation11 + $0x6a0] sm:$0xff] }
 0x276   :  { %v6522_v11 = vcombine.low %v973_v13, %v977_v14 }
 0x277   :  { %2389 = vmatpush1.bf16.msra.mxu1 %v6458_v19  ;;  %2471 = vmatpush1.bf16.msra.mxu0 %v6460_v20  ;;  %v6523_v19 = vcombine.high %v973_v13, %v977_v14  ;;  %v6525_v20 = vcombine.high %v974_v15, %v978_v16  ;;  %v772_v13 = vld [vmem:[#allocation11 + $0x38] sm:$0xff] }
 0x278   :  { %2390 = vmatprep.subr.bf16.mxu1 %v6467_v4  ;;  %2472 = vmatprep.subr.bf16.mxu0 %v6469_v5  ;;  %v981_v4 = vld [vmem:[#allocation11 + $0x6c0] sm:$0xff] }
 0x279   :  { %v985_v5 = vld [vmem:[#allocation11 + $0x6e0] sm:$0xff] }
 0x27a   :  { %v6530_v27 = vcombine.low %v981_v4, %v985_v5 }
 0x27b   :  { %2391 = vmatpush1.bf16.msra.mxu1 %v6466_v21  ;;  %2473 = vmatpush1.bf16.msra.mxu0 %v6468_v22  ;;  %v6531_v21 = vcombine.high %v981_v4, %v985_v5  ;;  %v6533_v22 = vcombine.high %v982_v6, %v986_v10  ;;  %v775_v6 = vld [vmem:[#allocation11 + $0x50] sm:$0xff] }
 0x27c   :  { %2392 = vmatprep.subr.bf16.mxu1 %v6475_v23  ;;  %2474 = vmatprep.subr.bf16.mxu0 %v6477_v24  ;;  %v989_v23 = vld [vmem:[#allocation11 + $0x700] sm:$0xff] }
 0x27d   :  { %v993_v24 = vld [vmem:[#allocation11 + $0x720] sm:$0xff] }
 0x27e   :  { %v6538_v38 = vcombine.low %v989_v23, %v993_v24 }
 0x27f   :  { %2393 = vmatpush1.bf16.msra.mxu1 %v6474_v30  ;;  %2475 = vmatpush1.bf16.msra.mxu0 %v6476_v31  ;;  %v6539_v30 = vcombine.high %v989_v23, %v993_v24  ;;  %v6541_v31 = vcombine.high %v990_v25, %v994_v26 }
 0x280   :  { %2394 = vmatprep.subr.bf16.mxu1 %v6483_v32  ;;  %2476 = vmatprep.subr.bf16.mxu0 %v6485_v33  ;;  %v997_v32 = vld [vmem:[#allocation11 + $0x740] sm:$0xff] }
 0x281   :  { %v1001_v33 = vld [vmem:[#allocation11 + $0x760] sm:$0xff] }
 0x283   :  { %2395 = vmatpush1.bf16.msra.mxu1 %v6482_v40  ;;  %2477 = vmatpush1.bf16.msra.mxu0 %v6484_v41  ;;  %v6547_v40 = vcombine.high %v997_v32, %v1001_v33  ;;  %v6549_v41 = vcombine.high %v998_v36, %v1002_v37 }
 0x284   :  { %2396 = vmatprep.subr.bf16.mxu1 %v6491_v42  ;;  %2478 = vmatprep.subr.bf16.mxu0 %v6493_v43  ;;  %v1005_v42 = vld [vmem:[#allocation11 + $0x780] sm:$0xff]  ;;  %v8413_v43 = vsub.s32 2, %v8362_v28 }
 0x286   :  { %v338_v54 = vrot.slane %v8392_v44, %v8413_v43 }
 0x287   :  { %2397 = vmatpush1.bf16.msra.mxu1 %v6490_v49  ;;  %2479 = vmatpush1.bf16.msra.mxu0 %v6492_v50  ;;  %v6546_v49 = vcombine.low %v997_v32, %v1001_v33  ;;  %v6548_v50 = vcombine.low %v998_v36, %v1002_v37  ;;  %v788_v32 = vld [vmem:[#allocation11 + $0xb8] sm:$0xff] }
 0x288   :  { %2398 = vmatprep.subr.bf16.mxu1 %v6499_v51  ;;  %2480 = vmatprep.subr.bf16.mxu0 %v6501_v52  ;;  %v6555_v51 = vcombine.high %v1005_v42, %v1009_v45  ;;  %v6557_v52 = vcombine.high %v1006_v46, %v1010_v47 }
 0x28b   :  { %2399 = vmatpush1.bf16.msra.mxu1 %v6498_v57  ;;  %2481 = vmatpush1.bf16.msra.mxu0 %v6500_v58  ;;  %v1018_v57 = vld [vmem:[#allocation11 + $0x7e8] sm:$0xff]  ;;  %v342_v58 = vrot.slane %v8392_v44, %v8416_v48 }
 0x28c   :  { %2400 = vmatprep.subr.bf16.mxu1 %v6507_v59  ;;  %2482 = vmatprep.subr.bf16.mxu0 %v6509_v60  ;;  %v6554_v59 = vcombine.low %v1005_v42, %v1009_v45  ;;  %v6556_v60 = vcombine.low %v1006_v46, %v1010_v47  ;;  %v6565_v1 = vcombine.high %v1014_v56, %v1018_v57  ;;  %v796_v42 = vld [vmem:[#allocation11 + $0xf8] sm:$0xff] }
 0x28f   :  { %2401 = vmatpush1.bf16.msra.mxu1 %v6506_v3  ;;  %2483 = vmatpush1.bf16.msra.mxu0 %v6508_v7 }
 0x290   :  { %2402 = vmatprep.subr.bf16.mxu1 %v6515_v8  ;;  %2484 = vmatprep.subr.bf16.mxu0 %v6517_v9  ;;  %v771_v8 = vld [vmem:[#allocation11 + $0x30] sm:$0xff]  ;;  %v768_v9 = vld [vmem:[#allocation11 + $0x18] sm:$0xff] }
 0x291   :  { %v6321_v4 = vcombine.high %v768_v9, %v772_v13  ;;  %v6318_v23 = vcombine.low %v767_v2, %v771_v8  ;;  %v6320_v25 = vcombine.low %v768_v9, %v772_v13  ;;  %v820_v9 = vld [vmem:[#allocation11 + $0x1b8] sm:$0xff] }
 0x293   :  { %2403 = vmatpush1.bf16.msra.mxu1 %v6514_v17  ;;  %2485 = vmatpush1.bf16.msra.mxu0 %v6516_v18  ;;  %v6562_v17 = vcombine.low %v1013_v53, %v1017_v55  ;;  %v6564_v18 = vcombine.low %v1014_v56, %v1018_v57  ;;  %v807_v57 = vld [vmem:[#allocation11 + $0x150] sm:$0xff] }
 0x294   :  { %2404 = vmatprep.subr.bf16.mxu1 %v6523_v19  ;;  %2486 = vmatprep.subr.bf16.mxu0 %v6525_v20  ;;  %v6319_v20 = vcombine.high %v767_v2, %v771_v8  ;;  %v816_v8 = vld [vmem:[#allocation11 + $0x198] sm:$0xff] }
 0x297   :  { %2405 = vmatpush1.bf16.msra.mxu1 %v6522_v11  ;;  %2487 = vmatpush1.bf16.msra.mxu0 %v6524_v12  ;;  %v779_v11 = vld [vmem:[#allocation11 + $0x70] sm:$0xff]  ;;  %v776_v12 = vld [vmem:[#allocation11 + $0x58] sm:$0xff] }
 0x298   :  { %2406 = vmatprep.subr.bf16.mxu1 %v6531_v21  ;;  %2488 = vmatprep.subr.bf16.mxu0 %v6533_v22  ;;  %v780_v21 = vld [vmem:[#allocation11 + $0x78] sm:$0xff]  ;;  %v6327_v26 = vcombine.high %v775_v6, %v779_v11  ;;  %v6326_v33 = vcombine.low %v775_v6, %v779_v11  ;;  %v835_v11 = vld [vmem:[#allocation11 + $0x230] sm:$0xff] }
 0x299   :  { %v6328_v36 = vcombine.low %v776_v12, %v780_v21 }
 0x29b   :  { %2407 = vmatpush1.bf16.msra.mxu1 %v6530_v27  ;;  %2489 = vmatpush1.bf16.msra.mxu0 %v6532_v29  ;;  %v6329_v27 = vcombine.high %v776_v12, %v780_v21  ;;  %v783_v29 = vld [vmem:[#allocation11 + $0x90] sm:$0xff]  ;;  %v832_v12 = vld [vmem:[#allocation11 + $0x218] sm:$0xff] }
 0x29c   :  { %2408 = vmatprep.subr.bf16.mxu1 %v6539_v30  ;;  %2490 = vmatprep.subr.bf16.mxu0 %v6541_v31  ;;  %v787_v30 = vld [vmem:[#allocation11 + $0xb0] sm:$0xff]  ;;  %v784_v31 = vld [vmem:[#allocation11 + $0x98] sm:$0xff] }
 0x29d   :  { %v6335_v37 = vcombine.high %v783_v29, %v787_v30  ;;  %v6334_v45 = vcombine.low %v783_v29, %v787_v30  ;;  %v6336_v46 = vcombine.low %v784_v31, %v788_v32  ;;  %v836_v21 = vld [vmem:[#allocation11 + $0x238] sm:$0xff]  ;;  %v839_v29 = vld [vmem:[#allocation11 + $0x250] sm:$0xff] }
 0x29e   :  { %v843_v30 = vld [vmem:[#allocation11 + $0x270] sm:$0xff] }
 0x29f   :  { %2409 = vmatpush1.bf16.msra.mxu1 %v6538_v38  ;;  %2491 = vmatpush1.bf16.msra.mxu0 %v6540_v39  ;;  %v6337_v38 = vcombine.high %v784_v31, %v788_v32  ;;  %v791_v39 = vld [vmem:[#allocation11 + $0xd0] sm:$0xff]  ;;  %v840_v31 = vld [vmem:[#allocation11 + $0x258] sm:$0xff] }
 0x2a0   :  { %2410 = vmatprep.subr.bf16.mxu1 %v6547_v40  ;;  %2492 = vmatprep.subr.bf16.mxu0 %v6549_v41  ;;  %v795_v40 = vld [vmem:[#allocation11 + $0xf0] sm:$0xff]  ;;  %v792_v41 = vld [vmem:[#allocation11 + $0xd8] sm:$0xff] }
 0x2a1   :  { %v6343_v47 = vcombine.high %v791_v39, %v795_v40  ;;  %v6342_v53 = vcombine.low %v791_v39, %v795_v40  ;;  %v844_v32 = vld [vmem:[#allocation11 + $0x278] sm:$0xff]  ;;  %v847_v39 = vld [vmem:[#allocation11 + $0x290] sm:$0xff] }
 0x2a2   :  { %v851_v40 = vld [vmem:[#allocation11 + $0x2b0] sm:$0xff] }
 0x2a3   :  { %2411 = vmatpush1.bf16.msra.mxu1 %v6546_v49  ;;  %2493 = vmatpush1.bf16.msra.mxu0 %v6548_v50  ;;  %v6345_v49 = vcombine.high %v792_v41, %v796_v42  ;;  %v799_v50 = vld [vmem:[#allocation11 + $0x110] sm:$0xff] }
 0x2a4   :  { %v742_v63 = vpop.f32.mrb[8].mxu0  ;;  %2412 = vmatprep.subr.bf16.mxu1 %v6555_v51  ;;  %2494 = vmatprep.subr.bf16.mxu0 %v6557_v52  ;;  %v803_v51 = vld [vmem:[#allocation11 + $0x130] sm:$0xff]  ;;  %v804_v52 = vld [vmem:[#allocation11 + $0x138] sm:$0xff] }
 0x2a5   :  { %v743_v3 = vadd.f32 %v742_v63, %v338_v54  ;;  %v744_v7 = vpop.f32.mrb[9].mxu0  ;;  %v6344_v54 = vcombine.low %v792_v41, %v796_v42  ;;  %v6351_v55 = vcombine.high %v799_v50, %v803_v51  ;;  %v6350_v63 = vcombine.low %v799_v50, %v803_v51  ;;  %v848_v41 = vld [vmem:[#allocation11 + $0x298] sm:$0xff]  ;;  %v855_v50 = vld [vmem:[#allocation11 + $0x2d0] sm:$0xff] }
 0x2a6   :  { %v745_v14 = vadd.f32 %v744_v7, %v342_v58  ;;  %v746_v15 = vpop.f32.mrb[10].mxu0  ;;  %v811_v58 = vld [vmem:[#allocation11 + $0x170] sm:$0xff]  ;;  %v852_v42 = vld [vmem:[#allocation11 + $0x2b8] sm:$0xff] }
 0x2a7   :  { %vm751_vm5 = vcmp.gt.f32.partialorder %v743_v3, 0.0  ;;  %v755_v16 = vmul.f32 0.2, %v743_v3  ;;  %v747_v44 = vpop.f32.mrb[11].mxu0  ;;  %2413 = vmatpush1.bf16.msra.mxu1 %v6554_v59  ;;  %2495 = vmatpush1.bf16.msra.mxu0 %v6556_v60  ;;  %v808_v59 = vld [vmem:[#allocation11 + $0x158] sm:$0xff]  ;;  %v819_v7 = vld [vmem:[#allocation11 + $0x1b0] sm:$0xff]  ;;  %v6358_v13 = vcombine.low %v807_v57, %v811_v58 }
 0x2a8   :  { %vm752_vm6 = vcmp.gt.f32.partialorder %v745_v14, 0.0  ;;  %v756_v19 = vmul.f32 0.2, %v745_v14  ;;  %2414 = vmatprep.subr.bf16.mxu1 %v6563_v0  ;;  %2496 = vmatprep.subr.bf16.mxu0 %v6565_v1  ;;  %v812_v60 = vld [vmem:[#allocation11 + $0x178] sm:$0xff]  ;;  %v6359_v1 = vcombine.high %v807_v57, %v811_v58  ;;  %v823_v44 = vld [vmem:[#allocation11 + $0x1d0] sm:$0xff] }
 0x2a9   :  { %v759_v5 = vsel %vm751_vm5, %v743_v3, %v755_v16  ;;  %v6361_v2 = vcombine.high %v808_v59, %v812_v60  ;;  %v815_v3 = vld [vmem:[#allocation11 + $0x190] sm:$0xff]  ;;  %v6369_v16 = vcombine.high %v816_v8, %v820_v9 }
 0x2aa   :  { %v760_v10 = vsel %vm752_vm6, %v745_v14, %v756_v19  ;;  %v8424_v24 = vpack.c.bf16 %v759_v5, %v759_v5  ;;  %v6360_v14 = vcombine.low %v808_v59, %v812_v60  ;;  %v6367_v15 = vcombine.high %v815_v3, %v819_v7  ;;  %v828_v19 = vld [vmem:[#allocation11 + $0x1f8] sm:$0xff]  ;;  %v859_v51 = vld [vmem:[#allocation11 + $0x2f0] sm:$0xff] }
 0x2ab   :  { %v8422_v22 = vpack.c.bf16 %v760_v10, %v760_v10  ;;  %2415 = vmatpush1.bf16.msra.mxu1 %v6562_v17  ;;  %2497 = vmatpush1.bf16.msra.mxu0 %v6564_v18  ;;  %v827_v17 = vld [vmem:[#allocation11 + $0x1f0] sm:$0xff]  ;;  %v824_v18 = vld [vmem:[#allocation11 + $0x1d8] sm:$0xff] }
 0x2ac   :  { %2507 = vmatprep.subr.bf16.mxu1 %v6319_v20  ;;  %2589 = vmatprep.subr.bf16.mxu0 %v6321_v4  ;;  %v6366_v20 = vcombine.low %v815_v3, %v819_v7  ;;  %v6368_v4 = vcombine.low %v816_v8, %v820_v9  ;;  %v6375_v5 = vcombine.high %v823_v44, %v827_v17  ;;  %v831_v10 = vld [vmem:[#allocation11 + $0x210] sm:$0xff]  ;;  %v864_v59 = vld [vmem:[#allocation11 + $0x318] sm:$0xff] }
 0x2ad   :  { %2416 = vmatprep.mubr.bf16.mxu1 %v8422_v22  ;;  %2498 = vmatprep.mubr.bf16.mxu0 %v8422_v22  ;;  %v6377_v6 = vcombine.high %v824_v18, %v828_v19  ;;  %v863_v57 = vld [vmem:[#allocation11 + $0x310] sm:$0xff]  ;;  %v868_v60 = vld [vmem:[#allocation11 + $0x338] sm:$0xff] }
 0x2ae   :  { %2417 = vmatmul.mubr.bf16.vlgmr.msra.gmra.mrb[0].mxu1 %v8424_v24  ;;  %2499 = vmatmul.mubr.bf16.vlgmr.msra.gmra.mrb[12].mxu0 %v8424_v24  ;;  %v867_v58 = vld [vmem:[#allocation11 + $0x330] sm:$0xff]  ;;  %v872_v8 = vld [vmem:[#allocation11 + $0x358] sm:$0xff] }
 0x2af   :  { %2508 = vmatpush1.bf16.msra.mxu1 %v6318_v23  ;;  %2539 = vmatprep.mubr.bf16.mxu1 %v8398_v61  ;;  %v6374_v23 = vcombine.low %v823_v44, %v827_v17  ;;  %v871_v3 = vld [vmem:[#allocation11 + $0x350] sm:$0xff]  ;;  %v876_v9 = vld [vmem:[#allocation11 + $0x378] sm:$0xff] }
 0x2b0   :  { %2590 = vmatpush1.bf16.msra.mxu0 %v6320_v25  ;;  %2621 = vmatprep.mubr.bf16.mxu0 %v8398_v61  ;;  %v800_v61 = vld [vmem:[#allocation11 + $0x118] sm:$0xff]  ;;  %v6376_v25 = vcombine.low %v824_v18, %v828_v19  ;;  %v875_v7 = vld [vmem:[#allocation11 + $0x370] sm:$0xff] }
 0x2b1   :  { %2509 = vmatprep.subr.bf16.mxu1 %v6327_v26  ;;  %2591 = vmatprep.subr.bf16.mxu0 %v6329_v27  ;;  %v6353_v56 = vcombine.high %v800_v61, %v804_v52  ;;  %v6352_v0 = vcombine.low %v800_v61, %v804_v52  ;;  %v6383_v26 = vcombine.high %v831_v10, %v835_v11  ;;  %v856_v61 = vld [vmem:[#allocation11 + $0x2d8] sm:$0xff]  ;;  %v879_v44 = vld [vmem:[#allocation11 + $0x390] sm:$0xff] }
 0x2b2   :  { %v6385_v27 = vcombine.high %v832_v12, %v836_v21  ;;  %v860_v52 = vld [vmem:[#allocation11 + $0x2f8] sm:$0xff]  ;;  %v883_v17 = vld [vmem:[#allocation11 + $0x3b0] sm:$0xff] }
 0x2b3   :  { %2510 = vmatpush1.bf16.msra.mxu1 %v6326_v33  ;;  %v6382_v33 = vcombine.low %v831_v10, %v835_v11  ;;  %v880_v18 = vld [vmem:[#allocation11 + $0x398] sm:$0xff]  ;;  %v887_v10 = vld [vmem:[#allocation11 + $0x3d0] sm:$0xff] }
 0x2b4   :  { %2592 = vmatpush1.bf16.msra.mxu0 %v6328_v36  ;;  %2511 = vmatprep.subr.bf16.mxu1 %v6335_v37  ;;  %v6384_v36 = vcombine.low %v832_v12, %v836_v21  ;;  %v6391_v37 = vcombine.high %v839_v29, %v843_v30  ;;  %v884_v19 = vld [vmem:[#allocation11 + $0x3b8] sm:$0xff]  ;;  %v891_v11 = vld [vmem:[#allocation11 + $0x3f0] sm:$0xff] }
 0x2b5   :  { %2593 = vmatprep.subr.bf16.mxu0 %v6337_v38  ;;  %v6393_v38 = vcombine.high %v840_v31, %v844_v32  ;;  %v888_v12 = vld [vmem:[#allocation11 + $0x3d8] sm:$0xff] }
 0x2b6   :  { %v892_v21 = vld [vmem:[#allocation11 + $0x3f8] sm:$0xff] }
 0x2b7   :  { %2512 = vmatpush1.bf16.msra.mxu1 %v6334_v45  ;;  %v6390_v45 = vcombine.low %v839_v29, %v843_v30  ;;  %v895_v29 = vld [vmem:[#allocation11 + $0x410] sm:$0xff] }
 0x2b8   :  { %2594 = vmatpush1.bf16.msra.mxu0 %v6336_v46  ;;  %2513 = vmatprep.subr.bf16.mxu1 %v6343_v47  ;;  %v6392_v46 = vcombine.low %v840_v31, %v844_v32  ;;  %v6399_v47 = vcombine.high %v847_v39, %v851_v40  ;;  %v899_v30 = vld [vmem:[#allocation11 + $0x430] sm:$0xff]  ;;  %v896_v31 = vld [vmem:[#allocation11 + $0x418] sm:$0xff] }
 0x2b9   :  { %2595 = vmatprep.subr.bf16.mxu0 %v6345_v49  ;;  %v6401_v49 = vcombine.high %v848_v41, %v852_v42  ;;  %v900_v32 = vld [vmem:[#allocation11 + $0x438] sm:$0xff] }
 0x2bb   :  { %2514 = vmatpush1.bf16.msra.mxu1 %v6342_v53  ;;  %v6398_v53 = vcombine.low %v847_v39, %v851_v40  ;;  %v903_v39 = vld [vmem:[#allocation11 + $0x450] sm:$0xff] }
 0x2bc   :  { %2596 = vmatpush1.bf16.msra.mxu0 %v6344_v54  ;;  %2515 = vmatprep.subr.bf16.mxu1 %v6351_v55  ;;  %v6400_v54 = vcombine.low %v848_v41, %v852_v42  ;;  %v6407_v55 = vcombine.high %v855_v50, %v859_v51  ;;  %v907_v40 = vld [vmem:[#allocation11 + $0x470] sm:$0xff]  ;;  %v6446_v41 = vcombine.low %v895_v29, %v899_v30  ;;  %v904_v42 = vld [vmem:[#allocation11 + $0x458] sm:$0xff] }
 0x2bd   :  { %2597 = vmatprep.subr.bf16.mxu0 %v6353_v56  ;;  %v6409_v56 = vcombine.high %v856_v61, %v860_v52 }
 0x2bf   :  { %2516 = vmatpush1.bf16.msra.mxu1 %v6350_v63  ;;  %v6406_v63 = vcombine.low %v855_v50, %v859_v51  ;;  %v915_v50 = vld [vmem:[#allocation11 + $0x4b0] sm:$0xff] }
 0x2c0   :  { %2598 = vmatpush1.bf16.msra.mxu0 %v6352_v0  ;;  %2517 = vmatprep.subr.bf16.mxu1 %v6359_v1  ;;  %v6408_v0 = vcombine.low %v856_v61, %v860_v52  ;;  %v6415_v1 = vcombine.high %v863_v57, %v867_v58  ;;  %v912_v61 = vld [vmem:[#allocation11 + $0x498] sm:$0xff] }
 0x2c1   :  { %2599 = vmatprep.subr.bf16.mxu0 %v6361_v2  ;;  %v6417_v2 = vcombine.high %v864_v59, %v868_v60  ;;  %v916_v52 = vld [vmem:[#allocation11 + $0x4b8] sm:$0xff] }
 0x2c3   :  { %2518 = vmatpush1.bf16.msra.mxu1 %v6358_v13  ;;  %v6414_v13 = vcombine.low %v863_v57, %v867_v58  ;;  %v919_v57 = vld [vmem:[#allocation11 + $0x4d0] sm:$0xff] }
 0x2c4   :  { %2600 = vmatpush1.bf16.msra.mxu0 %v6360_v14  ;;  %2519 = vmatprep.subr.bf16.mxu1 %v6367_v15  ;;  %v6416_v14 = vcombine.low %v864_v59, %v868_v60  ;;  %v6423_v15 = vcombine.high %v871_v3, %v875_v7  ;;  %v923_v58 = vld [vmem:[#allocation11 + $0x4f0] sm:$0xff]  ;;  %v920_v59 = vld [vmem:[#allocation11 + $0x4d8] sm:$0xff] }
 0x2c5   :  { %2601 = vmatprep.subr.bf16.mxu0 %v6369_v16  ;;  %v6425_v16 = vcombine.high %v872_v8, %v876_v9  ;;  %v924_v60 = vld [vmem:[#allocation11 + $0x4f8] sm:$0xff] }
 0x2c7   :  { %2520 = vmatpush1.bf16.msra.mxu1 %v6366_v20  ;;  %v6422_v20 = vcombine.low %v871_v3, %v875_v7  ;;  %v931_v3 = vld [vmem:[#allocation11 + $0x530] sm:$0xff]  ;;  %v928_v7 = vld [vmem:[#allocation11 + $0x518] sm:$0xff] }
 0x2c8   :  { %2602 = vmatpush1.bf16.msra.mxu0 %v6368_v4  ;;  %2521 = vmatprep.subr.bf16.mxu1 %v6375_v5  ;;  %v6424_v4 = vcombine.low %v872_v8, %v876_v9  ;;  %v6431_v5 = vcombine.high %v879_v44, %v883_v17  ;;  %v932_v8 = vld [vmem:[#allocation11 + $0x538] sm:$0xff]  ;;  %v6472_v9 = vcombine.low %v920_v59, %v924_v60 }
 0x2c9   :  { %2603 = vmatprep.subr.bf16.mxu0 %v6377_v6  ;;  %v6433_v6 = vcombine.high %v880_v18, %v884_v19 }
 0x2cb   :  { %2522 = vmatpush1.bf16.msra.mxu1 %v6374_v23  ;;  %v6430_v23 = vcombine.low %v879_v44, %v883_v17  ;;  %v936_v44 = vld [vmem:[#allocation11 + $0x558] sm:$0xff] }
 0x2cc   :  { %2604 = vmatpush1.bf16.msra.mxu0 %v6376_v25  ;;  %2523 = vmatprep.subr.bf16.mxu1 %v6383_v26  ;;  %v6432_v25 = vcombine.low %v880_v18, %v884_v19  ;;  %v6439_v26 = vcombine.high %v887_v10, %v891_v11  ;;  %v940_v17 = vld [vmem:[#allocation11 + $0x578] sm:$0xff]  ;;  %v6480_v19 = vcombine.low %v928_v7, %v932_v8 }
 0x2cd   :  { %2605 = vmatprep.subr.bf16.mxu0 %v6385_v27  ;;  %v6441_v27 = vcombine.high %v888_v12, %v892_v21 }
 0x2cf   :  { %2524 = vmatpush1.bf16.msra.mxu1 %v6382_v33  ;;  %v6438_v33 = vcombine.low %v887_v10, %v891_v11  ;;  %v944_v10 = vld [vmem:[#allocation11 + $0x598] sm:$0xff] }
 0x2d0   :  { %2606 = vmatpush1.bf16.msra.mxu0 %v6384_v36  ;;  %2525 = vmatprep.subr.bf16.mxu1 %v6391_v37  ;;  %v6440_v36 = vcombine.low %v888_v12, %v892_v21  ;;  %v6447_v37 = vcombine.high %v895_v29, %v899_v30  ;;  %v948_v11 = vld [vmem:[#allocation11 + $0x5b8] sm:$0xff]  ;;  %v6488_v21 = vcombine.low %v936_v44, %v940_v17 }
 0x2d1   :  { %2607 = vmatprep.subr.bf16.mxu0 %v6393_v38  ;;  %v6449_v38 = vcombine.high %v896_v31, %v900_v32  ;;  %v952_v29 = vld [vmem:[#allocation11 + $0x5d8] sm:$0xff] }
 0x2d2   :  { %v956_v30 = vld [vmem:[#allocation11 + $0x5f8] sm:$0xff] }
 0x2d3   :  { %2526 = vmatpush1.bf16.msra.mxu1 %v6390_v45  ;;  %v908_v45 = vld [vmem:[#allocation11 + $0x478] sm:$0xff] }
 0x2d4   :  { %2608 = vmatpush1.bf16.msra.mxu0 %v6392_v46  ;;  %2527 = vmatprep.subr.bf16.mxu1 %v6399_v47  ;;  %v6448_v46 = vcombine.low %v896_v31, %v900_v32  ;;  %v6455_v47 = vcombine.high %v903_v39, %v907_v40  ;;  %v6457_v51 = vcombine.high %v904_v42, %v908_v45 }
 0x2d5   :  { %2609 = vmatprep.subr.bf16.mxu0 %v6401_v49  ;;  %v911_v49 = vld [vmem:[#allocation11 + $0x490] sm:$0xff]  ;;  %v6496_v32 = vcombine.low %v944_v10, %v948_v11 }
 0x2d7   :  { %2528 = vmatpush1.bf16.msra.mxu1 %v6398_v53  ;;  %v6454_v53 = vcombine.low %v903_v39, %v907_v40  ;;  %v960_v39 = vld [vmem:[#allocation11 + $0x618] sm:$0xff] }
 0x2d8   :  { %2610 = vmatpush1.bf16.msra.mxu0 %v6400_v54  ;;  %2529 = vmatprep.subr.bf16.mxu1 %v6407_v55  ;;  %v6456_v54 = vcombine.low %v904_v42, %v908_v45  ;;  %v6463_v55 = vcombine.high %v911_v49, %v915_v50  ;;  %v964_v40 = vld [vmem:[#allocation11 + $0x638] sm:$0xff]  ;;  %v6504_v42 = vcombine.low %v952_v29, %v956_v30 }
 0x2d9   :  { %2611 = vmatprep.subr.bf16.mxu0 %v6409_v56  ;;  %v6465_v56 = vcombine.high %v912_v61, %v916_v52 }
 0x2db   :  { %2530 = vmatpush1.bf16.msra.mxu1 %v6406_v63  ;;  %v6462_v63 = vcombine.low %v911_v49, %v915_v50  ;;  %v971_v49 = vld [vmem:[#allocation11 + $0x670] sm:$0xff]  ;;  %v968_v50 = vld [vmem:[#allocation11 + $0x658] sm:$0xff] }
 0x2dc   :  { %2612 = vmatpush1.bf16.msra.mxu0 %v6408_v0  ;;  %2531 = vmatprep.subr.bf16.mxu1 %v6415_v1  ;;  %v6471_v0 = vcombine.high %v919_v57, %v923_v58  ;;  %v6473_v1 = vcombine.high %v920_v59, %v924_v60 }
 0x2dd   :  { %2613 = vmatprep.subr.bf16.mxu0 %v6417_v2  ;;  %v927_v2 = vld [vmem:[#allocation11 + $0x510] sm:$0xff] }
 0x2de   :  { %v6478_v18 = vcombine.low %v927_v2, %v931_v3 }
 0x2df   :  { %2532 = vmatpush1.bf16.msra.mxu1 %v6414_v13  ;;  %v6479_v13 = vcombine.high %v927_v2, %v931_v3  ;;  %v984_v2 = vld [vmem:[#allocation11 + $0x6d8] sm:$0xff] }
 0x2e0   :  { %2614 = vmatpush1.bf16.msra.mxu0 %v6416_v14  ;;  %2533 = vmatprep.subr.bf16.mxu1 %v6423_v15  ;;  %v6481_v14 = vcombine.high %v928_v7, %v932_v8  ;;  %v935_v15 = vld [vmem:[#allocation11 + $0x550] sm:$0xff]  ;;  %v988_v3 = vld [vmem:[#allocation11 + $0x6f8] sm:$0xff] }
 0x2e1   :  { %2615 = vmatprep.subr.bf16.mxu0 %v6425_v16  ;;  %v939_v16 = vld [vmem:[#allocation11 + $0x570] sm:$0xff] }
 0x2e2   :  { %v6486_v12 = vcombine.low %v935_v15, %v939_v16 }
 0x2e3   :  { %2534 = vmatpush1.bf16.msra.mxu1 %v6422_v20  ;;  %v6487_v20 = vcombine.high %v935_v15, %v939_v16  ;;  %v992_v15 = vld [vmem:[#allocation11 + $0x718] sm:$0xff] }
 0x2e4   :  { %2616 = vmatpush1.bf16.msra.mxu0 %v6424_v4  ;;  %2535 = vmatprep.subr.bf16.mxu1 %v6431_v5  ;;  %v6489_v4 = vcombine.high %v936_v44, %v940_v17  ;;  %v943_v5 = vld [vmem:[#allocation11 + $0x590] sm:$0xff]  ;;  %v996_v16 = vld [vmem:[#allocation11 + $0x738] sm:$0xff]  ;;  %v6536_v17 = vcombine.low %v984_v2, %v988_v3 }
 0x2e5   :  { %2617 = vmatprep.subr.bf16.mxu0 %v6433_v6  ;;  %v947_v6 = vld [vmem:[#allocation11 + $0x5b0] sm:$0xff] }
 0x2e6   :  { %v6494_v31 = vcombine.low %v943_v5, %v947_v6 }
 0x2e7   :  { %2536 = vmatpush1.bf16.msra.mxu1 %v6430_v23  ;;  %v6495_v23 = vcombine.high %v943_v5, %v947_v6  ;;  %v1000_v5 = vld [vmem:[#allocation11 + $0x758] sm:$0xff] }
 0x2e8   :  { %2618 = vmatpush1.bf16.msra.mxu0 %v6432_v25  ;;  %2537 = vmatprep.subr.bf16.mxu1 %v6439_v26  ;;  %v6497_v25 = vcombine.high %v944_v10, %v948_v11  ;;  %v951_v26 = vld [vmem:[#allocation11 + $0x5d0] sm:$0xff]  ;;  %v1004_v6 = vld [vmem:[#allocation11 + $0x778] sm:$0xff]  ;;  %v6544_v11 = vcombine.low %v992_v15, %v996_v16 }
 0x2e9   :  { %2619 = vmatprep.subr.bf16.mxu0 %v6441_v27  ;;  %v955_v27 = vld [vmem:[#allocation11 + $0x5f0] sm:$0xff] }
 0x2eb   :  { %2538 = vmatpush1.bf16.msra.mxu1 %v6438_v33  ;;  %v6503_v33 = vcombine.high %v951_v26, %v955_v27 }
 0x2ec   :  { %2620 = vmatpush1.bf16.msra.mxu0 %v6440_v36  ;;  %2548 = vmatprep.subr.bf16.mxu1 %v6447_v37  ;;  %v6505_v36 = vcombine.high %v952_v29, %v956_v30  ;;  %v959_v37 = vld [vmem:[#allocation11 + $0x610] sm:$0xff]  ;;  %v6552_v30 = vcombine.low %v1000_v5, %v1004_v6 }
 0x2ed   :  { %2630 = vmatprep.subr.bf16.mxu0 %v6449_v38  ;;  %v963_v38 = vld [vmem:[#allocation11 + $0x630] sm:$0xff] }
 0x2ee   :  { %2540 = vmatmul.mubr.bf16.vlgmr.msra.gmra.mrb[4].mxu1 %v8400_v62  ;;  %v6511_v45 = vcombine.high %v959_v37, %v963_v38 }
 0x2ef   :  { %2622 = vmatmul.mubr.bf16.vlgmr.msra.gmra.mrb[16].mxu0 %v8400_v62  ;;  %2549 = vmatpush1.bf16.msra.mxu1 %v6446_v41  ;;  %v6464_v62 = vcombine.low %v912_v61, %v916_v52  ;;  %v6502_v41 = vcombine.low %v951_v26, %v955_v27  ;;  %v6510_v61 = vcombine.low %v959_v37, %v963_v38  ;;  %v1008_v26 = vld [vmem:[#allocation11 + $0x798] sm:$0xff] }
 0x2f0   :  { %2580 = vmatprep.mubr.bf16.mxu1 %v8422_v22  ;;  %2631 = vmatpush1.bf16.msra.mxu0 %v6448_v46  ;;  %v6513_v46 = vcombine.high %v960_v39, %v964_v40  ;;  %v6512_v52 = vcombine.low %v960_v39, %v964_v40  ;;  %v1012_v27 = vld [vmem:[#allocation11 + $0x7b8] sm:$0xff] }
 0x2f1   :  { %2662 = vmatprep.mubr.bf16.mxu0 %v8422_v22  ;;  %2550 = vmatprep.subr.bf16.mxu1 %v6455_v47  ;;  %v6470_v22 = vcombine.low %v919_v57, %v923_v58  ;;  %v967_v47 = vld [vmem:[#allocation11 + $0x650] sm:$0xff]  ;;  %v976_v57 = vld [vmem:[#allocation11 + $0x698] sm:$0xff]  ;;  %v6560_v40 = vcombine.low %v1008_v26, %v1012_v27 }
 0x2f2   :  { %2632 = vmatprep.subr.bf16.mxu0 %v6457_v51  ;;  %v972_v51 = vld [vmem:[#allocation11 + $0x678] sm:$0xff]  ;;  %v6518_v59 = vcombine.low %v967_v47, %v971_v49 }
 0x2f3   :  { %2551 = vmatpush1.bf16.msra.mxu1 %v6454_v53  ;;  %v6519_v53 = vcombine.high %v967_v47, %v971_v49  ;;  %v980_v58 = vld [vmem:[#allocation11 + $0x6b8] sm:$0xff]  ;;  %v6520_v60 = vcombine.low %v968_v50, %v972_v51  ;;  %v7301_v47 = vld [vmem:[#allocation14 + $0x4] ss:$28 sps:$4 sm:$0xff]   ;;  %v7304_v49 = vld [vmem:[#allocation14 + $0xc] ss:$28 sps:$4 sm:$0xff]  }
 0x2f4   :  { %2633 = vmatpush1.bf16.msra.mxu0 %v6456_v54  ;;  %2552 = vmatprep.subr.bf16.mxu1 %v6463_v55  ;;  %v6521_v54 = vcombine.high %v968_v50, %v972_v51  ;;  %v975_v55 = vld [vmem:[#allocation11 + $0x690] sm:$0xff]  ;;  %v6528_v8 = vcombine.low %v976_v57, %v980_v58  ;;  %v1016_v37 = vld [vmem:[#allocation11 + $0x7d8] sm:$0xff]  ;;  %v7299_v50 = vld [vmem:[#allocation14] ss:$28 sps:$4 sm:$0xff]  }
 0x2f5   :  { %2634 = vmatprep.subr.bf16.mxu0 %v6465_v56  ;;  %v979_v56 = vld [vmem:[#allocation11 + $0x6b0] sm:$0xff]  ;;  %v1020_v38 = vld [vmem:[#allocation11 + $0x7f8] sm:$0xff] }
 0x2f6   :  { %v6526_v7 = vcombine.low %v975_v55, %v979_v56  ;;  %v7302_v51 = vld [vmem:[#allocation14 + $0x8] ss:$28 sps:$4 sm:$0xff]  }
 0x2f7   :  { %2553 = vmatpush1.bf16.msra.mxu1 %v6462_v63  ;;  %v6527_v63 = vcombine.high %v975_v55, %v979_v56  ;;  %v7313_v55 = vld [vmem:[#allocation14 + $0x74] ss:$28 sps:$4 sm:$0xff]   ;;  %v7316_v56 = vld [vmem:[#allocation14 + $0x7c] ss:$28 sps:$4 sm:$0xff]  }
 0x2f8   :  { %2635 = vmatpush1.bf16.msra.mxu0 %v6464_v62  ;;  %2554 = vmatprep.subr.bf16.mxu1 %v6471_v0  ;;  %v6529_v62 = vcombine.high %v976_v57, %v980_v58  ;;  %v983_v0 = vld [vmem:[#allocation11 + $0x6d0] sm:$0xff]  ;;  %v7314_v58 = vld [vmem:[#allocation14 + $0x78] ss:$28 sps:$4 sm:$0xff]  }
 0x2f9   :  { %2636 = vmatprep.subr.bf16.mxu0 %v6473_v1  ;;  %v987_v1 = vld [vmem:[#allocation11 + $0x6f0] sm:$0xff] }
 0x2fa   :  { %v6534_v44 = vcombine.low %v983_v0, %v987_v1  ;;  %v7311_v57 = vld [vmem:[#allocation14 + $0x70] ss:$28 sps:$4 sm:$0xff]  }
 0x2fb   :  { %2555 = vmatpush1.bf16.msra.mxu1 %v6470_v22  ;;  %v6535_v22 = vcombine.high %v983_v0, %v987_v1  ;;  %v7328_v0 = vld [vmem:[#allocation14 + $0xec] ss:$28 sps:$4 sm:$0xff]   ;;  %v7323_v1 = vld [vmem:[#allocation14 + $0xe0] ss:$28 sps:$4 sm:$0xff]  }
 0x2fc   :  { %2637 = vmatpush1.bf16.msra.mxu0 %v6472_v9  ;;  %2556 = vmatprep.subr.bf16.mxu1 %v6479_v13  ;;  %v6537_v9 = vcombine.high %v984_v2, %v988_v3  ;;  %v991_v13 = vld [vmem:[#allocation11 + $0x710] sm:$0xff]  ;;  %v7331_v3 = vld [vmem:[#allocation14 + $0x11c] ss:$28 sps:$4 sm:$0xff]  }
 0x2fd   :  { %2638 = vmatprep.subr.bf16.mxu0 %v6481_v14  ;;  %v995_v14 = vld [vmem:[#allocation11 + $0x730] sm:$0xff] }
 0x2fe   :  { %v6542_v10 = vcombine.low %v991_v13, %v995_v14  ;;  %v7326_v2 = vld [vmem:[#allocation14 + $0xe8] ss:$28 sps:$4 sm:$0xff]  }
 0x2ff   :  { %2557 = vmatpush1.bf16.msra.mxu1 %v6478_v18  ;;  %v6543_v18 = vcombine.high %v991_v13, %v995_v14  ;;  %v7340_v13 = vld [vmem:[#allocation14 + $0x15c] ss:$28 sps:$4 sm:$0xff]   ;;  %v7335_v14 = vld [vmem:[#allocation14 + $0x150] ss:$28 sps:$4 sm:$0xff]  }
 0x300   :  { %2639 = vmatpush1.bf16.msra.mxu0 %v6480_v19  ;;  %2558 = vmatprep.subr.bf16.mxu1 %v6487_v20  ;;  %v6545_v19 = vcombine.high %v992_v15, %v996_v16  ;;  %v999_v20 = vld [vmem:[#allocation11 + $0x750] sm:$0xff]  ;;  %v7338_v15 = vld [vmem:[#allocation14 + $0x158] ss:$28 sps:$4 sm:$0xff]  }
 0x301   :  { %2640 = vmatprep.subr.bf16.mxu0 %v6489_v4  ;;  %v1003_v4 = vld [vmem:[#allocation11 + $0x770] sm:$0xff] }
 0x302   :  { %v6550_v29 = vcombine.low %v999_v20, %v1003_v4  ;;  %v7343_v16 = vld [vmem:[#allocation14 + $0x18c] ss:$28 sps:$4 sm:$0xff]  }
 0x303   :  { %2559 = vmatpush1.bf16.msra.mxu1 %v6486_v12  ;;  %v6551_v12 = vcombine.high %v999_v20, %v1003_v4  ;;  %v7352_v20 = vld [vmem:[#allocation14 + $0x1cc] ss:$28 sps:$4 sm:$0xff]   ;;  %v7347_v4 = vld [vmem:[#allocation14 + $0x1c0] ss:$28 sps:$4 sm:$0xff]  }
 0x304   :  { %2641 = vmatpush1.bf16.msra.mxu0 %v6488_v21  ;;  %2560 = vmatprep.subr.bf16.mxu1 %v6495_v23  ;;  %v6553_v21 = vcombine.high %v1000_v5, %v1004_v6  ;;  %v1007_v23 = vld [vmem:[#allocation11 + $0x790] sm:$0xff]  ;;  %v7355_v6 = vld [vmem:[#allocation14 + $0x1fc] ss:$28 sps:$4 sm:$0xff]  }
 0x305   :  { %2642 = vmatprep.subr.bf16.mxu0 %v6497_v25  ;;  %v1011_v25 = vld [vmem:[#allocation11 + $0x7b0] sm:$0xff] }
 0x306   :  { %v6558_v39 = vcombine.low %v1007_v23, %v1011_v25  ;;  %v7350_v5 = vld [vmem:[#allocation14 + $0x1c8] ss:$28 sps:$4 sm:$0xff]  }
 0x307   :  { %2561 = vmatpush1.bf16.msra.mxu1 %v6494_v31  ;;  %v6559_v31 = vcombine.high %v1007_v23, %v1011_v25  ;;  %v7364_v23 = vld [vmem:[#allocation14 + $0x23c] ss:$28 sps:$4 sm:$0xff]   ;;  %v7359_v25 = vld [vmem:[#allocation14 + $0x230] ss:$28 sps:$4 sm:$0xff]  }
 0x308   :  { %2643 = vmatpush1.bf16.msra.mxu0 %v6496_v32  ;;  %2562 = vmatprep.subr.bf16.mxu1 %v6503_v33  ;;  %v6561_v32 = vcombine.high %v1008_v26, %v1012_v27  ;;  %v1015_v33 = vld [vmem:[#allocation11 + $0x7d0] sm:$0xff]  ;;  %v7362_v26 = vld [vmem:[#allocation14 + $0x238] ss:$28 sps:$4 sm:$0xff]  }
 0x309   :  { %2644 = vmatprep.subr.bf16.mxu0 %v6505_v36  ;;  %v1019_v36 = vld [vmem:[#allocation11 + $0x7f0] sm:$0xff] }
 0x30a   :  { %v7367_v27 = vld [vmem:[#allocation14 + $0x26c] ss:$28 sps:$4 sm:$0xff]  }
 0x30b   :  { %2563 = vmatpush1.bf16.msra.mxu1 %v6502_v41  ;;  %v6567_v41 = vcombine.high %v1015_v33, %v1019_v36 }
 0x30c   :  { %2645 = vmatpush1.bf16.msra.mxu0 %v6504_v42  ;;  %2564 = vmatprep.subr.bf16.mxu1 %v6511_v45  ;;  %v6569_v42 = vcombine.high %v1016_v37, %v1020_v38  ;;  %v6566_v45 = vcombine.low %v1015_v33, %v1019_v36  ;;  %v7376_v33 = vld [vmem:[#allocation14 + $0x2ac] ss:$28 sps:$4 sm:$0xff]   ;;  %v7371_v36 = vld [vmem:[#allocation14 + $0x2a0] ss:$28 sps:$4 sm:$0xff]  }
 0x30d   :  { %2646 = vmatprep.subr.bf16.mxu0 %v6513_v46  ;;  %v6568_v46 = vcombine.low %v1016_v37, %v1020_v38  ;;  %v7374_v37 = vld [vmem:[#allocation14 + $0x2a8] ss:$28 sps:$4 sm:$0xff]   ;;  %v7379_v38 = vld [vmem:[#allocation14 + $0x2dc] ss:$28 sps:$4 sm:$0xff]  }
 0x30f   :  { %2565 = vmatpush1.bf16.msra.mxu1 %v6510_v61  ;;  %v7307_v61 = vld [vmem:[#allocation14 + $0x3c] ss:$28 sps:$4 sm:$0xff]  }
 0x310   :  { %2647 = vmatpush1.bf16.msra.mxu0 %v6512_v52  ;;  %2566 = vmatprep.subr.bf16.mxu1 %v6519_v53  ;;  %v7310_v52 = vld [vmem:[#allocation14 + $0x44] ss:$28 sps:$4 sm:$0xff]   ;;  %v7305_v53 = vld [vmem:[#allocation14 + $0x38] ss:$28 sps:$4 sm:$0xff]  }
 0x311   :  { %2648 = vmatprep.subr.bf16.mxu0 %v6521_v54  ;;  %v7308_v54 = vld [vmem:[#allocation14 + $0x40] ss:$28 sps:$4 sm:$0xff]  }
 0x313   :  { %2567 = vmatpush1.bf16.msra.mxu1 %v6518_v59  ;;  %v7319_v59 = vld [vmem:[#allocation14 + $0xac] ss:$28 sps:$4 sm:$0xff]  }
 0x314   :  { %2649 = vmatpush1.bf16.msra.mxu0 %v6520_v60  ;;  %2568 = vmatprep.subr.bf16.mxu1 %v6527_v63  ;;  %v7322_v60 = vld [vmem:[#allocation14 + $0xb4] ss:$28 sps:$4 sm:$0xff]   ;;  %v7317_v63 = vld [vmem:[#allocation14 + $0xa8] ss:$28 sps:$4 sm:$0xff]  }
 0x315   :  { %2650 = vmatprep.subr.bf16.mxu0 %v6529_v62  ;;  %v7325_v62 = vld [vmem:[#allocation14 + $0xe4] ss:$28 sps:$4 sm:$0xff]  }
 0x317   :  { %2569 = vmatpush1.bf16.msra.mxu1 %v6526_v7  ;;  %v7334_v7 = vld [vmem:[#allocation14 + $0x124] ss:$28 sps:$4 sm:$0xff]  }
 0x318   :  { %2651 = vmatpush1.bf16.msra.mxu0 %v6528_v8  ;;  %2570 = vmatprep.subr.bf16.mxu1 %v6535_v22  ;;  %v7329_v8 = vld [vmem:[#allocation14 + $0x118] ss:$28 sps:$4 sm:$0xff]   ;;  %v7332_v22 = vld [vmem:[#allocation14 + $0x120] ss:$28 sps:$4 sm:$0xff]  }
 0x319   :  { %2652 = vmatprep.subr.bf16.mxu0 %v6537_v9  ;;  %v7337_v9 = vld [vmem:[#allocation14 + $0x154] ss:$28 sps:$4 sm:$0xff]  }
 0x31b   :  { %2571 = vmatpush1.bf16.msra.mxu1 %v6534_v44  ;;  %v7346_v44 = vld [vmem:[#allocation14 + $0x194] ss:$28 sps:$4 sm:$0xff]  }
 0x31c   :  { %2653 = vmatpush1.bf16.msra.mxu0 %v6536_v17  ;;  %2572 = vmatprep.subr.bf16.mxu1 %v6543_v18  ;;  %v7341_v17 = vld [vmem:[#allocation14 + $0x188] ss:$28 sps:$4 sm:$0xff]   ;;  %v7344_v18 = vld [vmem:[#allocation14 + $0x190] ss:$28 sps:$4 sm:$0xff]  }
 0x31d   :  { %2654 = vmatprep.subr.bf16.mxu0 %v6545_v19  ;;  %v7349_v19 = vld [vmem:[#allocation14 + $0x1c4] ss:$28 sps:$4 sm:$0xff]  }
 0x31f   :  { %2573 = vmatpush1.bf16.msra.mxu1 %v6542_v10  ;;  %v7358_v10 = vld [vmem:[#allocation14 + $0x204] ss:$28 sps:$4 sm:$0xff]  }
 0x320   :  { %2655 = vmatpush1.bf16.msra.mxu0 %v6544_v11  ;;  %2574 = vmatprep.subr.bf16.mxu1 %v6551_v12  ;;  %v7353_v11 = vld [vmem:[#allocation14 + $0x1f8] ss:$28 sps:$4 sm:$0xff]   ;;  %v7356_v12 = vld [vmem:[#allocation14 + $0x200] ss:$28 sps:$4 sm:$0xff]  }
 0x321   :  { %2656 = vmatprep.subr.bf16.mxu0 %v6553_v21  ;;  %v7361_v21 = vld [vmem:[#allocation14 + $0x234] ss:$28 sps:$4 sm:$0xff]  }
 0x323   :  { %2575 = vmatpush1.bf16.msra.mxu1 %v6550_v29  ;;  %v7370_v29 = vld [vmem:[#allocation14 + $0x274] ss:$28 sps:$4 sm:$0xff]  }
 0x324   :  { %2657 = vmatpush1.bf16.msra.mxu0 %v6552_v30  ;;  %2576 = vmatprep.subr.bf16.mxu1 %v6559_v31  ;;  %v7365_v30 = vld [vmem:[#allocation14 + $0x268] ss:$28 sps:$4 sm:$0xff]   ;;  %v7368_v31 = vld [vmem:[#allocation14 + $0x270] ss:$28 sps:$4 sm:$0xff]  }
 0x325   :  { %2658 = vmatprep.subr.bf16.mxu0 %v6561_v32  ;;  %v7373_v32 = vld [vmem:[#allocation14 + $0x2a4] ss:$28 sps:$4 sm:$0xff]  }
 0x327   :  { %2577 = vmatpush1.bf16.msra.mxu1 %v6558_v39  ;;  %v7382_v39 = vld [vmem:[#allocation14 + $0x2e4] ss:$28 sps:$4 sm:$0xff]  }
 0x328   :  { %2659 = vmatpush1.bf16.msra.mxu0 %v6560_v40  ;;  %2578 = vmatprep.subr.bf16.mxu1 %v6567_v41  ;;  %v7377_v40 = vld [vmem:[#allocation14 + $0x2d8] ss:$28 sps:$4 sm:$0xff]   ;;  %v7380_v41 = vld [vmem:[#allocation14 + $0x2e0] ss:$28 sps:$4 sm:$0xff]  }
 0x329   :  { %2660 = vmatprep.subr.bf16.mxu0 %v6569_v42  ;;  %v7385_v42 = vld [vmem:[#allocation14 + $0x314] ss:$28 sps:$4 sm:$0xff]  }
 0x32b   :  { %2579 = vmatpush1.bf16.msra.mxu1 %v6566_v45  ;;  %v7388_v45 = vld [vmem:[#allocation14 + $0x31c] ss:$28 sps:$4 sm:$0xff]  }
 0x32c   :  { %2661 = vmatpush1.bf16.msra.mxu0 %v6568_v46  ;;  %5556 = vmatprep.subr.bf16.mxu1 %v7301_v47  ;;  %v7383_v46 = vld [vmem:[#allocation14 + $0x310] ss:$28 sps:$4 sm:$0xff]   ;;  %v7386_v47 = vld [vmem:[#allocation14 + $0x318] ss:$28 sps:$4 sm:$0xff]  }
 0x32d   :  { %5720 = vmatprep.subr.bf16.mxu0 %v7304_v49  ;;  %v7391_v49 = vld [vmem:[#allocation14 + $0x34c] ss:$28 sps:$4 sm:$0xff]  }
 0x32e   :  { %2581 = vmatmul.mubr.bf16.vlgmr.msra.gmra.mrb[4].mxu1 %v8424_v24 }
 0x32f   :  { %2663 = vmatmul.mubr.bf16.vlgmr.msra.gmra.mrb[16].mxu0 %v8424_v24  ;;  %5557 = vmatpush1.bf16.msra.mxu1 %v7299_v50  ;;  %v7320_v24 = vld [vmem:[#allocation14 + $0xb0] ss:$28 sps:$4 sm:$0xff]  }
 0x330   :  { %5721 = vmatpush1.bf16.msra.mxu0 %v7302_v51  ;;  %5558 = vmatprep.subr.bf16.mxu1 %v7307_v61  ;;  %v7394_v50 = vld [vmem:[#allocation14 + $0x354] ss:$28 sps:$4 sm:$0xff]   ;;  %v7389_v51 = vld [vmem:[#allocation14 + $0x348] ss:$28 sps:$4 sm:$0xff]  }
 0x331   :  { %5722 = vmatprep.subr.bf16.mxu0 %v7310_v52  ;;  %v7392_v61 = vld [vmem:[#allocation14 + $0x350] ss:$28 sps:$4 sm:$0xff]   ;;  %v7397_v52 = vld [vmem:[#allocation14 + $0x384] ss:$28 sps:$4 sm:$0xff]  }
 0x333   :  { %5559 = vmatpush1.bf16.msra.mxu1 %v7305_v53  ;;  %v7400_v53 = vld [vmem:[#allocation14 + $0x38c] ss:$28 sps:$4 sm:$0xff]  }
 0x334   :  { %5723 = vmatpush1.bf16.msra.mxu0 %v7308_v54  ;;  %5560 = vmatprep.subr.bf16.mxu1 %v7313_v55  ;;  %v8438_v54 = vld [vmem:[#allocation13] sm:$0xff] }
 0x335   :  { %5724 = vmatprep.subr.bf16.mxu0 %v7316_v56  ;;  %v1026_v55 = vrot.slane %v8438_v54, %v8365_v34  ;;  %v1030_v56 = vrot.slane %v8438_v54, %v8368_v35 }
 0x337   :  { %5561 = vmatpush1.bf16.msra.mxu1 %v7311_v57  ;;  %v1038_v57 = vrot.slane %v8438_v54, %v8416_v48 }
 0x338   :  { %5725 = vmatpush1.bf16.msra.mxu0 %v7314_v58  ;;  %5562 = vmatprep.subr.bf16.mxu1 %v7319_v59 }
 0x339   :  { %5726 = vmatprep.subr.bf16.mxu0 %v7322_v60 }
 0x33b   :  { %5563 = vmatpush1.bf16.msra.mxu1 %v7317_v63 }
 0x33c   :  { %5727 = vmatpush1.bf16.msra.mxu0 %v7320_v24  ;;  %5564 = vmatprep.subr.bf16.mxu1 %v7325_v62 }
 0x33d   :  { %5728 = vmatprep.subr.bf16.mxu0 %v7328_v0 }
 0x33f   :  { %5565 = vmatpush1.bf16.msra.mxu1 %v7323_v1 }
 0x340   :  { %5729 = vmatpush1.bf16.msra.mxu0 %v7326_v2  ;;  %5566 = vmatprep.subr.bf16.mxu1 %v7331_v3 }
 0x341   :  { %5730 = vmatprep.subr.bf16.mxu0 %v7334_v7 }
 0x343   :  { %5567 = vmatpush1.bf16.msra.mxu1 %v7329_v8 }
 0x344   :  { %5731 = vmatpush1.bf16.msra.mxu0 %v7332_v22  ;;  %5568 = vmatprep.subr.bf16.mxu1 %v7337_v9 }
 0x345   :  { %5732 = vmatprep.subr.bf16.mxu0 %v7340_v13 }
 0x347   :  { %5569 = vmatpush1.bf16.msra.mxu1 %v7335_v14 }
 0x348   :  { %5733 = vmatpush1.bf16.msra.mxu0 %v7338_v15  ;;  %5570 = vmatprep.subr.bf16.mxu1 %v7343_v16 }
 0x349   :  { %5734 = vmatprep.subr.bf16.mxu0 %v7346_v44  ;;  %v7395_v44 = vld [vmem:[#allocation14 + $0x380] ss:$28 sps:$4 sm:$0xff]  }
 0x34b   :  { %5571 = vmatpush1.bf16.msra.mxu1 %v7341_v17  ;;  %v7398_v17 = vld [vmem:[#allocation14 + $0x388] ss:$28 sps:$4 sm:$0xff]  }
 0x34c   :  { %5735 = vmatpush1.bf16.msra.mxu0 %v7344_v18  ;;  %5572 = vmatprep.subr.bf16.mxu1 %v7349_v19  ;;  %v7403_v19 = vld [vmem:[#allocation14 + $0x3bc] ss:$28 sps:$4 sm:$0xff]  }
 0x34d   :  { %5736 = vmatprep.subr.bf16.mxu0 %v7352_v20  ;;  %v7406_v20 = vld [vmem:[#allocation14 + $0x3c4] ss:$28 sps:$4 sm:$0xff]  }
 0x34f   :  { %5573 = vmatpush1.bf16.msra.mxu1 %v7347_v4 }
 0x350   :  { %5737 = vmatpush1.bf16.msra.mxu0 %v7350_v5  ;;  %5574 = vmatprep.subr.bf16.mxu1 %v7355_v6  ;;  %v7401_v5 = vld [vmem:[#allocation14 + $0x3b8] ss:$28 sps:$4 sm:$0xff]   ;;  %v7404_v6 = vld [vmem:[#allocation14 + $0x3c0] ss:$28 sps:$4 sm:$0xff]  }
 0x351   :  { %5738 = vmatprep.subr.bf16.mxu0 %v7358_v10  ;;  %v7409_v10 = vld [vmem:[#allocation14 + $0x3f4] ss:$28 sps:$4 sm:$0xff]  }
 0x353   :  { %5575 = vmatpush1.bf16.msra.mxu1 %v7353_v11  ;;  %v7412_v11 = vld [vmem:[#allocation14 + $0x3fc] ss:$28 sps:$4 sm:$0xff]  }
 0x354   :  { %5739 = vmatpush1.bf16.msra.mxu0 %v7356_v12  ;;  %5576 = vmatprep.subr.bf16.mxu1 %v7361_v21  ;;  %v7407_v12 = vld [vmem:[#allocation14 + $0x3f0] ss:$28 sps:$4 sm:$0xff]   ;;  %v7410_v21 = vld [vmem:[#allocation14 + $0x3f8] ss:$28 sps:$4 sm:$0xff]  }
 0x355   :  { %5740 = vmatprep.subr.bf16.mxu0 %v7364_v23  ;;  %v7415_v23 = vld [vmem:[#allocation14 + $0x42c] ss:$28 sps:$4 sm:$0xff]  }
 0x357   :  { %5577 = vmatpush1.bf16.msra.mxu1 %v7359_v25  ;;  %v7418_v25 = vld [vmem:[#allocation14 + $0x434] ss:$28 sps:$4 sm:$0xff]  }
 0x358   :  { %5741 = vmatpush1.bf16.msra.mxu0 %v7362_v26  ;;  %5578 = vmatprep.subr.bf16.mxu1 %v7367_v27  ;;  %v7413_v26 = vld [vmem:[#allocation14 + $0x428] ss:$28 sps:$4 sm:$0xff]   ;;  %v7416_v27 = vld [vmem:[#allocation14 + $0x430] ss:$28 sps:$4 sm:$0xff]  }
 0x359   :  { %5742 = vmatprep.subr.bf16.mxu0 %v7370_v29  ;;  %v7421_v29 = vld [vmem:[#allocation14 + $0x464] ss:$28 sps:$4 sm:$0xff]  }
 0x35b   :  { %5579 = vmatpush1.bf16.msra.mxu1 %v7365_v30  ;;  %v7424_v30 = vld [vmem:[#allocation14 + $0x46c] ss:$28 sps:$4 sm:$0xff]  }
 0x35c   :  { %5743 = vmatpush1.bf16.msra.mxu0 %v7368_v31  ;;  %5580 = vmatprep.subr.bf16.mxu1 %v7373_v32  ;;  %v7419_v31 = vld [vmem:[#allocation14 + $0x460] ss:$28 sps:$4 sm:$0xff]   ;;  %v7422_v32 = vld [vmem:[#allocation14 + $0x468] ss:$28 sps:$4 sm:$0xff]  }
 0x35d   :  { %5744 = vmatprep.subr.bf16.mxu0 %v7376_v33  ;;  %v7427_v33 = vld [vmem:[#allocation14 + $0x49c] ss:$28 sps:$4 sm:$0xff]  }
 0x35f   :  { %5581 = vmatpush1.bf16.msra.mxu1 %v7371_v36  ;;  %v7430_v36 = vld [vmem:[#allocation14 + $0x4a4] ss:$28 sps:$4 sm:$0xff]  }
 0x360   :  { %5745 = vmatpush1.bf16.msra.mxu0 %v7374_v37  ;;  %5582 = vmatprep.subr.bf16.mxu1 %v7379_v38  ;;  %v7425_v37 = vld [vmem:[#allocation14 + $0x498] ss:$28 sps:$4 sm:$0xff]   ;;  %v7428_v38 = vld [vmem:[#allocation14 + $0x4a0] ss:$28 sps:$4 sm:$0xff]  }
 0x361   :  { %5746 = vmatprep.subr.bf16.mxu0 %v7382_v39  ;;  %v7433_v39 = vld [vmem:[#allocation14 + $0x4d4] ss:$28 sps:$4 sm:$0xff]  }
 0x363   :  { %5583 = vmatpush1.bf16.msra.mxu1 %v7377_v40  ;;  %v7436_v40 = vld [vmem:[#allocation14 + $0x4dc] ss:$28 sps:$4 sm:$0xff]  }
 0x364   :  { %5747 = vmatpush1.bf16.msra.mxu0 %v7380_v41  ;;  %5584 = vmatprep.subr.bf16.mxu1 %v7385_v42  ;;  %v7431_v41 = vld [vmem:[#allocation14 + $0x4d0] ss:$28 sps:$4 sm:$0xff]   ;;  %v7434_v42 = vld [vmem:[#allocation14 + $0x4d8] ss:$28 sps:$4 sm:$0xff]  }
 0x365   :  { %5748 = vmatprep.subr.bf16.mxu0 %v7388_v45  ;;  %v7439_v45 = vld [vmem:[#allocation14 + $0x50c] ss:$28 sps:$4 sm:$0xff]  }
 0x367   :  { %5585 = vmatpush1.bf16.msra.mxu1 %v7383_v46  ;;  %v7442_v46 = vld [vmem:[#allocation14 + $0x514] ss:$28 sps:$4 sm:$0xff]  }
 0x368   :  { %5749 = vmatpush1.bf16.msra.mxu0 %v7386_v47  ;;  %5586 = vmatprep.subr.bf16.mxu1 %v7391_v49  ;;  %v7437_v47 = vld [vmem:[#allocation14 + $0x508] ss:$28 sps:$4 sm:$0xff]   ;;  %v7440_v49 = vld [vmem:[#allocation14 + $0x510] ss:$28 sps:$4 sm:$0xff]  }
 0x369   :  { %5750 = vmatprep.subr.bf16.mxu0 %v7394_v50  ;;  %v7445_v50 = vld [vmem:[#allocation14 + $0x544] ss:$28 sps:$4 sm:$0xff]  }
 0x36b   :  { %5587 = vmatpush1.bf16.msra.mxu1 %v7389_v51  ;;  %v7448_v51 = vld [vmem:[#allocation14 + $0x54c] ss:$28 sps:$4 sm:$0xff]  }
 0x36c   :  { %5751 = vmatpush1.bf16.msra.mxu0 %v7392_v61  ;;  %5597 = vmatprep.subr.bf16.mxu1 %v7397_v52  ;;  %v7443_v61 = vld [vmem:[#allocation14 + $0x540] ss:$28 sps:$4 sm:$0xff]   ;;  %v7446_v52 = vld [vmem:[#allocation14 + $0x548] ss:$28 sps:$4 sm:$0xff]  }
 0x36d   :  { %5761 = vmatprep.subr.bf16.mxu0 %v7400_v53  ;;  %v7451_v53 = vld [vmem:[#allocation14 + $0x57c] ss:$28 sps:$4 sm:$0xff]  }
 0x381   :  { %v2418_v58 = vpop.f32.mrb[0].mxu1  ;;  %v8446_v59 = vpop.f32.mrb[12].mxu0 }
 0x382   :  { %v7106_v60 = vadd.f32 %v2418_v58, %v1026_v55  ;;  %v2420_v63 = vpop.f32.mrb[1].mxu1  ;;  %v2502_v24 = vpop.f32.mrb[13].mxu0  ;;  %v7454_v55 = vld [vmem:[#allocation14 + $0x584] ss:$28 sps:$4 sm:$0xff]   ;;  %v7457_v58 = vld [vmem:[#allocation14 + $0x5b4] ss:$28 sps:$4 sm:$0xff]  }
 0x383   :  { %v7107_v62 = vadd.f32 %v2420_v63, %v1030_v56  ;;  %v7109_v0 = vadd.f32 %v2502_v24, %v1038_v57  ;;  %v2422_v1 = vpop.f32.mrb[2].mxu1  ;;  %v2504_v2 = vpop.f32.mrb[14].mxu0  ;;  %v7449_v56 = vld [vmem:[#allocation14 + $0x578] ss:$28 sps:$4 sm:$0xff]   ;;  %v7452_v57 = vld [vmem:[#allocation14 + $0x580] ss:$28 sps:$4 sm:$0xff]  }
 0x384   :  { %vm2671_vm7 = vcmp.gt.f32.partialorder %v7106_v60, 0.0  ;;  %v2679_v3 = vmul.f32 0.2, %v7106_v60  ;;  %v2423_v9 = vpop.f32.mrb[3].mxu1  ;;  %v2505_v13 = vpop.f32.mrb[15].mxu0 }
 0x385   :  { %vm2672_vm8 = vcmp.gt.f32.partialorder %v7107_v62, 0.0  ;;  %v2680_v7 = vmul.f32 0.2, %v7107_v62  ;;  %vm2674_vm9 = vcmp.gt.f32.partialorder %v7109_v0, 0.0  ;;  %v2682_v8 = vmul.f32 0.2, %v7109_v0 }
 0x386   :  { %v2687_v22 = vsel %vm2671_vm7, %v7106_v60, %v2679_v3  ;;  %v7460_v60 = vld [vmem:[#allocation14 + $0x5bc] ss:$28 sps:$4 sm:$0xff]   ;;  %v7455_v63 = vld [vmem:[#allocation14 + $0x5b0] ss:$28 sps:$4 sm:$0xff]   ;;  %v7461_v1 = vld [vmem:[#allocation14 + $0x5e8] ss:$28 sps:$4 sm:$0xff]  }
 0x387   :  { %v2688_v14 = vsel %vm2672_vm8, %v7107_v62, %v2680_v7  ;;  %v2690_v16 = vsel %vm2674_vm9, %v7109_v0, %v2682_v8  ;;  %v8450_v18 = vpack.c.bf16 %v2687_v22, %v2687_v22  ;;  %v7458_v24 = vld [vmem:[#allocation14 + $0x5b8] ss:$28 sps:$4 sm:$0xff]   ;;  %v7463_v62 = vld [vmem:[#allocation14 + $0x5ec] ss:$28 sps:$4 sm:$0xff]   ;;  %v7469_v3 = vld [vmem:[#allocation14 + $0x624] ss:$28 sps:$4 sm:$0xff]  }
 0x388   :  { %v8448_v15 = vpack.c.bf16 %v2688_v14, %v2688_v14  ;;  %v8454_v4 = vpack.c.bf16 %v2690_v16, %v2690_v16  ;;  %v7466_v0 = vld [vmem:[#allocation14 + $0x5f4] ss:$28 sps:$4 sm:$0xff]   ;;  %v7472_v7 = vld [vmem:[#allocation14 + $0x62c] ss:$28 sps:$4 sm:$0xff]   ;;  %v7467_v8 = vld [vmem:[#allocation14 + $0x620] ss:$28 sps:$4 sm:$0xff]   ;;  %v1034_v14 = vrot.slane %v8438_v54, %v8413_v43 }
 0x389   :  { %v7464_v2 = vld [vmem:[#allocation14 + $0x5f0] ss:$28 sps:$4 sm:$0xff]   ;;  %v7470_v22 = vld [vmem:[#allocation14 + $0x628] ss:$28 sps:$4 sm:$0xff]   ;;  %v7475_v9 = vld [vmem:[#allocation14 + $0x65c] ss:$28 sps:$4 sm:$0xff]  }
 0x38a   :  { %5588 = vmatprep.mubr.bf16.mxu1 %v8448_v15  ;;  %5752 = vmatprep.mubr.bf16.mxu0 %v8448_v15  ;;  %v7478_v13 = vld [vmem:[#allocation14 + $0x664] ss:$28 sps:$4 sm:$0xff]   ;;  %v7473_v16 = vld [vmem:[#allocation14 + $0x658] ss:$28 sps:$4 sm:$0xff]  }
 0x38b   :  { %5589 = vmatmul.mubr.bf16.vlgmr.msra.gmra.mrb[8].mxu1 %v8450_v18  ;;  %5753 = vmatmul.mubr.bf16.vlgmr.msra.gmra.mrb[20].mxu0 %v8450_v18 }
 0x38c   :  { %5598 = vmatpush1.bf16.msra.mxu1 %v7395_v44  ;;  %5762 = vmatpush1.bf16.msra.mxu0 %v7398_v17  ;;  %v7476_v44 = vld [vmem:[#allocation14 + $0x660] ss:$28 sps:$4 sm:$0xff]   ;;  %v7481_v17 = vld [vmem:[#allocation14 + $0x694] ss:$28 sps:$4 sm:$0xff]  }
 0x38d   :  { %5629 = vmatprep.mubr.bf16.mxu1 %v8454_v4  ;;  %5793 = vmatprep.mubr.bf16.mxu0 %v8454_v4 }
 0x38e   :  { %5599 = vmatprep.subr.bf16.mxu1 %v7403_v19  ;;  %5763 = vmatprep.subr.bf16.mxu0 %v7406_v20  ;;  %v7484_v19 = vld [vmem:[#allocation14 + $0x69c] ss:$28 sps:$4 sm:$0xff]   ;;  %v7108_v20 = vadd.f32 %v8446_v59, %v1034_v14  ;;  %v7553_v14 = vld [vmem:[#allocation14 + $0x934] ss:$28 sps:$4 sm:$0xff]  }
 0x38f   :  { %v7491_v59 = vld [vmem:[#allocation14 + $0x700] ss:$28 sps:$4 sm:$0xff]  }
 0x390   :  { %5600 = vmatpush1.bf16.msra.mxu1 %v7401_v5  ;;  %5764 = vmatpush1.bf16.msra.mxu0 %v7404_v6  ;;  %v7479_v5 = vld [vmem:[#allocation14 + $0x690] ss:$28 sps:$4 sm:$0xff]   ;;  %v7482_v6 = vld [vmem:[#allocation14 + $0x698] ss:$28 sps:$4 sm:$0xff]   ;;  %vm2673_vm10 = vcmp.gt.f32.partialorder %v7108_v20, 0.0 }
 0x391   :  { %5601 = vmatprep.subr.bf16.mxu1 %v7409_v10  ;;  %5765 = vmatprep.subr.bf16.mxu0 %v7412_v11  ;;  %v7487_v10 = vld [vmem:[#allocation14 + $0x6cc] ss:$28 sps:$4 sm:$0xff]   ;;  %v7490_v11 = vld [vmem:[#allocation14 + $0x6d4] ss:$28 sps:$4 sm:$0xff]  }
 0x394   :  { %5602 = vmatpush1.bf16.msra.mxu1 %v7407_v12  ;;  %5766 = vmatpush1.bf16.msra.mxu0 %v7410_v21  ;;  %v2681_v12 = vmul.f32 0.2, %v7108_v20  ;;  %v7485_v21 = vld [vmem:[#allocation14 + $0x6c8] ss:$28 sps:$4 sm:$0xff]  }
 0x395   :  { %5603 = vmatprep.subr.bf16.mxu1 %v7415_v23  ;;  %5767 = vmatprep.subr.bf16.mxu0 %v7418_v25  ;;  %v7488_v23 = vld [vmem:[#allocation14 + $0x6d0] ss:$28 sps:$4 sm:$0xff]   ;;  %v7493_v25 = vld [vmem:[#allocation14 + $0x704] ss:$28 sps:$4 sm:$0xff]  }
 0x398   :  { %5604 = vmatpush1.bf16.msra.mxu1 %v7413_v26  ;;  %5768 = vmatpush1.bf16.msra.mxu0 %v7416_v27  ;;  %v7496_v26 = vld [vmem:[#allocation14 + $0x70c] ss:$28 sps:$4 sm:$0xff]   ;;  %v2689_v27 = vsel %vm2673_vm10, %v7108_v20, %v2681_v12  ;;  %v7562_v20 = vld [vmem:[#allocation14 + $0x974] ss:$28 sps:$4 sm:$0xff]   ;;  %v7563_v12 = vld [vmem:[#allocation14 + $0x9a0] ss:$28 sps:$4 sm:$0xff]  }
 0x399   :  { %5605 = vmatprep.subr.bf16.mxu1 %v7421_v29  ;;  %5769 = vmatprep.subr.bf16.mxu0 %v7424_v30  ;;  %v7494_v29 = vld [vmem:[#allocation14 + $0x708] ss:$28 sps:$4 sm:$0xff]   ;;  %v8463_v30 = vpack.c.bf16 %v2689_v27, %v2689_v27  ;;  %v1045_v27 = vsub.s32 5, %v8362_v28 }
 0x39c   :  { %5606 = vmatpush1.bf16.msra.mxu1 %v7419_v31  ;;  %5770 = vmatpush1.bf16.msra.mxu0 %v7422_v32  ;;  %v7499_v31 = vld [vmem:[#allocation14 + $0x73c] ss:$28 sps:$4 sm:$0xff]   ;;  %v7502_v32 = vld [vmem:[#allocation14 + $0x744] ss:$28 sps:$4 sm:$0xff]  }
 0x39d   :  { %5607 = vmatprep.subr.bf16.mxu1 %v7427_v33  ;;  %5771 = vmatprep.subr.bf16.mxu0 %v7430_v36  ;;  %v7497_v33 = vld [vmem:[#allocation14 + $0x738] ss:$28 sps:$4 sm:$0xff]   ;;  %v7500_v36 = vld [vmem:[#allocation14 + $0x740] ss:$28 sps:$4 sm:$0xff]  }
 0x3a0   :  { %5608 = vmatpush1.bf16.msra.mxu1 %v7425_v37  ;;  %5772 = vmatpush1.bf16.msra.mxu0 %v7428_v38  ;;  %v7505_v37 = vld [vmem:[#allocation14 + $0x774] ss:$28 sps:$4 sm:$0xff]   ;;  %v7508_v38 = vld [vmem:[#allocation14 + $0x77c] ss:$28 sps:$4 sm:$0xff]  }
 0x3a1   :  { %5609 = vmatprep.subr.bf16.mxu1 %v7433_v39  ;;  %5773 = vmatprep.subr.bf16.mxu0 %v7436_v40  ;;  %v7503_v39 = vld [vmem:[#allocation14 + $0x770] ss:$28 sps:$4 sm:$0xff]   ;;  %v7506_v40 = vld [vmem:[#allocation14 + $0x778] ss:$28 sps:$4 sm:$0xff]  }
 0x3a4   :  { %5610 = vmatpush1.bf16.msra.mxu1 %v7431_v41  ;;  %5774 = vmatpush1.bf16.msra.mxu0 %v7434_v42  ;;  %v7511_v41 = vld [vmem:[#allocation14 + $0x7ac] ss:$28 sps:$4 sm:$0xff]   ;;  %v7514_v42 = vld [vmem:[#allocation14 + $0x7b4] ss:$28 sps:$4 sm:$0xff]  }
 0x3a5   :  { %5611 = vmatprep.subr.bf16.mxu1 %v7439_v45  ;;  %5775 = vmatprep.subr.bf16.mxu0 %v7442_v46  ;;  %v7509_v45 = vld [vmem:[#allocation14 + $0x7a8] ss:$28 sps:$4 sm:$0xff]   ;;  %v7512_v46 = vld [vmem:[#allocation14 + $0x7b0] ss:$28 sps:$4 sm:$0xff]  }
 0x3a8   :  { %5612 = vmatpush1.bf16.msra.mxu1 %v7437_v47  ;;  %5776 = vmatpush1.bf16.msra.mxu0 %v7440_v49  ;;  %v7517_v47 = vld [vmem:[#allocation14 + $0x7e4] ss:$28 sps:$4 sm:$0xff]   ;;  %v7520_v49 = vld [vmem:[#allocation14 + $0x7ec] ss:$28 sps:$4 sm:$0xff]  }
 0x3a9   :  { %5613 = vmatprep.subr.bf16.mxu1 %v7445_v50  ;;  %5777 = vmatprep.subr.bf16.mxu0 %v7448_v51  ;;  %v7515_v50 = vld [vmem:[#allocation14 + $0x7e0] ss:$28 sps:$4 sm:$0xff]   ;;  %v7518_v51 = vld [vmem:[#allocation14 + $0x7e8] ss:$28 sps:$4 sm:$0xff]  }
 0x3ac   :  { %5614 = vmatpush1.bf16.msra.mxu1 %v7443_v61  ;;  %5778 = vmatpush1.bf16.msra.mxu0 %v7446_v52  ;;  %v7523_v61 = vld [vmem:[#allocation14 + $0x81c] ss:$28 sps:$4 sm:$0xff]   ;;  %v7526_v52 = vld [vmem:[#allocation14 + $0x824] ss:$28 sps:$4 sm:$0xff]  }
 0x3ad   :  { %5615 = vmatprep.subr.bf16.mxu1 %v7451_v53  ;;  %5779 = vmatprep.subr.bf16.mxu0 %v7454_v55  ;;  %v7521_v53 = vld [vmem:[#allocation14 + $0x818] ss:$28 sps:$4 sm:$0xff]   ;;  %v7524_v55 = vld [vmem:[#allocation14 + $0x820] ss:$28 sps:$4 sm:$0xff]  }
 0x3b0   :  { %5616 = vmatpush1.bf16.msra.mxu1 %v7449_v56  ;;  %5780 = vmatpush1.bf16.msra.mxu0 %v7452_v57  ;;  %v7529_v56 = vld [vmem:[#allocation14 + $0x854] ss:$28 sps:$4 sm:$0xff]   ;;  %v7532_v57 = vld [vmem:[#allocation14 + $0x85c] ss:$28 sps:$4 sm:$0xff]  }
 0x3b1   :  { %5617 = vmatprep.subr.bf16.mxu1 %v7457_v58  ;;  %5781 = vmatprep.subr.bf16.mxu0 %v7460_v60  ;;  %v7527_v58 = vld [vmem:[#allocation14 + $0x850] ss:$28 sps:$4 sm:$0xff]   ;;  %v7530_v60 = vld [vmem:[#allocation14 + $0x858] ss:$28 sps:$4 sm:$0xff]  }
 0x3b4   :  { %5618 = vmatpush1.bf16.msra.mxu1 %v7455_v63  ;;  %5782 = vmatpush1.bf16.msra.mxu0 %v7458_v24  ;;  %v7535_v63 = vld [vmem:[#allocation14 + $0x88c] ss:$28 sps:$4 sm:$0xff]   ;;  %v7538_v24 = vld [vmem:[#allocation14 + $0x894] ss:$28 sps:$4 sm:$0xff]  }
 0x3b5   :  { %5619 = vmatprep.subr.bf16.mxu1 %v7463_v62  ;;  %5783 = vmatprep.subr.bf16.mxu0 %v7466_v0  ;;  %v7533_v62 = vld [vmem:[#allocation14 + $0x888] ss:$28 sps:$4 sm:$0xff]   ;;  %v7536_v0 = vld [vmem:[#allocation14 + $0x890] ss:$28 sps:$4 sm:$0xff]  }
 0x3b8   :  { %5620 = vmatpush1.bf16.msra.mxu1 %v7461_v1  ;;  %5784 = vmatpush1.bf16.msra.mxu0 %v7464_v2  ;;  %v7541_v1 = vld [vmem:[#allocation14 + $0x8c4] ss:$28 sps:$4 sm:$0xff]   ;;  %v7544_v2 = vld [vmem:[#allocation14 + $0x8cc] ss:$28 sps:$4 sm:$0xff]  }
 0x3b9   :  { %5621 = vmatprep.subr.bf16.mxu1 %v7469_v3  ;;  %5785 = vmatprep.subr.bf16.mxu0 %v7472_v7  ;;  %v7539_v3 = vld [vmem:[#allocation14 + $0x8c0] ss:$28 sps:$4 sm:$0xff]   ;;  %v7542_v7 = vld [vmem:[#allocation14 + $0x8c8] ss:$28 sps:$4 sm:$0xff]  }
 0x3bc   :  { %5622 = vmatpush1.bf16.msra.mxu1 %v7467_v8  ;;  %5786 = vmatpush1.bf16.msra.mxu0 %v7470_v22  ;;  %v7547_v8 = vld [vmem:[#allocation14 + $0x8fc] ss:$28 sps:$4 sm:$0xff]   ;;  %v7550_v22 = vld [vmem:[#allocation14 + $0x904] ss:$28 sps:$4 sm:$0xff]  }
 0x3bd   :  { %5623 = vmatprep.subr.bf16.mxu1 %v7475_v9  ;;  %5787 = vmatprep.subr.bf16.mxu0 %v7478_v13  ;;  %v7545_v9 = vld [vmem:[#allocation14 + $0x8f8] ss:$28 sps:$4 sm:$0xff]   ;;  %v7548_v13 = vld [vmem:[#allocation14 + $0x900] ss:$28 sps:$4 sm:$0xff]  }
 0x3c0   :  { %5624 = vmatpush1.bf16.msra.mxu1 %v7473_v16  ;;  %5788 = vmatpush1.bf16.msra.mxu0 %v7476_v44  ;;  %v7556_v16 = vld [vmem:[#allocation14 + $0x93c] ss:$28 sps:$4 sm:$0xff]   ;;  %v7551_v44 = vld [vmem:[#allocation14 + $0x930] ss:$28 sps:$4 sm:$0xff]  }
 0x3c1   :  { %5625 = vmatprep.subr.bf16.mxu1 %v7481_v17  ;;  %5789 = vmatprep.subr.bf16.mxu0 %v7484_v19  ;;  %v7554_v17 = vld [vmem:[#allocation14 + $0x938] ss:$28 sps:$4 sm:$0xff]   ;;  %v7559_v19 = vld [vmem:[#allocation14 + $0x96c] ss:$28 sps:$4 sm:$0xff]  }
 0x3c4   :  { %5626 = vmatpush1.bf16.msra.mxu1 %v7479_v5  ;;  %5790 = vmatpush1.bf16.msra.mxu0 %v7482_v6  ;;  %v7557_v5 = vld [vmem:[#allocation14 + $0x968] ss:$28 sps:$4 sm:$0xff]   ;;  %v7560_v6 = vld [vmem:[#allocation14 + $0x970] ss:$28 sps:$4 sm:$0xff]  }
 0x3c5   :  { %5627 = vmatprep.subr.bf16.mxu1 %v7487_v10  ;;  %5791 = vmatprep.subr.bf16.mxu0 %v7490_v11  ;;  %v7565_v10 = vld [vmem:[#allocation14 + $0x9a4] ss:$28 sps:$4 sm:$0xff]   ;;  %v7568_v11 = vld [vmem:[#allocation14 + $0x9ac] ss:$28 sps:$4 sm:$0xff]  }
 0x3c8   :  { %5628 = vmatpush1.bf16.msra.mxu1 %v7485_v21  ;;  %5792 = vmatpush1.bf16.msra.mxu0 %v7488_v23  ;;  %v7566_v21 = vld [vmem:[#allocation14 + $0x9a8] ss:$28 sps:$4 sm:$0xff]   ;;  %v7571_v23 = vld [vmem:[#allocation14 + $0x9dc] ss:$28 sps:$4 sm:$0xff]  }
 0x3c9   :  { %5638 = vmatprep.subr.bf16.mxu1 %v7493_v25  ;;  %5802 = vmatprep.subr.bf16.mxu0 %v7496_v26  ;;  %v7574_v25 = vld [vmem:[#allocation14 + $0x9e4] ss:$28 sps:$4 sm:$0xff]   ;;  %v1041_v26 = vsub.s32 4, %v8362_v28 }
 0x3cb   :  { %5630 = vmatmul.mubr.bf16.vlgmr.msra.gmra.mrb[8].mxu1 %v8463_v30  ;;  %5794 = vmatmul.mubr.bf16.vlgmr.msra.gmra.mrb[20].mxu0 %v8463_v30 }
 0x3cc   :  { %5639 = vmatpush1.bf16.msra.mxu1 %v7491_v59  ;;  %5803 = vmatpush1.bf16.msra.mxu0 %v7494_v29  ;;  %v7569_v59 = vld [vmem:[#allocation14 + $0x9d8] ss:$28 sps:$4 sm:$0xff]   ;;  %v7572_v29 = vld [vmem:[#allocation14 + $0x9e0] ss:$28 sps:$4 sm:$0xff]  }
 0x3cd   :  { %5640 = vmatprep.subr.bf16.mxu1 %v7499_v31  ;;  %5804 = vmatprep.subr.bf16.mxu0 %v7502_v32  ;;  %v1053_v31 = vsub.s32 7, %v8362_v28  ;;  %v7577_v32 = vld [vmem:[#allocation14 + $0xa14] ss:$28 sps:$4 sm:$0xff]  }
 0x3d0   :  { %5641 = vmatpush1.bf16.msra.mxu1 %v7497_v33  ;;  %5805 = vmatpush1.bf16.msra.mxu0 %v7500_v36  ;;  %v7580_v33 = vld [vmem:[#allocation14 + $0xa1c] ss:$28 sps:$4 sm:$0xff]   ;;  %v1042_v36 = vrot.slane %v8438_v54, %v1041_v26 }
 0x3d1   :  { %5642 = vmatprep.subr.bf16.mxu1 %v7505_v37  ;;  %5806 = vmatprep.subr.bf16.mxu0 %v7508_v38  ;;  %v1046_v37 = vrot.slane %v8438_v54, %v1045_v27  ;;  %v1054_v38 = vrot.slane %v8438_v54, %v1053_v31  ;;  %v7619_v31 = vld [vmem:[#allocation14 + $0xb9c] ss:$28 sps:$4 sm:$0xff]  }
 0x3d4   :  { %5643 = vmatpush1.bf16.msra.mxu1 %v7503_v39  ;;  %5807 = vmatpush1.bf16.msra.mxu0 %v7506_v40  ;;  %v7575_v39 = vld [vmem:[#allocation14 + $0xa10] ss:$28 sps:$4 sm:$0xff]   ;;  %v7578_v40 = vld [vmem:[#allocation14 + $0xa18] ss:$28 sps:$4 sm:$0xff]  }
 0x3d5   :  { %5644 = vmatprep.subr.bf16.mxu1 %v7511_v41  ;;  %5808 = vmatprep.subr.bf16.mxu0 %v7514_v42  ;;  %v7583_v42 = vld [vmem:[#allocation14 + $0xa4c] ss:$28 sps:$4 sm:$0xff]  }
 0x3d8   :  { %5645 = vmatpush1.bf16.msra.mxu1 %v7509_v45  ;;  %5809 = vmatpush1.bf16.msra.mxu0 %v7512_v46  ;;  %v7586_v45 = vld [vmem:[#allocation14 + $0xa54] ss:$28 sps:$4 sm:$0xff]  }
 0x3d9   :  { %5646 = vmatprep.subr.bf16.mxu1 %v7517_v47  ;;  %5810 = vmatprep.subr.bf16.mxu0 %v7520_v49 }
 0x3dc   :  { %5647 = vmatpush1.bf16.msra.mxu1 %v7515_v50  ;;  %5811 = vmatpush1.bf16.msra.mxu0 %v7518_v51  ;;  %v7581_v50 = vld [vmem:[#allocation14 + $0xa48] ss:$28 sps:$4 sm:$0xff]  }
 0x3dd   :  { %5648 = vmatprep.subr.bf16.mxu1 %v7523_v61  ;;  %5812 = vmatprep.subr.bf16.mxu0 %v7526_v52 }
 0x3e0   :  { %5649 = vmatpush1.bf16.msra.mxu1 %v7521_v53  ;;  %5813 = vmatpush1.bf16.msra.mxu0 %v7524_v55  ;;  %v7584_v53 = vld [vmem:[#allocation14 + $0xa50] ss:$28 sps:$4 sm:$0xff]   ;;  %v7589_v55 = vld [vmem:[#allocation14 + $0xa84] ss:$28 sps:$4 sm:$0xff]  }
 0x3e1   :  { %5650 = vmatprep.subr.bf16.mxu1 %v7529_v56  ;;  %5814 = vmatprep.subr.bf16.mxu0 %v7532_v57 }
 0x3e4   :  { %5651 = vmatpush1.bf16.msra.mxu1 %v7527_v58  ;;  %5815 = vmatpush1.bf16.msra.mxu0 %v7530_v60 }
 0x3e5   :  { %5652 = vmatprep.subr.bf16.mxu1 %v7535_v63  ;;  %5816 = vmatprep.subr.bf16.mxu0 %v7538_v24  ;;  %v7592_v24 = vld [vmem:[#allocation14 + $0xa8c] ss:$28 sps:$4 sm:$0xff]  }
 0x3e8   :  { %5653 = vmatpush1.bf16.msra.mxu1 %v7533_v62  ;;  %5817 = vmatpush1.bf16.msra.mxu0 %v7536_v0 }
 0x3e9   :  { %5654 = vmatprep.subr.bf16.mxu1 %v7541_v1  ;;  %5818 = vmatprep.subr.bf16.mxu0 %v7544_v2 }
 0x3ec   :  { %5655 = vmatpush1.bf16.msra.mxu1 %v7539_v3  ;;  %5819 = vmatpush1.bf16.msra.mxu0 %v7542_v7 }
 0x3ed   :  { %5656 = vmatprep.subr.bf16.mxu1 %v7547_v8  ;;  %5820 = vmatprep.subr.bf16.mxu0 %v7550_v22  ;;  %v7587_v8 = vld [vmem:[#allocation14 + $0xa80] ss:$28 sps:$4 sm:$0xff]   ;;  %v7590_v22 = vld [vmem:[#allocation14 + $0xa88] ss:$28 sps:$4 sm:$0xff]  }
 0x3f0   :  { %5657 = vmatpush1.bf16.msra.mxu1 %v7545_v9  ;;  %5821 = vmatpush1.bf16.msra.mxu0 %v7548_v13  ;;  %v7595_v13 = vld [vmem:[#allocation14 + $0xabc] ss:$28 sps:$4 sm:$0xff]  }
 0x3f1   :  { %5658 = vmatprep.subr.bf16.mxu1 %v7553_v14  ;;  %5822 = vmatprep.subr.bf16.mxu0 %v7556_v16  ;;  %v7598_v14 = vld [vmem:[#allocation14 + $0xac4] ss:$28 sps:$4 sm:$0xff]  }
 0x3f4   :  { %5659 = vmatpush1.bf16.msra.mxu1 %v7551_v44  ;;  %5823 = vmatpush1.bf16.msra.mxu0 %v7554_v17  ;;  %v7593_v44 = vld [vmem:[#allocation14 + $0xab8] ss:$28 sps:$4 sm:$0xff]   ;;  %v7596_v17 = vld [vmem:[#allocation14 + $0xac0] ss:$28 sps:$4 sm:$0xff]  }
 0x3f5   :  { %5660 = vmatprep.subr.bf16.mxu1 %v7559_v19  ;;  %5824 = vmatprep.subr.bf16.mxu0 %v7562_v20  ;;  %v7601_v19 = vld [vmem:[#allocation14 + $0xaf4] ss:$28 sps:$4 sm:$0xff]   ;;  %v7604_v20 = vld [vmem:[#allocation14 + $0xafc] ss:$28 sps:$4 sm:$0xff]  }
 0x3f8   :  { %5661 = vmatpush1.bf16.msra.mxu1 %v7557_v5  ;;  %5825 = vmatpush1.bf16.msra.mxu0 %v7560_v6  ;;  %v7599_v5 = vld [vmem:[#allocation14 + $0xaf0] ss:$28 sps:$4 sm:$0xff]   ;;  %v7602_v6 = vld [vmem:[#allocation14 + $0xaf8] ss:$28 sps:$4 sm:$0xff]  }
 0x3f9   :  { %5662 = vmatprep.subr.bf16.mxu1 %v7565_v10  ;;  %5826 = vmatprep.subr.bf16.mxu0 %v7568_v11  ;;  %v7607_v10 = vld [vmem:[#allocation14 + $0xb2c] ss:$28 sps:$4 sm:$0xff]   ;;  %v7610_v11 = vld [vmem:[#allocation14 + $0xb34] ss:$28 sps:$4 sm:$0xff]  }
 0x3fc   :  { %5663 = vmatpush1.bf16.msra.mxu1 %v7563_v12  ;;  %5827 = vmatpush1.bf16.msra.mxu0 %v7566_v21  ;;  %v7605_v12 = vld [vmem:[#allocation14 + $0xb28] ss:$28 sps:$4 sm:$0xff]   ;;  %v7608_v21 = vld [vmem:[#allocation14 + $0xb30] ss:$28 sps:$4 sm:$0xff]  }
 0x3fd   :  { %5664 = vmatprep.subr.bf16.mxu1 %v7571_v23  ;;  %5828 = vmatprep.subr.bf16.mxu0 %v7574_v25  ;;  %v7613_v23 = vld [vmem:[#allocation14 + $0xb64] ss:$28 sps:$4 sm:$0xff]   ;;  %v7616_v25 = vld [vmem:[#allocation14 + $0xb6c] ss:$28 sps:$4 sm:$0xff]  }
 0x400   :  { %5665 = vmatpush1.bf16.msra.mxu1 %v7569_v59  ;;  %5829 = vmatpush1.bf16.msra.mxu0 %v7572_v29  ;;  %v7611_v59 = vld [vmem:[#allocation14 + $0xb60] ss:$28 sps:$4 sm:$0xff]   ;;  %v7614_v29 = vld [vmem:[#allocation14 + $0xb68] ss:$28 sps:$4 sm:$0xff]  }
 0x401   :  { %v2582_v41 = vpop.f32.mrb[4].mxu1  ;;  %5666 = vmatprep.subr.bf16.mxu1 %v7577_v32  ;;  %5830 = vmatprep.subr.bf16.mxu0 %v7580_v33  ;;  %v7622_v32 = vld [vmem:[#allocation14 + $0xba4] ss:$28 sps:$4 sm:$0xff]   ;;  %v7617_v33 = vld [vmem:[#allocation14 + $0xb98] ss:$28 sps:$4 sm:$0xff]  }
 0x402   :  { %v7110_v46 = vadd.f32 %v2582_v41, %v1042_v36  ;;  %v8477_v47 = vpop.f32.mrb[16].mxu0  ;;  %v2584_v49 = vpop.f32.mrb[5].mxu1  ;;  %v7620_v36 = vld [vmem:[#allocation14 + $0xba0] ss:$28 sps:$4 sm:$0xff]   ;;  %v7631_v41 = vld [vmem:[#allocation14 + $0xc0c] ss:$28 sps:$4 sm:$0xff]  }
 0x403   :  { %v7111_v51 = vadd.f32 %v2584_v49, %v1046_v37  ;;  %v2666_v61 = vpop.f32.mrb[17].mxu0  ;;  %v2586_v52 = vpop.f32.mrb[6].mxu1  ;;  %v7625_v37 = vld [vmem:[#allocation14 + $0xbd4] ss:$28 sps:$4 sm:$0xff]   ;;  %v7637_v49 = vld [vmem:[#allocation14 + $0xc44] ss:$28 sps:$4 sm:$0xff]  }
 0x404   :  { %vm2675_vm11 = vcmp.gt.f32.partialorder %v7110_v46, 0.0  ;;  %v2683_v56 = vmul.f32 0.2, %v7110_v46  ;;  %v7113_v57 = vadd.f32 %v2666_v61, %v1054_v38  ;;  %v2668_v58 = vpop.f32.mrb[18].mxu0  ;;  %5667 = vmatpush1.bf16.msra.mxu1 %v7575_v39  ;;  %5831 = vmatpush1.bf16.msra.mxu0 %v7578_v40  ;;  %v2587_v60 = vpop.f32.mrb[7].mxu1 }
 0x405   :  { %vm2676_vm12 = vcmp.gt.f32.partialorder %v7111_v51, 0.0  ;;  %v2684_v63 = vmul.f32 0.2, %v7111_v51  ;;  %5668 = vmatprep.subr.bf16.mxu1 %v7583_v42  ;;  %5832 = vmatprep.subr.bf16.mxu0 %v7586_v45  ;;  %v2669_v1 = vpop.f32.mrb[19].mxu0  ;;  %v7628_v38 = vld [vmem:[#allocation14 + $0xbdc] ss:$28 sps:$4 sm:$0xff]  }
 0x406   :  { %v2691_v62 = vsel %vm2675_vm11, %v7110_v46, %v2683_v56  ;;  %vm2678_vm13 = vcmp.gt.f32.partialorder %v7113_v57, 0.0  ;;  %v2686_v0 = vmul.f32 0.2, %v7113_v57  ;;  %v7623_v39 = vld [vmem:[#allocation14 + $0xbd0] ss:$28 sps:$4 sm:$0xff]  }
 0x407   :  { %v2692_v2 = vsel %vm2676_vm12, %v7111_v51, %v2684_v63  ;;  %v8481_v9 = vpack.c.bf16 %v2691_v62, %v2691_v62  ;;  %v7626_v40 = vld [vmem:[#allocation14 + $0xbd8] ss:$28 sps:$4 sm:$0xff]   ;;  %v7629_v45 = vld [vmem:[#allocation14 + $0xc08] ss:$28 sps:$4 sm:$0xff]   ;;  %v7632_v46 = vld [vmem:[#allocation14 + $0xc10] ss:$28 sps:$4 sm:$0xff]  }
 0x408   :  { %v8479_v3 = vpack.c.bf16 %v2692_v2, %v2692_v2  ;;  %v2694_v7 = vsel %vm2678_vm13, %v7113_v57, %v2686_v0  ;;  %5669 = vmatpush1.bf16.msra.mxu1 %v7581_v50  ;;  %5833 = vmatpush1.bf16.msra.mxu0 %v7584_v53  ;;  %v7634_v42 = vld [vmem:[#allocation14 + $0xc14] ss:$28 sps:$4 sm:$0xff]   ;;  %v7640_v50 = vld [vmem:[#allocation14 + $0xc4c] ss:$28 sps:$4 sm:$0xff]   ;;  %v7635_v51 = vld [vmem:[#allocation14 + $0xc40] ss:$28 sps:$4 sm:$0xff]  }
 0x409   :  { %5679 = vmatprep.subr.bf16.mxu1 %v7589_v55  ;;  %5843 = vmatprep.subr.bf16.mxu0 %v7592_v24  ;;  %v8485_v16 = vpack.c.bf16 %v2694_v7, %v2694_v7  ;;  %v7638_v61 = vld [vmem:[#allocation14 + $0xc48] ss:$28 sps:$4 sm:$0xff]   ;;  %v7643_v52 = vld [vmem:[#allocation14 + $0xc7c] ss:$28 sps:$4 sm:$0xff]   ;;  %v7649_v57 = vld [vmem:[#allocation14 + $0xcb4] ss:$28 sps:$4 sm:$0xff]  }
 0x40a   :  { %5670 = vmatprep.mubr.bf16.mxu1 %v8479_v3  ;;  %5834 = vmatprep.mubr.bf16.mxu0 %v8479_v3  ;;  %v7646_v53 = vld [vmem:[#allocation14 + $0xc84] ss:$28 sps:$4 sm:$0xff]   ;;  %v7641_v55 = vld [vmem:[#allocation14 + $0xc78] ss:$28 sps:$4 sm:$0xff]   ;;  %v7647_v60 = vld [vmem:[#allocation14 + $0xcb0] ss:$28 sps:$4 sm:$0xff]  }
 0x40b   :  { %5671 = vmatmul.mubr.bf16.vlgmr.msra.gmra.mrb[8].mxu1 %v8481_v9  ;;  %5835 = vmatmul.mubr.bf16.vlgmr.msra.gmra.mrb[20].mxu0 %v8481_v9  ;;  %v7644_v56 = vld [vmem:[#allocation14 + $0xc80] ss:$28 sps:$4 sm:$0xff]   ;;  %v7650_v63 = vld [vmem:[#allocation14 + $0xcb8] ss:$28 sps:$4 sm:$0xff]   ;;  %v7655_v24 = vld [vmem:[#allocation14 + $0xcec] ss:$28 sps:$4 sm:$0xff]  }
 0x40c   :  { %5680 = vmatpush1.bf16.msra.mxu1 %v7587_v8  ;;  %5844 = vmatpush1.bf16.msra.mxu0 %v7590_v22  ;;  %v7652_v58 = vld [vmem:[#allocation14 + $0xcbc] ss:$28 sps:$4 sm:$0xff]   ;;  %v7658_v62 = vld [vmem:[#allocation14 + $0xcf4] ss:$28 sps:$4 sm:$0xff]   ;;  %v7653_v0 = vld [vmem:[#allocation14 + $0xce8] ss:$28 sps:$4 sm:$0xff]  }
 0x40d   :  { %5711 = vmatprep.mubr.bf16.mxu1 %v8485_v16  ;;  %5875 = vmatprep.mubr.bf16.mxu0 %v8485_v16  ;;  %v7656_v1 = vld [vmem:[#allocation14 + $0xcf0] ss:$28 sps:$4 sm:$0xff]   ;;  %v7661_v2 = vld [vmem:[#allocation14 + $0xd24] ss:$28 sps:$4 sm:$0xff]   ;;  %v1049_v8 = vsub.s32 6, %v8362_v28 }
 0x40e   :  { %5681 = vmatprep.subr.bf16.mxu1 %v7595_v13  ;;  %5845 = vmatprep.subr.bf16.mxu0 %v7598_v14  ;;  %v7664_v7 = vld [vmem:[#allocation14 + $0xd2c] ss:$28 sps:$4 sm:$0xff]   ;;  %v7659_v22 = vld [vmem:[#allocation14 + $0xd20] ss:$28 sps:$4 sm:$0xff]  }
 0x40f   :  { %v7662_v13 = vld [vmem:[#allocation14 + $0xd28] ss:$28 sps:$4 sm:$0xff]   ;;  %v7667_v14 = vld [vmem:[#allocation14 + $0xd5c] ss:$28 sps:$4 sm:$0xff]  }
 0x410   :  { %5682 = vmatpush1.bf16.msra.mxu1 %v7593_v44  ;;  %5846 = vmatpush1.bf16.msra.mxu0 %v7596_v17  ;;  %v7670_v44 = vld [vmem:[#allocation14 + $0xd64] ss:$28 sps:$4 sm:$0xff]   ;;  %v1050_v17 = vrot.slane %v8438_v54, %v1049_v8 }
 0x411   :  { %5683 = vmatprep.subr.bf16.mxu1 %v7601_v19  ;;  %5847 = vmatprep.subr.bf16.mxu0 %v7604_v20  ;;  %v7665_v19 = vld [vmem:[#allocation14 + $0xd58] ss:$28 sps:$4 sm:$0xff]   ;;  %v7668_v20 = vld [vmem:[#allocation14 + $0xd60] ss:$28 sps:$4 sm:$0xff]   ;;  %v7677_v54 = vld [vmem:[#allocation14 + $0xdc8] ss:$28 sps:$4 sm:$0xff]  }
 0x414   :  { %5684 = vmatpush1.bf16.msra.mxu1 %v7599_v5  ;;  %5848 = vmatpush1.bf16.msra.mxu0 %v7602_v6  ;;  %v7673_v5 = vld [vmem:[#allocation14 + $0xd94] ss:$28 sps:$4 sm:$0xff]   ;;  %v7676_v6 = vld [vmem:[#allocation14 + $0xd9c] ss:$28 sps:$4 sm:$0xff]  }
 0x415   :  { %5685 = vmatprep.subr.bf16.mxu1 %v7607_v10  ;;  %5849 = vmatprep.subr.bf16.mxu0 %v7610_v11  ;;  %v7112_v10 = vadd.f32 %v8477_v47, %v1050_v17  ;;  %v7671_v11 = vld [vmem:[#allocation14 + $0xd90] ss:$28 sps:$4 sm:$0xff]   ;;  %v7727_v17 = vld [vmem:[#allocation14 + $0x398] ss:$28 sps:$4 sm:$0xff]  }
 0x416   :  { %v7683_v47 = vld [vmem:[#allocation14 + $0x10] ss:$28 sps:$4 sm:$0xff]  }
 0x417   :  { %vm2677_vm14 = vcmp.gt.f32.partialorder %v7112_v10, 0.0 }
 0x418   :  { %5686 = vmatpush1.bf16.msra.mxu1 %v7605_v12  ;;  %5850 = vmatpush1.bf16.msra.mxu0 %v7608_v21  ;;  %v7674_v12 = vld [vmem:[#allocation14 + $0xd98] ss:$28 sps:$4 sm:$0xff]   ;;  %v7679_v21 = vld [vmem:[#allocation14 + $0xdcc] ss:$28 sps:$4 sm:$0xff]  }
 0x419   :  { %5687 = vmatprep.subr.bf16.mxu1 %v7613_v23  ;;  %5851 = vmatprep.subr.bf16.mxu0 %v7616_v25  ;;  %v7682_v23 = vld [vmem:[#allocation14 + $0xdd4] ss:$28 sps:$4 sm:$0xff]   ;;  %v2685_v25 = vmul.f32 0.2, %v7112_v10 }
 0x41c   :  { %5688 = vmatpush1.bf16.msra.mxu1 %v7611_v59  ;;  %5852 = vmatpush1.bf16.msra.mxu0 %v7614_v29  ;;  %v7680_v59 = vld [vmem:[#allocation14 + $0xdd0] ss:$28 sps:$4 sm:$0xff]  }
 0x41d   :  { %5689 = vmatprep.subr.bf16.mxu1 %v7619_v31  ;;  %5853 = vmatprep.subr.bf16.mxu0 %v7622_v32  ;;  %v7685_v29 = vld [vmem:[#allocation14 + $0x14] ss:$28 sps:$4 sm:$0xff]   ;;  %v2693_v32 = vsel %vm2677_vm14, %v7112_v10, %v2685_v25  ;;  %v7735_v10 = vld [vmem:[#allocation14 + $0x244] ss:$28 sps:$4 sm:$0xff]  }
 0x41e   :  { %v7686_v31 = vld [vmem:[#allocation14 + $0x1d8] ss:$28 sps:$4 sm:$0xff]   ;;  %v7741_v25 = vld [vmem:[#allocation14 + $0x600] ss:$28 sps:$4 sm:$0xff]  }
 0x420   :  { %5690 = vmatpush1.bf16.msra.mxu1 %v7617_v33  ;;  %5854 = vmatpush1.bf16.msra.mxu0 %v7620_v36  ;;  %v8496_v33 = vpack.c.bf16 %v2693_v32, %v2693_v32  ;;  %v7687_v36 = vld [vmem:[#allocation14 + $0x18] ss:$28 sps:$4 sm:$0xff]   ;;  %v7743_v32 = vld [vmem:[#allocation14 + $0x2b0] ss:$28 sps:$4 sm:$0xff]  }
 0x421   :  { %5691 = vmatprep.subr.bf16.mxu1 %v7625_v37  ;;  %5855 = vmatprep.subr.bf16.mxu0 %v7628_v38  ;;  %v7690_v37 = vld [vmem:[#allocation14 + $0x4c] ss:$28 sps:$4 sm:$0xff]  }
 0x422   :  { %v7691_v38 = vld [vmem:[#allocation14 + $0x210] ss:$28 sps:$4 sm:$0xff]  }
 0x424   :  { %5692 = vmatpush1.bf16.msra.mxu1 %v7623_v39  ;;  %5856 = vmatpush1.bf16.msra.mxu0 %v7626_v40  ;;  %v7688_v39 = vld [vmem:[#allocation14 + $0x48] ss:$28 sps:$4 sm:$0xff]   ;;  %v7692_v40 = vld [vmem:[#allocation14 + $0x50] ss:$28 sps:$4 sm:$0xff]  }
 0x425   :  { %5693 = vmatprep.subr.bf16.mxu1 %v7631_v41  ;;  %5857 = vmatprep.subr.bf16.mxu0 %v7634_v42  ;;  %v7695_v41 = vld [vmem:[#allocation14 + $0x84] ss:$28 sps:$4 sm:$0xff]  }
 0x426   :  { %v7696_v42 = vld [vmem:[#allocation14 + $0x248] ss:$28 sps:$4 sm:$0xff]  }
 0x428   :  { %5694 = vmatpush1.bf16.msra.mxu1 %v7629_v45  ;;  %5858 = vmatpush1.bf16.msra.mxu0 %v7632_v46  ;;  %v7693_v45 = vld [vmem:[#allocation14 + $0x80] ss:$28 sps:$4 sm:$0xff]   ;;  %v7697_v46 = vld [vmem:[#allocation14 + $0x88] ss:$28 sps:$4 sm:$0xff]  }
 0x429   :  { %5695 = vmatprep.subr.bf16.mxu1 %v7637_v49  ;;  %5859 = vmatprep.subr.bf16.mxu0 %v7640_v50  ;;  %v7700_v49 = vld [vmem:[#allocation14 + $0xbc] ss:$28 sps:$4 sm:$0xff]  }
 0x42a   :  { %v7701_v50 = vld [vmem:[#allocation14 + $0x280] ss:$28 sps:$4 sm:$0xff]  }
 0x42c   :  { %5696 = vmatpush1.bf16.msra.mxu1 %v7635_v51  ;;  %5860 = vmatpush1.bf16.msra.mxu0 %v7638_v61  ;;  %v7698_v51 = vld [vmem:[#allocation14 + $0xb8] ss:$28 sps:$4 sm:$0xff]   ;;  %v7702_v61 = vld [vmem:[#allocation14 + $0xc0] ss:$28 sps:$4 sm:$0xff]  }
 0x42d   :  { %5697 = vmatprep.subr.bf16.mxu1 %v7643_v52  ;;  %5861 = vmatprep.subr.bf16.mxu0 %v7646_v53  ;;  %v7705_v52 = vld [vmem:[#allocation14 + $0xf4] ss:$28 sps:$4 sm:$0xff]  }
 0x42e   :  { %v7703_v53 = vld [vmem:[#allocation14 + $0xf0] ss:$28 sps:$4 sm:$0xff]  }
 0x430   :  { %5698 = vmatpush1.bf16.msra.mxu1 %v7641_v55  ;;  %5862 = vmatpush1.bf16.msra.mxu0 %v7644_v56  ;;  %v7707_v55 = vld [vmem:[#allocation14 + $0xf8] ss:$28 sps:$4 sm:$0xff]   ;;  %v7710_v56 = vld [vmem:[#allocation14 + $0x12c] ss:$28 sps:$4 sm:$0xff]  }
 0x431   :  { %5699 = vmatprep.subr.bf16.mxu1 %v7649_v57  ;;  %5863 = vmatprep.subr.bf16.mxu0 %v7652_v58  ;;  %v7711_v57 = vld [vmem:[#allocation14 + $0x2f0] ss:$28 sps:$4 sm:$0xff]   ;;  %v7708_v58 = vld [vmem:[#allocation14 + $0x128] ss:$28 sps:$4 sm:$0xff]  }
 0x434   :  { %5700 = vmatpush1.bf16.msra.mxu1 %v7647_v60  ;;  %5864 = vmatpush1.bf16.msra.mxu0 %v7650_v63  ;;  %v7712_v60 = vld [vmem:[#allocation14 + $0x130] ss:$28 sps:$4 sm:$0xff]   ;;  %v7715_v63 = vld [vmem:[#allocation14 + $0x164] ss:$28 sps:$4 sm:$0xff]  }
 0x435   :  { %5701 = vmatprep.subr.bf16.mxu1 %v7655_v24  ;;  %5865 = vmatprep.subr.bf16.mxu0 %v7658_v62  ;;  %v7716_v24 = vld [vmem:[#allocation14 + $0x328] ss:$28 sps:$4 sm:$0xff]   ;;  %v7713_v62 = vld [vmem:[#allocation14 + $0x160] ss:$28 sps:$4 sm:$0xff]  }
 0x438   :  { %5702 = vmatpush1.bf16.msra.mxu1 %v7653_v0  ;;  %5866 = vmatpush1.bf16.msra.mxu0 %v7656_v1  ;;  %v7717_v0 = vld [vmem:[#allocation14 + $0x168] ss:$28 sps:$4 sm:$0xff]   ;;  %v7720_v1 = vld [vmem:[#allocation14 + $0x19c] ss:$28 sps:$4 sm:$0xff]  }
 0x439   :  { %5703 = vmatprep.subr.bf16.mxu1 %v7661_v2  ;;  %5867 = vmatprep.subr.bf16.mxu0 %v7664_v7  ;;  %v7721_v2 = vld [vmem:[#allocation14 + $0x360] ss:$28 sps:$4 sm:$0xff]   ;;  %v7718_v7 = vld [vmem:[#allocation14 + $0x198] ss:$28 sps:$4 sm:$0xff]  }
 0x43c   :  { %5704 = vmatpush1.bf16.msra.mxu1 %v7659_v22  ;;  %5868 = vmatpush1.bf16.msra.mxu0 %v7662_v13  ;;  %v7722_v22 = vld [vmem:[#allocation14 + $0x1a0] ss:$28 sps:$4 sm:$0xff]   ;;  %v7725_v13 = vld [vmem:[#allocation14 + $0x1d4] ss:$28 sps:$4 sm:$0xff]  }
 0x43d   :  { %5705 = vmatprep.subr.bf16.mxu1 %v7667_v14  ;;  %5869 = vmatprep.subr.bf16.mxu0 %v7670_v44  ;;  %v7726_v14 = vld [vmem:[#allocation14 + $0x558] ss:$28 sps:$4 sm:$0xff]   ;;  %v7723_v44 = vld [vmem:[#allocation14 + $0x1d0] ss:$28 sps:$4 sm:$0xff]  }
 0x440   :  { %5706 = vmatpush1.bf16.msra.mxu1 %v7665_v19  ;;  %5870 = vmatpush1.bf16.msra.mxu0 %v7668_v20  ;;  %v7730_v19 = vld [vmem:[#allocation14 + $0x20c] ss:$28 sps:$4 sm:$0xff]  }
 0x441   :  { %5707 = vmatprep.subr.bf16.mxu1 %v7673_v5  ;;  %5871 = vmatprep.subr.bf16.mxu0 %v7676_v6  ;;  %v7731_v20 = vld [vmem:[#allocation14 + $0x590] ss:$28 sps:$4 sm:$0xff]   ;;  %v7728_v5 = vld [vmem:[#allocation14 + $0x208] ss:$28 sps:$4 sm:$0xff]  }
 0x442   :  { %v7732_v6 = vld [vmem:[#allocation14 + $0x3d0] ss:$28 sps:$4 sm:$0xff]  }
 0x444   :  { %5708 = vmatpush1.bf16.msra.mxu1 %v7671_v11  ;;  %5872 = vmatpush1.bf16.msra.mxu0 %v7674_v12  ;;  %v7736_v11 = vld [vmem:[#allocation14 + $0x5c8] ss:$28 sps:$4 sm:$0xff]   ;;  %v7733_v12 = vld [vmem:[#allocation14 + $0x240] ss:$28 sps:$4 sm:$0xff]  }
 0x445   :  { %5709 = vmatprep.subr.bf16.mxu1 %v7679_v21  ;;  %5873 = vmatprep.subr.bf16.mxu0 %v7682_v23  ;;  %v7737_v21 = vld [vmem:[#allocation14 + $0x408] ss:$28 sps:$4 sm:$0xff]   ;;  %v7740_v23 = vld [vmem:[#allocation14 + $0x27c] ss:$28 sps:$4 sm:$0xff]  }
 0x448   :  { %5710 = vmatpush1.bf16.msra.mxu1 %v7677_v54  ;;  %5874 = vmatpush1.bf16.msra.mxu0 %v7680_v59  ;;  %v7738_v54 = vld [vmem:[#allocation14 + $0x278] ss:$28 sps:$4 sm:$0xff]   ;;  %v7742_v59 = vld [vmem:[#allocation14 + $0x440] ss:$28 sps:$4 sm:$0xff]  }
 0x449   :  { %5884 = vmatprep.subr.bf16.mxu1 %v7685_v29  ;;  %7018 = vmatprep.subr.bf16.mxu0 %v7686_v31  ;;  %v7745_v29 = vld [vmem:[#allocation14 + $0x2b4] ss:$28 sps:$4 sm:$0xff]  }
 0x44a   :  { %v7746_v31 = vld [vmem:[#allocation14 + $0x638] ss:$28 sps:$4 sm:$0xff]  }
 0x44b   :  { %5712 = vmatmul.mubr.bf16.vlgmr.msra.gmra.mrb[8].mxu1 %v8496_v33  ;;  %5876 = vmatmul.mubr.bf16.vlgmr.msra.gmra.mrb[20].mxu0 %v8496_v33 }
 0x44c   :  { %5885 = vmatpush1.bf16.msra.mxu1 %v7683_v47  ;;  %5916 = vmatprep.mubr.bf16.mxu1 %v8448_v15  ;;  %v7747_v47 = vld [vmem:[#allocation14 + $0x478] ss:$28 sps:$4 sm:$0xff]  }
 0x44d   :  { %7019 = vmatpush3.bf16.msra.mxu0 %v7687_v36  ;;  %6080 = vmatprep.mubr.bf16.mxu0 %v8448_v15  ;;  %v7706_v15 = vld [vmem:[#allocation14 + $0x2b8] ss:$28 sps:$4 sm:$0xff]   ;;  %v7750_v36 = vld [vmem:[#allocation14 + $0x2ec] ss:$28 sps:$4 sm:$0xff]  }
 0x44e   :  { %5886 = vmatprep.subr.bf16.mxu1 %v7690_v37  ;;  %7020 = vmatprep.subr.bf16.mxu0 %v7691_v38  ;;  %v7751_v37 = vld [vmem:[#allocation14 + $0x670] ss:$28 sps:$4 sm:$0xff]   ;;  %v7748_v38 = vld [vmem:[#allocation14 + $0x2e8] ss:$28 sps:$4 sm:$0xff]  }
 0x450   :  { %5887 = vmatpush1.bf16.msra.mxu1 %v7688_v39  ;;  %v7752_v39 = vld [vmem:[#allocation14 + $0x4b0] ss:$28 sps:$4 sm:$0xff]  }
 0x451   :  { %7021 = vmatpush3.bf16.msra.mxu0 %v7692_v40  ;;  %5888 = vmatprep.subr.bf16.mxu1 %v7695_v41  ;;  %v7755_v40 = vld [vmem:[#allocation14 + $0x324] ss:$28 sps:$4 sm:$0xff]  }
 0x452   :  { %7022 = vmatprep.subr.bf16.mxu0 %v7696_v42  ;;  %v7756_v41 = vld [vmem:[#allocation14 + $0x6a8] ss:$28 sps:$4 sm:$0xff]   ;;  %v7753_v42 = vld [vmem:[#allocation14 + $0x320] ss:$28 sps:$4 sm:$0xff]  }
 0x454   :  { %5889 = vmatpush1.bf16.msra.mxu1 %v7693_v45  ;;  %v7757_v45 = vld [vmem:[#allocation14 + $0x4e8] ss:$28 sps:$4 sm:$0xff]  }
 0x455   :  { %7023 = vmatpush3.bf16.msra.mxu0 %v7697_v46  ;;  %5890 = vmatprep.subr.bf16.mxu1 %v7700_v49  ;;  %v7760_v46 = vld [vmem:[#allocation14 + $0x35c] ss:$28 sps:$4 sm:$0xff]  }
 0x456   :  { %7024 = vmatprep.subr.bf16.mxu0 %v7701_v50  ;;  %v7761_v49 = vld [vmem:[#allocation14 + $0x6e0] ss:$28 sps:$4 sm:$0xff]   ;;  %v7758_v50 = vld [vmem:[#allocation14 + $0x358] ss:$28 sps:$4 sm:$0xff]  }
 0x458   :  { %5891 = vmatpush1.bf16.msra.mxu1 %v7698_v51  ;;  %v7762_v51 = vld [vmem:[#allocation14 + $0x520] ss:$28 sps:$4 sm:$0xff]  }
 0x459   :  { %7025 = vmatpush3.bf16.msra.mxu0 %v7702_v61  ;;  %5892 = vmatprep.subr.bf16.mxu1 %v7705_v52  ;;  %v7765_v61 = vld [vmem:[#allocation14 + $0x394] ss:$28 sps:$4 sm:$0xff]  }
 0x45a   :  { %7026 = vmatprep.subr.bf16.mxu0 %v7706_v15  ;;  %v7766_v52 = vld [vmem:[#allocation14 + $0x8d8] ss:$28 sps:$4 sm:$0xff]   ;;  %v7763_v15 = vld [vmem:[#allocation14 + $0x390] ss:$28 sps:$4 sm:$0xff]  }
 0x45c   :  { %5893 = vmatpush1.bf16.msra.mxu1 %v7703_v53  ;;  %v7767_v53 = vld [vmem:[#allocation14 + $0x718] ss:$28 sps:$4 sm:$0xff]  }
 0x45d   :  { %7027 = vmatpush3.bf16.msra.mxu0 %v7707_v55  ;;  %5894 = vmatprep.subr.bf16.mxu1 %v7710_v56  ;;  %v7770_v55 = vld [vmem:[#allocation14 + $0x3cc] ss:$28 sps:$4 sm:$0xff]  }
 0x45e   :  { %7028 = vmatprep.subr.bf16.mxu0 %v7711_v57  ;;  %v7771_v56 = vld [vmem:[#allocation14 + $0x910] ss:$28 sps:$4 sm:$0xff]   ;;  %v7768_v57 = vld [vmem:[#allocation14 + $0x3c8] ss:$28 sps:$4 sm:$0xff]  }
 0x460   :  { %5895 = vmatpush1.bf16.msra.mxu1 %v7708_v58  ;;  %v7772_v58 = vld [vmem:[#allocation14 + $0x750] ss:$28 sps:$4 sm:$0xff]  }
 0x461   :  { %7029 = vmatpush3.bf16.msra.mxu0 %v7712_v60  ;;  %5896 = vmatprep.subr.bf16.mxu1 %v7715_v63  ;;  %v7775_v60 = vld [vmem:[#allocation14 + $0x404] ss:$28 sps:$4 sm:$0xff]  }
 0x462   :  { %7030 = vmatprep.subr.bf16.mxu0 %v7716_v24  ;;  %v7776_v63 = vld [vmem:[#allocation14 + $0x948] ss:$28 sps:$4 sm:$0xff]   ;;  %v7773_v24 = vld [vmem:[#allocation14 + $0x400] ss:$28 sps:$4 sm:$0xff]  }
 0x464   :  { %5897 = vmatpush1.bf16.msra.mxu1 %v7713_v62  ;;  %v7780_v62 = vld [vmem:[#allocation14 + $0x43c] ss:$28 sps:$4 sm:$0xff]  }
 0x465   :  { %7031 = vmatpush3.bf16.msra.mxu0 %v7717_v0  ;;  %5898 = vmatprep.subr.bf16.mxu1 %v7720_v1  ;;  %v7781_v0 = vld [vmem:[#allocation14 + $0x980] ss:$28 sps:$4 sm:$0xff]   ;;  %v7778_v1 = vld [vmem:[#allocation14 + $0x438] ss:$28 sps:$4 sm:$0xff]  }
 0x466   :  { %7032 = vmatprep.subr.bf16.mxu0 %v7721_v2  ;;  %v7785_v2 = vld [vmem:[#allocation14 + $0x474] ss:$28 sps:$4 sm:$0xff]  }
 0x468   :  { %5899 = vmatpush1.bf16.msra.mxu1 %v7718_v7  ;;  %v7786_v7 = vld [vmem:[#allocation14 + $0x9b8] ss:$28 sps:$4 sm:$0xff]  }
 0x469   :  { %7033 = vmatpush3.bf16.msra.mxu0 %v7722_v22  ;;  %5900 = vmatprep.subr.bf16.mxu1 %v7725_v13  ;;  %v7783_v22 = vld [vmem:[#allocation14 + $0x470] ss:$28 sps:$4 sm:$0xff]   ;;  %v7787_v13 = vld [vmem:[#allocation14 + $0x7f8] ss:$28 sps:$4 sm:$0xff]  }
 0x46a   :  { %7040 = vmatprep.subr.bf16.mxu0 %v7726_v14  ;;  %v7790_v14 = vld [vmem:[#allocation14 + $0x4ac] ss:$28 sps:$4 sm:$0xff]  }
 0x46c   :  { %6081 = vmatmul.mubr.bf16.vlgmr.msra.gmra.mrb[24].mxu0 %v8450_v18  ;;  %5901 = vmatpush1.bf16.msra.mxu1 %v7723_v44  ;;  %v7791_v44 = vld [vmem:[#allocation14 + $0x9f0] ss:$28 sps:$4 sm:$0xff]  }
 0x46d   :  { %7041 = vmatpush3.bf16.msra.mxu0 %v7727_v17  ;;  %6120 = vmatprep.mubr.bf16.mxu0 %v8454_v4  ;;  %v7788_v17 = vld [vmem:[#allocation14 + $0x4a8] ss:$28 sps:$4 sm:$0xff]  }
 0x46e   :  { %5902 = vmatprep.subr.bf16.mxu1 %v7730_v19  ;;  %7042 = vmatprep.subr.bf16.mxu0 %v7731_v20  ;;  %v7792_v19 = vld [vmem:[#allocation14 + $0x830] ss:$28 sps:$4 sm:$0xff]   ;;  %v7795_v20 = vld [vmem:[#allocation14 + $0x4e4] ss:$28 sps:$4 sm:$0xff]  }
 0x470   :  { %5903 = vmatpush1.bf16.msra.mxu1 %v7728_v5  ;;  %v7796_v5 = vld [vmem:[#allocation14 + $0xa28] ss:$28 sps:$4 sm:$0xff]  }
 0x471   :  { %7043 = vmatpush3.bf16.msra.mxu0 %v7732_v6  ;;  %5904 = vmatprep.subr.bf16.mxu1 %v7735_v10  ;;  %v7793_v6 = vld [vmem:[#allocation14 + $0x4e0] ss:$28 sps:$4 sm:$0xff]   ;;  %v7797_v10 = vld [vmem:[#allocation14 + $0x868] ss:$28 sps:$4 sm:$0xff]  }
 0x472   :  { %7044 = vmatprep.subr.bf16.mxu0 %v7736_v11  ;;  %v7800_v11 = vld [vmem:[#allocation14 + $0x51c] ss:$28 sps:$4 sm:$0xff]  }
 0x474   :  { %5905 = vmatpush1.bf16.msra.mxu1 %v7733_v12  ;;  %v7801_v12 = vld [vmem:[#allocation14 + $0xa60] ss:$28 sps:$4 sm:$0xff]  }
 0x475   :  { %7045 = vmatpush3.bf16.msra.mxu0 %v7737_v21  ;;  %5906 = vmatprep.subr.bf16.mxu1 %v7740_v23  ;;  %v7798_v21 = vld [vmem:[#allocation14 + $0x518] ss:$28 sps:$4 sm:$0xff]   ;;  %v7802_v23 = vld [vmem:[#allocation14 + $0x8a0] ss:$28 sps:$4 sm:$0xff]  }
 0x476   :  { %7046 = vmatprep.subr.bf16.mxu0 %v7741_v25  ;;  %v7805_v25 = vld [vmem:[#allocation14 + $0x554] ss:$28 sps:$4 sm:$0xff]  }
 0x478   :  { %5907 = vmatpush1.bf16.msra.mxu1 %v7738_v54  ;;  %v7806_v54 = vld [vmem:[#allocation14 + $0xc58] ss:$28 sps:$4 sm:$0xff]  }
 0x479   :  { %7047 = vmatpush3.bf16.msra.mxu0 %v7742_v59  ;;  %5908 = vmatprep.subr.bf16.mxu1 %v7745_v29  ;;  %v7803_v59 = vld [vmem:[#allocation14 + $0x550] ss:$28 sps:$4 sm:$0xff]   ;;  %v7807_v29 = vld [vmem:[#allocation14 + $0xa98] ss:$28 sps:$4 sm:$0xff]  }
 0x47a   :  { %7048 = vmatprep.subr.bf16.mxu0 %v7746_v31  ;;  %v7810_v31 = vld [vmem:[#allocation14 + $0x58c] ss:$28 sps:$4 sm:$0xff]  }
 0x47c   :  { %5909 = vmatpush1.bf16.msra.mxu1 %v7743_v32  ;;  %v7811_v32 = vld [vmem:[#allocation14 + $0xc90] ss:$28 sps:$4 sm:$0xff]  }
 0x47d   :  { %7049 = vmatpush3.bf16.msra.mxu0 %v7747_v47  ;;  %5910 = vmatprep.subr.bf16.mxu1 %v7750_v36  ;;  %v7808_v47 = vld [vmem:[#allocation14 + $0x588] ss:$28 sps:$4 sm:$0xff]   ;;  %v7812_v36 = vld [vmem:[#allocation14 + $0xad0] ss:$28 sps:$4 sm:$0xff]  }
 0x47e   :  { %7050 = vmatprep.subr.bf16.mxu0 %v7751_v37  ;;  %v7815_v37 = vld [vmem:[#allocation14 + $0x5c4] ss:$28 sps:$4 sm:$0xff]  }
 0x480   :  { %5911 = vmatpush1.bf16.msra.mxu1 %v7748_v38  ;;  %v7816_v38 = vld [vmem:[#allocation14 + $0xcc8] ss:$28 sps:$4 sm:$0xff]  }
 0x481   :  { %7051 = vmatpush3.bf16.msra.mxu0 %v7752_v39  ;;  %5912 = vmatprep.subr.bf16.mxu1 %v7755_v40  ;;  %v7813_v39 = vld [vmem:[#allocation14 + $0x5c0] ss:$28 sps:$4 sm:$0xff]   ;;  %v7817_v40 = vld [vmem:[#allocation14 + $0xb08] ss:$28 sps:$4 sm:$0xff]  }
 0x482   :  { %7052 = vmatprep.subr.bf16.mxu0 %v7756_v41  ;;  %v7820_v41 = vld [vmem:[#allocation14 + $0x5fc] ss:$28 sps:$4 sm:$0xff]  }
 0x484   :  { %5913 = vmatpush1.bf16.msra.mxu1 %v7753_v42  ;;  %v7821_v42 = vld [vmem:[#allocation14 + $0xd00] ss:$28 sps:$4 sm:$0xff]  }
 0x485   :  { %7053 = vmatpush3.bf16.msra.mxu0 %v7757_v45  ;;  %5914 = vmatprep.subr.bf16.mxu1 %v7760_v46  ;;  %v7818_v45 = vld [vmem:[#allocation14 + $0x5f8] ss:$28 sps:$4 sm:$0xff]   ;;  %v7822_v46 = vld [vmem:[#allocation14 + $0xb40] ss:$28 sps:$4 sm:$0xff]  }
 0x486   :  { %7054 = vmatprep.subr.bf16.mxu0 %v7761_v49  ;;  %v7825_v49 = vld [vmem:[#allocation14 + $0x634] ss:$28 sps:$4 sm:$0xff]  }
 0x488   :  { %5915 = vmatpush1.bf16.msra.mxu1 %v7758_v50  ;;  %v7826_v50 = vld [vmem:[#allocation14 + $0xd38] ss:$28 sps:$4 sm:$0xff]  }
 0x489   :  { %7055 = vmatpush3.bf16.msra.mxu0 %v7762_v51  ;;  %5925 = vmatprep.subr.bf16.mxu1 %v7765_v61  ;;  %v7823_v51 = vld [vmem:[#allocation14 + $0x630] ss:$28 sps:$4 sm:$0xff]   ;;  %v7827_v61 = vld [vmem:[#allocation14 + $0xb78] ss:$28 sps:$4 sm:$0xff]  }
 0x48a   :  { %7062 = vmatprep.subr.bf16.mxu0 %v7766_v52  ;;  %v7830_v52 = vld [vmem:[#allocation14 + $0x66c] ss:$28 sps:$4 sm:$0xff]  }
 0x48b   :  { %5917 = vmatmul.mubr.bf16.vlgmr.msra.gmra.mrb[12].mxu1 %v8450_v18  ;;  %v7777_v18 = vld [vmem:[#allocation14 + $0x788] ss:$28 sps:$4 sm:$0xff]  }
 0x48c   :  { %6121 = vmatmul.mubr.bf16.vlgmr.msra.gmra.mrb[28].mxu0 %v8463_v30  ;;  %5926 = vmatpush1.bf16.msra.mxu1 %v7763_v15  ;;  %v7831_v15 = vld [vmem:[#allocation14 + $0xd70] ss:$28 sps:$4 sm:$0xff]  }
 0x48d   :  { %5957 = vmatprep.mubr.bf16.mxu1 %v8454_v4  ;;  %7063 = vmatpush3.bf16.msra.mxu0 %v7767_v53  ;;  %v7782_v4 = vld [vmem:[#allocation14 + $0x7c0] ss:$28 sps:$4 sm:$0xff]   ;;  %v7828_v53 = vld [vmem:[#allocation14 + $0x668] ss:$28 sps:$4 sm:$0xff]  }
 0x48e   :  { %6160 = vmatprep.mubr.bf16.mxu0 %v8479_v3  ;;  %5927 = vmatprep.subr.bf16.mxu1 %v7770_v55  ;;  %v7832_v55 = vld [vmem:[#allocation14 + $0xbb0] ss:$28 sps:$4 sm:$0xff]  }
 0x48f   :  { %7064 = vmatprep.subr.bf16.mxu0 %v7771_v56  ;;  %v7835_v56 = vld [vmem:[#allocation14 + $0x6a4] ss:$28 sps:$4 sm:$0xff]  }
 0x490   :  { %5928 = vmatpush1.bf16.msra.mxu1 %v7768_v57  ;;  %v7836_v57 = vld [vmem:[#allocation14 + $0xda8] ss:$28 sps:$4 sm:$0xff]  }
 0x491   :  { %7065 = vmatpush3.bf16.msra.mxu0 %v7772_v58  ;;  %5929 = vmatprep.subr.bf16.mxu1 %v7775_v60  ;;  %v7833_v58 = vld [vmem:[#allocation14 + $0x6a0] ss:$28 sps:$4 sm:$0xff]   ;;  %v7837_v60 = vld [vmem:[#allocation14 + $0xbe8] ss:$28 sps:$4 sm:$0xff]  }
 0x492   :  { %7066 = vmatprep.subr.bf16.mxu0 %v7776_v63  ;;  %v7840_v63 = vld [vmem:[#allocation14 + $0x6dc] ss:$28 sps:$4 sm:$0xff]  }
 0x494   :  { %5930 = vmatpush1.bf16.msra.mxu1 %v7773_v24  ;;  %v7841_v24 = vld [vmem:[#allocation14 + $0xde0] ss:$28 sps:$4 sm:$0xff]  }
 0x495   :  { %7067 = vmatpush3.bf16.msra.mxu0 %v7777_v18  ;;  %5931 = vmatprep.subr.bf16.mxu1 %v7780_v62  ;;  %v7838_v18 = vld [vmem:[#allocation14 + $0x6d8] ss:$28 sps:$4 sm:$0xff]   ;;  %v7842_v62 = vld [vmem:[#allocation14 + $0xc20] ss:$28 sps:$4 sm:$0xff]  }
 0x496   :  { %7068 = vmatprep.subr.bf16.mxu0 %v7781_v0  ;;  %v7845_v0 = vld [vmem:[#allocation14 + $0x714] ss:$28 sps:$4 sm:$0xff]  }
 0x498   :  { %5932 = vmatpush1.bf16.msra.mxu1 %v7778_v1  ;;  %v7843_v1 = vld [vmem:[#allocation14 + $0x710] ss:$28 sps:$4 sm:$0xff]  }
 0x499   :  { %7069 = vmatpush3.bf16.msra.mxu0 %v7782_v4  ;;  %5933 = vmatprep.subr.bf16.mxu1 %v7785_v2  ;;  %v7848_v4 = vld [vmem:[#allocation14 + $0x74c] ss:$28 sps:$4 sm:$0xff]  }
 0x49a   :  { %7070 = vmatprep.subr.bf16.mxu0 %v7786_v7  ;;  %v7846_v2 = vld [vmem:[#allocation14 + $0x748] ss:$28 sps:$4 sm:$0xff]  }
 0x49b   :  { %v7851_v7 = vld [vmem:[#allocation14 + $0x784] ss:$28 sps:$4 sm:$0xff]  }
 0x49c   :  { %5934 = vmatpush1.bf16.msra.mxu1 %v7783_v22  ;;  %v7849_v22 = vld [vmem:[#allocation14 + $0x780] ss:$28 sps:$4 sm:$0xff]  }
 0x49d   :  { %7071 = vmatpush3.bf16.msra.mxu0 %v7787_v13  ;;  %5935 = vmatprep.subr.bf16.mxu1 %v7790_v14  ;;  %v7854_v13 = vld [vmem:[#allocation14 + $0x7bc] ss:$28 sps:$4 sm:$0xff]  }
 0x49e   :  { %7072 = vmatprep.subr.bf16.mxu0 %v7791_v44  ;;  %v7852_v14 = vld [vmem:[#allocation14 + $0x7b8] ss:$28 sps:$4 sm:$0xff]  }
 0x49f   :  { %v7857_v44 = vld [vmem:[#allocation14 + $0x7f4] ss:$28 sps:$4 sm:$0xff]  }
 0x4a0   :  { %5936 = vmatpush1.bf16.msra.mxu1 %v7788_v17  ;;  %v7855_v17 = vld [vmem:[#allocation14 + $0x7f0] ss:$28 sps:$4 sm:$0xff]  }
 0x4a1   :  { %7073 = vmatpush3.bf16.msra.mxu0 %v7792_v19  ;;  %5937 = vmatprep.subr.bf16.mxu1 %v7795_v20  ;;  %v7858_v19 = vld [vmem:[#allocation14 + $0x828] ss:$28 sps:$4 sm:$0xff]  }
 0x4a2   :  { %7074 = vmatprep.subr.bf16.mxu0 %v7796_v5  ;;  %v7863_v20 = vld [vmem:[#allocation14 + $0x864] ss:$28 sps:$4 sm:$0xff]   ;;  %v7866_v5 = vld [vmem:[#allocation14 + $0x89c] ss:$28 sps:$4 sm:$0xff]  }
 0x4a4   :  { %5938 = vmatpush1.bf16.msra.mxu1 %v7793_v6  ;;  %v7864_v6 = vld [vmem:[#allocation14 + $0x898] ss:$28 sps:$4 sm:$0xff]  }
 0x4a5   :  { %7075 = vmatpush3.bf16.msra.mxu0 %v7797_v10  ;;  %5939 = vmatprep.subr.bf16.mxu1 %v7800_v11  ;;  %v7869_v10 = vld [vmem:[#allocation14 + $0x8d4] ss:$28 sps:$4 sm:$0xff]  }
 0x4a6   :  { %7076 = vmatprep.subr.bf16.mxu0 %v7801_v12  ;;  %v7867_v11 = vld [vmem:[#allocation14 + $0x8d0] ss:$28 sps:$4 sm:$0xff]  }
 0x4a7   :  { %v7872_v12 = vld [vmem:[#allocation14 + $0x90c] ss:$28 sps:$4 sm:$0xff]  }
 0x4a8   :  { %5940 = vmatpush1.bf16.msra.mxu1 %v7798_v21  ;;  %v7870_v21 = vld [vmem:[#allocation14 + $0x908] ss:$28 sps:$4 sm:$0xff]  }
 0x4a9   :  { %7077 = vmatpush3.bf16.msra.mxu0 %v7802_v23  ;;  %5941 = vmatprep.subr.bf16.mxu1 %v7805_v25  ;;  %v7875_v23 = vld [vmem:[#allocation14 + $0x944] ss:$28 sps:$4 sm:$0xff]  }
 0x4aa   :  { %7084 = vmatprep.subr.bf16.mxu0 %v7806_v54  ;;  %v7873_v25 = vld [vmem:[#allocation14 + $0x940] ss:$28 sps:$4 sm:$0xff]  }
 0x4ab   :  { %v7878_v54 = vld [vmem:[#allocation14 + $0x97c] ss:$28 sps:$4 sm:$0xff]  }
 0x4ac   :  { %6161 = vmatmul.mubr.bf16.vlgmr.msra.gmra.mrb[32].mxu0 %v8481_v9  ;;  %5942 = vmatpush1.bf16.msra.mxu1 %v7803_v59  ;;  %v7876_v59 = vld [vmem:[#allocation14 + $0x978] ss:$28 sps:$4 sm:$0xff]  }
 0x4ad   :  { %7085 = vmatpush3.bf16.msra.mxu0 %v7807_v29  ;;  %6200 = vmatprep.mubr.bf16.mxu0 %v8485_v16  ;;  %v7881_v29 = vld [vmem:[#allocation14 + $0x9b4] ss:$28 sps:$4 sm:$0xff]  }
 0x4ae   :  { %5943 = vmatprep.subr.bf16.mxu1 %v7810_v31  ;;  %7086 = vmatprep.subr.bf16.mxu0 %v7811_v32  ;;  %v7879_v31 = vld [vmem:[#allocation14 + $0x9b0] ss:$28 sps:$4 sm:$0xff]  }
 0x4af   :  { %v7884_v32 = vld [vmem:[#allocation14 + $0x9ec] ss:$28 sps:$4 sm:$0xff]  }
 0x4b0   :  { %5944 = vmatpush1.bf16.msra.mxu1 %v7808_v47  ;;  %v7882_v47 = vld [vmem:[#allocation14 + $0x9e8] ss:$28 sps:$4 sm:$0xff]  }
 0x4b1   :  { %7087 = vmatpush3.bf16.msra.mxu0 %v7812_v36  ;;  %5945 = vmatprep.subr.bf16.mxu1 %v7815_v37  ;;  %v7887_v36 = vld [vmem:[#allocation14 + $0xa24] ss:$28 sps:$4 sm:$0xff]  }
 0x4b2   :  { %7088 = vmatprep.subr.bf16.mxu0 %v7816_v38  ;;  %v7885_v37 = vld [vmem:[#allocation14 + $0xa20] ss:$28 sps:$4 sm:$0xff]  }
 0x4b3   :  { %v7890_v38 = vld [vmem:[#allocation14 + $0xa5c] ss:$28 sps:$4 sm:$0xff]  }
 0x4b4   :  { %5946 = vmatpush1.bf16.msra.mxu1 %v7813_v39  ;;  %v7888_v39 = vld [vmem:[#allocation14 + $0xa58] ss:$28 sps:$4 sm:$0xff]  }
 0x4b5   :  { %7089 = vmatpush3.bf16.msra.mxu0 %v7817_v40  ;;  %5947 = vmatprep.subr.bf16.mxu1 %v7820_v41  ;;  %v7893_v40 = vld [vmem:[#allocation14 + $0xa94] ss:$28 sps:$4 sm:$0xff]  }
 0x4b6   :  { %7090 = vmatprep.subr.bf16.mxu0 %v7821_v42  ;;  %v7891_v41 = vld [vmem:[#allocation14 + $0xa90] ss:$28 sps:$4 sm:$0xff]  }
 0x4b7   :  { %v7896_v42 = vld [vmem:[#allocation14 + $0xacc] ss:$28 sps:$4 sm:$0xff]  }
 0x4b8   :  { %5948 = vmatpush1.bf16.msra.mxu1 %v7818_v45  ;;  %v7894_v45 = vld [vmem:[#allocation14 + $0xac8] ss:$28 sps:$4 sm:$0xff]  }
 0x4b9   :  { %7091 = vmatpush3.bf16.msra.mxu0 %v7822_v46  ;;  %5949 = vmatprep.subr.bf16.mxu1 %v7825_v49  ;;  %v7899_v46 = vld [vmem:[#allocation14 + $0xb04] ss:$28 sps:$4 sm:$0xff]  }
 0x4ba   :  { %7092 = vmatprep.subr.bf16.mxu0 %v7826_v50  ;;  %v7897_v49 = vld [vmem:[#allocation14 + $0xb00] ss:$28 sps:$4 sm:$0xff]  }
 0x4bb   :  { %v7902_v50 = vld [vmem:[#allocation14 + $0xb3c] ss:$28 sps:$4 sm:$0xff]  }
 0x4bc   :  { %5950 = vmatpush1.bf16.msra.mxu1 %v7823_v51  ;;  %v7900_v51 = vld [vmem:[#allocation14 + $0xb38] ss:$28 sps:$4 sm:$0xff]  }
 0x4bd   :  { %7093 = vmatpush3.bf16.msra.mxu0 %v7827_v61  ;;  %5951 = vmatprep.subr.bf16.mxu1 %v7830_v52  ;;  %v7905_v61 = vld [vmem:[#allocation14 + $0xb74] ss:$28 sps:$4 sm:$0xff]  }
 0x4be   :  { %7094 = vmatprep.subr.bf16.mxu0 %v7831_v15  ;;  %v7903_v52 = vld [vmem:[#allocation14 + $0xb70] ss:$28 sps:$4 sm:$0xff]   ;;  %v8515_v15 = vld [vmem:[#allocation16] sm:$0xff] }
 0x4c0   :  { %5952 = vmatpush1.bf16.msra.mxu1 %v7828_v53  ;;  %v3228_v53 = vrot.slane %v8515_v15, %v8413_v43 }
 0x4c1   :  { %7095 = vmatpush3.bf16.msra.mxu0 %v7832_v55  ;;  %5953 = vmatprep.subr.bf16.mxu1 %v7835_v56  ;;  %v3224_v55 = vrot.slane %v8515_v15, %v8368_v35  ;;  %v3232_v56 = vrot.slane %v8515_v15, %v8416_v48  ;;  %v7914_v48 = vld [vmem:[#allocation14 + $0xc1c] ss:$28 sps:$4 sm:$0xff]  }
 0x4c2   :  { %7096 = vmatprep.subr.bf16.mxu0 %v7836_v57  ;;  %v7906_v57 = vld [vmem:[#allocation14 + $0xba8] ss:$28 sps:$4 sm:$0xff]  }
 0x4c4   :  { %5954 = vmatpush1.bf16.msra.mxu1 %v7833_v58  ;;  %v7911_v58 = vld [vmem:[#allocation14 + $0xbe4] ss:$28 sps:$4 sm:$0xff]  }
 0x4c5   :  { %7097 = vmatpush3.bf16.msra.mxu0 %v7837_v60  ;;  %5955 = vmatprep.subr.bf16.mxu1 %v7840_v63 }
 0x4c6   :  { %7098 = vmatprep.subr.bf16.mxu0 %v7841_v24 }
 0x4c8   :  { %5956 = vmatpush1.bf16.msra.mxu1 %v7838_v18 }
 0x4c9   :  { %7099 = vmatpush3.bf16.msra.mxu0 %v7842_v62  ;;  %5966 = vmatprep.subr.bf16.mxu1 %v7845_v0 }
 0x4cb   :  { %5958 = vmatmul.mubr.bf16.vlgmr.msra.gmra.mrb[12].mxu1 %v8463_v30  ;;  %v7860_v30 = vld [vmem:[#allocation14 + $0x82c] ss:$28 sps:$4 sm:$0xff]  }
 0x4cc   :  { %6201 = vmatmul.mubr.bf16.vlgmr.msra.gmra.mrb[36].mxu0 %v8496_v33  ;;  %5967 = vmatpush1.bf16.msra.mxu1 %v7843_v1 }
 0x4cd   :  { %5998 = vmatprep.mubr.bf16.mxu1 %v8479_v3  ;;  %5968 = vmatprep.subr.bf16.mxu1 %v7848_v4  ;;  %v7861_v3 = vld [vmem:[#allocation14 + $0x860] ss:$28 sps:$4 sm:$0xff]  }
 0x4d0   :  { %5969 = vmatpush1.bf16.msra.mxu1 %v7846_v2  ;;  %v7909_v2 = vld [vmem:[#allocation14 + $0xbe0] ss:$28 sps:$4 sm:$0xff]  }
 0x4d1   :  { %5970 = vmatprep.subr.bf16.mxu1 %v7851_v7 }
 0x4d4   :  { %5971 = vmatpush1.bf16.msra.mxu1 %v7849_v22  ;;  %v7912_v22 = vld [vmem:[#allocation14 + $0xc18] ss:$28 sps:$4 sm:$0xff]  }
 0x4d5   :  { %5972 = vmatprep.subr.bf16.mxu1 %v7854_v13  ;;  %v7917_v13 = vld [vmem:[#allocation14 + $0xc54] ss:$28 sps:$4 sm:$0xff]  }
 0x4d8   :  { %5973 = vmatpush1.bf16.msra.mxu1 %v7852_v14  ;;  %v7915_v14 = vld [vmem:[#allocation14 + $0xc50] ss:$28 sps:$4 sm:$0xff]  }
 0x4d9   :  { %5974 = vmatprep.subr.bf16.mxu1 %v7857_v44  ;;  %v7920_v44 = vld [vmem:[#allocation14 + $0xc8c] ss:$28 sps:$4 sm:$0xff]  }
 0x4dc   :  { %5975 = vmatpush1.bf16.msra.mxu1 %v7855_v17 }
 0x4dd   :  { %5976 = vmatprep.subr.bf16.mxu1 %v7860_v30 }
 0x4e0   :  { %5977 = vmatpush1.bf16.msra.mxu1 %v7858_v19  ;;  %v7918_v19 = vld [vmem:[#allocation14 + $0xc88] ss:$28 sps:$4 sm:$0xff]  }
 0x4e1   :  { %5978 = vmatprep.subr.bf16.mxu1 %v7863_v20 }
 0x4e4   :  { %5979 = vmatpush1.bf16.msra.mxu1 %v7861_v3  ;;  %v7923_v3 = vld [vmem:[#allocation14 + $0xcc4] ss:$28 sps:$4 sm:$0xff]  }
 0x4e5   :  { %5980 = vmatprep.subr.bf16.mxu1 %v7866_v5 }
 0x4e8   :  { %5981 = vmatpush1.bf16.msra.mxu1 %v7864_v6  ;;  %v7921_v6 = vld [vmem:[#allocation14 + $0xcc0] ss:$28 sps:$4 sm:$0xff]  }
 0x4e9   :  { %5982 = vmatprep.subr.bf16.mxu1 %v7869_v10  ;;  %v7926_v10 = vld [vmem:[#allocation14 + $0xcfc] ss:$28 sps:$4 sm:$0xff]  }
 0x4ec   :  { %5983 = vmatpush1.bf16.msra.mxu1 %v7867_v11  ;;  %v7924_v11 = vld [vmem:[#allocation14 + $0xcf8] ss:$28 sps:$4 sm:$0xff]  }
 0x4ed   :  { %5984 = vmatprep.subr.bf16.mxu1 %v7872_v12  ;;  %v7929_v12 = vld [vmem:[#allocation14 + $0xd34] ss:$28 sps:$4 sm:$0xff]  }
 0x4f0   :  { %5985 = vmatpush1.bf16.msra.mxu1 %v7870_v21  ;;  %v7927_v21 = vld [vmem:[#allocation14 + $0xd30] ss:$28 sps:$4 sm:$0xff]  }
 0x4f1   :  { %5986 = vmatprep.subr.bf16.mxu1 %v7875_v23  ;;  %v7932_v23 = vld [vmem:[#allocation14 + $0xd6c] ss:$28 sps:$4 sm:$0xff]  }
 0x4f4   :  { %5987 = vmatpush1.bf16.msra.mxu1 %v7873_v25  ;;  %v7930_v25 = vld [vmem:[#allocation14 + $0xd68] ss:$28 sps:$4 sm:$0xff]  }
 0x4f5   :  { %5988 = vmatprep.subr.bf16.mxu1 %v7878_v54  ;;  %v7935_v54 = vld [vmem:[#allocation14 + $0xda4] ss:$28 sps:$4 sm:$0xff]  }
 0x4f8   :  { %5989 = vmatpush1.bf16.msra.mxu1 %v7876_v59 }
 0x4f9   :  { %5990 = vmatprep.subr.bf16.mxu1 %v7881_v29 }
 0x4fc   :  { %5991 = vmatpush1.bf16.msra.mxu1 %v7879_v31  ;;  %v7933_v31 = vld [vmem:[#allocation14 + $0xda0] ss:$28 sps:$4 sm:$0xff]  }
 0x4fd   :  { %5992 = vmatprep.subr.bf16.mxu1 %v7884_v32 }
 0x500   :  { %5993 = vmatpush1.bf16.msra.mxu1 %v7882_v47 }
 0x501   :  { %5994 = vmatprep.subr.bf16.mxu1 %v7887_v36  ;;  %v7938_v36 = vld [vmem:[#allocation14 + $0xddc] ss:$28 sps:$4 sm:$0xff]  }
 0x504   :  { %5995 = vmatpush1.bf16.msra.mxu1 %v7885_v37 }
 0x505   :  { %5996 = vmatprep.subr.bf16.mxu1 %v7890_v38  ;;  %v7936_v38 = vld [vmem:[#allocation14 + $0xdd8] ss:$28 sps:$4 sm:$0xff]  }
 0x508   :  { %5997 = vmatpush1.bf16.msra.mxu1 %v7888_v39  ;;  %v3244_v39 = vrot.slane %v8515_v15, %v1049_v8 }
 0x509   :  { %6007 = vmatprep.subr.bf16.mxu1 %v7893_v40 }
 0x50b   :  { %5999 = vmatmul.mubr.bf16.vlgmr.msra.gmra.mrb[12].mxu1 %v8481_v9  ;;  %v7908_v9 = vld [vmem:[#allocation14 + $0xbac] ss:$28 sps:$4 sm:$0xff]  }
 0x50c   :  { %6008 = vmatpush1.bf16.msra.mxu1 %v7891_v41  ;;  %6039 = vmatprep.mubr.bf16.mxu1 %v8485_v16  ;;  %v3220_v16 = vrot.slane %v8515_v15, %v8365_v34 }
 0x50d   :  { %6009 = vmatprep.subr.bf16.mxu1 %v7896_v42 }
 0x510   :  { %6010 = vmatpush1.bf16.msra.mxu1 %v7894_v45 }
 0x511   :  { %6011 = vmatprep.subr.bf16.mxu1 %v7899_v46 }
 0x514   :  { %6012 = vmatpush1.bf16.msra.mxu1 %v7897_v49 }
 0x515   :  { %6013 = vmatprep.subr.bf16.mxu1 %v7902_v50 }
 0x518   :  { %6014 = vmatpush1.bf16.msra.mxu1 %v7900_v51 }
 0x519   :  { %6015 = vmatprep.subr.bf16.mxu1 %v7905_v61 }
 0x51c   :  { %6016 = vmatpush1.bf16.msra.mxu1 %v7903_v52 }
 0x51d   :  { %6017 = vmatprep.subr.bf16.mxu1 %v7908_v9 }
 0x51e   :  { %v5713_v60 = vpop.f32.mrb[8].mxu1  ;;  %v5877_v63 = vpop.f32.mrb[20].mxu0 }
 0x51f   :  { %v7114_v24 = vadd.f32 %v5713_v60, %v3220_v16  ;;  %v7116_v18 = vadd.f32 %v5877_v63, %v3228_v53  ;;  %v5715_v62 = vpop.f32.mrb[9].mxu1  ;;  %v5879_v0 = vpop.f32.mrb[21].mxu0  ;;  %v3236_v63 = vrot.slane %v8515_v15, %v1041_v26 }
 0x520   :  { %v7115_v34 = vadd.f32 %v5715_v62, %v3224_v55  ;;  %v7117_v1 = vadd.f32 %v5879_v0, %v3232_v56  ;;  %v5717_v4 = vpop.f32.mrb[10].mxu1  ;;  %v5881_v43 = vpop.f32.mrb[22].mxu0  ;;  %6018 = vmatpush1.bf16.msra.mxu1 %v7906_v57 }
 0x521   :  { %7939 = vtanh.f32 %v7114_v24  ;;  %v5718_v35 = vpop.f32.mrb[11].mxu1  ;;  %v5882_v7 = vpop.f32.mrb[23].mxu0  ;;  %6019 = vmatprep.subr.bf16.mxu1 %v7911_v58  ;;  %v3240_v24 = vrot.slane %v8515_v15, %v1045_v27 }
 0x522   :  { %7941 = vtanh.f32 %v7116_v18 }
 0x523   :  { %7943 = vtanh.f32 %v7115_v34 }
 0x524   :  { %7945 = vtanh.f32 %v7117_v1  ;;  %6020 = vmatpush1.bf16.msra.mxu1 %v7909_v2 }
 0x525   :  { %6021 = vmatprep.subr.bf16.mxu1 %v7914_v48 }
 0x528   :  { %6022 = vmatpush1.bf16.msra.mxu1 %v7912_v22 }
 0x529   :  { %6023 = vmatprep.subr.bf16.mxu1 %v7917_v13 }
 0x52b   :  { %v7940_v17 = vpop.eup %7939 }
 0x52c   :  { %v7942_v30 = vpop.eup %7941  ;;  %6215 = vst [vmem:[#allocation17] sm:$0xff] %v7940_v17  ;;  %6024 = vmatpush1.bf16.msra.mxu1 %v7915_v14 }
 0x52d   :  { %v7944_v20 = vpop.eup %7943  ;;  %6217 = vst [vmem:[#allocation17 + $0x10] sm:$0xff] %v7942_v30  ;;  %6025 = vmatprep.subr.bf16.mxu1 %v7920_v44 }
 0x52e   :  { %v7946_v5 = vpop.eup %7945  ;;  %6216 = vst [vmem:[#allocation17 + $0x8] sm:$0xff] %v7944_v20 }
 0x52f   :  { %6218 = vst [vmem:[#allocation17 + $0x18] sm:$0xff] %v7946_v5 }
 0x530   :  { %6026 = vmatpush1.bf16.msra.mxu1 %v7918_v19 }
 0x531   :  { %6027 = vmatprep.subr.bf16.mxu1 %v7923_v3 }
 0x534   :  { %6028 = vmatpush1.bf16.msra.mxu1 %v7921_v6 }
 0x535   :  { %6029 = vmatprep.subr.bf16.mxu1 %v7926_v10 }
 0x538   :  { %6030 = vmatpush1.bf16.msra.mxu1 %v7924_v11 }
 0x539   :  { %6031 = vmatprep.subr.bf16.mxu1 %v7929_v12 }
 0x53c   :  { %6032 = vmatpush1.bf16.msra.mxu1 %v7927_v21 }
 0x53d   :  { %6033 = vmatprep.subr.bf16.mxu1 %v7932_v23 }
 0x53f   :  { %v7034_v59 = vpop.f32.mrb[24].mxu0 }
 0x540   :  { %v7035_v29 = vpop.f32.mrb[25].mxu0  ;;  %6034 = vmatpush1.bf16.msra.mxu1 %v7930_v25 }
 0x541   :  { %v7036_v32 = vadd.f32 %v7035_v29, %v7034_v59  ;;  %v7037_v47 = vpop.f32.mrb[26].mxu0  ;;  %6035 = vmatprep.subr.bf16.mxu1 %v7935_v54 }
 0x542   :  { %v7038_v37 = vpop.f32.mrb[27].mxu0 }
 0x543   :  { %v6083_v42 = vadd.f32 %v7036_v32, %v3244_v39 }
 0x544   :  { %6036 = vmatpush1.bf16.msra.mxu1 %v7933_v31 }
 0x545   :  { %6037 = vmatprep.subr.bf16.mxu1 %v7938_v36 }
 0x548   :  { %6038 = vmatpush1.bf16.msra.mxu1 %v7936_v38 }
 0x54b   :  { %6040 = vmatmul.mubr.bf16.vlgmr.msra.gmra.mrb[12].mxu1 %v8496_v33 }
 0x55f   :  { %v7056_v40 = vpop.f32.mrb[28].mxu0 }
 0x560   :  { %v7057_v41 = vpop.f32.mrb[29].mxu0 }
 0x561   :  { %v7058_v45 = vadd.f32 %v7057_v41, %v7056_v40  ;;  %v7059_v46 = vpop.f32.mrb[30].mxu0 }
 0x562   :  { %v7060_v49 = vpop.f32.mrb[31].mxu0 }
 0x563   :  { %v6123_v50 = vadd.f32 %v7058_v45, %v6083_v42 }
 0x57f   :  { %v7078_v51 = vpop.f32.mrb[32].mxu0 }
 0x580   :  { %v7079_v61 = vpop.f32.mrb[33].mxu0 }
 0x581   :  { %v7080_v52 = vadd.f32 %v7079_v61, %v7078_v51  ;;  %v7081_v9 = vpop.f32.mrb[34].mxu0 }
 0x582   :  { %v7082_v16 = vpop.f32.mrb[35].mxu0 }
 0x583   :  { %v6163_v53 = vadd.f32 %v7080_v52, %v6123_v50 }
 0x59f   :  { %v7100_v55 = vpop.f32.mrb[36].mxu0 }
 0x5a0   :  { %v7101_v56 = vpop.f32.mrb[37].mxu0 }
 0x5a1   :  { %v7102_v33 = vadd.f32 %v7101_v56, %v7100_v55  ;;  %v7103_v57 = vpop.f32.mrb[38].mxu0 }
 0x5a2   :  { %v7104_v58 = vpop.f32.mrb[39].mxu0 }
 0x5a3   :  { %v6203_v60 = vadd.f32 %v7102_v33, %v6163_v53 }
 0x5a5   :  { %7947 = vtanh.f32 %v6203_v60 }
 0x5af   :  { %v7948_v8 = vpop.eup %7947 }
 0x5b0   :  { %6221 = vst [vmem:[#allocation17 + $0x30] sm:$0xff] %v7948_v8 }
 0x61e   :  { %v6041_v18 = vpop.f32.mrb[12].mxu1 }
 0x61f   :  { %v7118_v62 = vadd.f32 %v6041_v18, %v3236_v63  ;;  %v6043_v0 = vpop.f32.mrb[13].mxu1 }
 0x620   :  { %v7119_v34 = vadd.f32 %v6043_v0, %v3240_v24  ;;  %v6045_v1 = vpop.f32.mrb[14].mxu1 }
 0x621   :  { %7949 = vtanh.f32 %v7118_v62  ;;  %v6046_v4 = vpop.f32.mrb[15].mxu1 }
 0x622   :  { %7951 = vtanh.f32 %v7119_v34 }
 0x62b   :  { %v7950_v43 = vpop.eup %7949 }
 0x62c   :  { %v7952_v2 = vpop.eup %7951  ;;  %6219 = vst [vmem:[#allocation17 + $0x20] sm:$0xff] %v7950_v43 }
 0x62d   :  { %6220 = vst [vmem:[#allocation17 + $0x28] sm:$0xff] %v7952_v2 }
 0x62e   :  { %8162 = shalt.err (!%p8159_p6)
}
 0x62f   :  { %s8163_s22 = scalar_lea.hbm %s8556_s9, 896 }
 0x630   :  { %p8164_p7 = scmp.ne.s32.totalorder %s8556_s9, %s8163_s22  ;;  %p8167_p8 = scmp.lt.u32.totalorder %s8163_s22, %s8556_s9 }
 0x632   :  { %p8169_p9 = pnand %p8167_p8, %p8164_p7 }
 0x634   :  { %8172 = shalt.err (!%p8169_p9)
}
 0x635   :  { %6231 = dma.vmem_to_hbm [thread:$0]  %s6229_s24, 896, %s8556_s9, [#allocation4]  }
 0x636   :  { %8183 = dma.done.wait [#allocation4], 896  }
 0x637   :  { %8184 = vsyncadd [#allocation4], 4294966400 }
 0x638   :  { %6235 = vsyncpa [#allocation3], 1 }
 0x639   :  { %6236 = vsyncpa [#allocation6], 1 }
 0x63a   :  { %6237 = vsyncpa [#allocation9], 1 }
 0x63b   :  { %6238 = vsyncpa [#allocation12], 1 }
 0x63c   :  { %6239 = vsyncpa [#allocation15], 1 }
 0x63d   :  { %6240 = vsyncpa [#allocation4], 1 }

</bundles_post_ra>
